<compile_context>
chip_gen: v7x
topology: tpu7x:2x2x1
jax: 0.10.0
libtpu: 0.0.40
codegen_flags: <defaults>
</compile_context>

<pallas_src>
import functools

import jax
import jax.numpy as jnp
from jax import lax
from jax.experimental import pallas as pl
from jax.experimental.pallas import tpu as pltpu


def _round_up(n, m):
    return (n + m - 1) // m * m


def _gelu_tanh_f32(x):
    # tanh-approximate GELU (f32). tanh goes to the EUP (its own bundle slot),
    # unlike the long erf polynomial which would occupy the VALU for the whole
    # (tm, M) tensor.
    c = 0.7978845608028654  # sqrt(2/pi)
    return 0.5 * x * (1.0 + jnp.tanh(c * (x + 0.044715 * x * x * x)))


def mlp_block_kernel(x_ref, gamma_ref, beta_ref, w1_ref, b1_ref, w2_ref,
                     b2_ref, o_ref, *, eps):
    # x_ref: (TM, E)   gamma/beta: (1, E) f32
    # w1: (E, M) bf16  b1: (1, M) f32   w2: (M, E) bf16  b2: (1, E) f32
    x = x_ref[...].astype(jnp.float32)

    # --- LayerNorm over the embedding axis (two-pass moments, f32) ---
    mean = jnp.mean(x, axis=-1, keepdims=True)
    xc = x - mean
    var = jnp.mean(xc * xc, axis=-1, keepdims=True)
    inv = lax.rsqrt(var + eps)
    xn = xc * inv * gamma_ref[...] + beta_ref[...]

    # --- Linear (E -> M) + GELU; bf16 MXU operands, f32 accumulation ---
    h = jnp.dot(xn.astype(jnp.bfloat16), w1_ref[...],
                preferred_element_type=jnp.float32)
    h = _gelu_tanh_f32(h + b1_ref[...])
    # TODO(synk): nn.Dropout(p=0.1) is identity at inference; training-mode
    # dropout (pltpu.prng_seed / prng_random_bits) is not implemented.

    # --- Linear (M -> E) ---
    y = jnp.dot(h.astype(jnp.bfloat16), w2_ref[...],
                preferred_element_type=jnp.float32)
    o_ref[...] = (y + b2_ref[...]).astype(o_ref.dtype)


def _choose_row_tile(n_rows, tile_rows):
    """Pick a row tile (multiple of 8) that divides n_rows when possible and
    gives >= 2 grid steps so the 'parallel' axis can use both TensorCores."""
    n_steps = max(1, pl.cdiv(n_rows, tile_rows))
    if n_steps < 2 and n_rows >= 16:
        n_steps = 2
    return _round_up(pl.cdiv(n_rows, n_steps), 8)


def mlp_block(x, gamma, beta, w1, b1, w2, b2, *, eps=1e-5, tile_rows=512):
    """x: (B, S, E). Returns (B, S, E). Inference-mode MLPBlock forward."""
    B, S, E = x.shape
    M = w1.shape[1]
    N = B * S

    tm = _choose_row_tile(N, tile_rows)
    n_pad = _round_up(N, tm)

    x2 = x.reshape(N, E)
    if n_pad != N:  # only when no divisor-friendly tile exists
        x2 = jnp.pad(x2, ((0, n_pad - N), (0, 0)))

    gamma2 = gamma.reshape(1, E).astype(jnp.float32)
    beta2 = beta.reshape(1, E).astype(jnp.float32)
    # bf16 weights: higher MXU throughput and half the resident weight VMEM.
    w1_bf = w1.astype(jnp.bfloat16)
    w2_bf = w2.astype(jnp.bfloat16)
    b1_2 = b1.reshape(1, M).astype(jnp.float32)
    b2_2 = b2.reshape(1, E).astype(jnp.float32)

    kernel = functools.partial(mlp_block_kernel, eps=eps)

    # VMEM budget: double-buffered x/out row tiles, single-buffered
    # grid-invariant params (Buffered(1) below), f32 intermediates.
    itemsize = x2.dtype.itemsize
    vmem_need = (
        2 * tm * E * itemsize            # x tiles (double-buffered)
        + 2 * tm * E * itemsize          # out tiles (double-buffered)
        + (E * M + M * E) * 2            # bf16 weights (single-buffered)
        + (M + 3 * E) * 4                # biases + gamma/beta
        + tm * M * 4 + 2 * tm * E * 4    # f32 intermediates (xn, h, y)
    )
    # Generation-aware cap: stay well below physical VMEM (64 MiB on v7x,
    # 128 MiB on v5e/v6e) while giving the compiler room to pipeline deeper.
    try:
        vmem_cap = int(pltpu.get_tpu_info().vmem_capacity_bytes)
    except Exception:
        vmem_cap = 64 * 1024 * 1024
    vmem_limit = int(min(max(vmem_need * 2, 32 * 1024 * 1024),
                         int(0.8 * vmem_cap)))

    invariant = dict(pipeline_mode=pl.Buffered(1))  # single-buffer, loaded once

    # TODO(synk): at production E/M on v7x (64 MiB VMEM), add an M reduction
    # grid axis (tile w1 columns / w2 rows, f32 VMEM accumulator, axis marked
    # "arbitrary") instead of holding full weights + the (tm, M) f32 h resident.
    # TODO(synk): emit bf16 activations (out_shape dtype / x cast) if the
    # surrounding model tolerates it — halves the dominant HBM stream.
    out = pl.pallas_call(
        kernel,
        out_shape=jax.ShapeDtypeStruct((n_pad, E), x.dtype),
        grid_spec=pltpu.PrefetchScalarGridSpec(
            num_scalar_prefetch=0,
            grid=(n_pad // tm,),
            in_specs=[
                pl.BlockSpec((tm, E), lambda i: (i, 0)),               # x tile
                pl.BlockSpec((1, E), lambda i: (0, 0), **invariant),   # gamma
                pl.BlockSpec((1, E), lambda i: (0, 0), **invariant),   # beta
                pl.BlockSpec((E, M), lambda i: (0, 0), **invariant),   # w1
                pl.BlockSpec((1, M), lambda i: (0, 0), **invariant),   # b1
                pl.BlockSpec((M, E), lambda i: (0, 0), **invariant),   # w2
                pl.BlockSpec((1, E), lambda i: (0, 0), **invariant),   # b2
            ],
            out_specs=pl.BlockSpec((tm, E), lambda i: (i, 0)),
        ),
        compiler_params=pltpu.CompilerParams(
            dimension_semantics=("parallel",),   # shard row tiles across TCs
            vmem_limit_bytes=vmem_limit,
        ),
    )(x2, gamma2, beta2, w1_bf, b1_2, w2_bf, b2_2)

    if n_pad != N:
        out = out[:N]
    return out.reshape(B, S, E)


def reference(x, gamma, beta, w1, b1, w2, b2, eps=1e-5):
    # Matches PyTorch: LayerNorm -> Linear -> exact-erf GELU -> Linear.
    xf = x.astype(jnp.float32)
    mean = jnp.mean(xf, axis=-1, keepdims=True)
    var = jnp.mean((xf - mean) ** 2, axis=-1, keepdims=True)
    xn = (xf - mean) * lax.rsqrt(var + eps) * gamma + beta
    h = xn @ w1 + b1
    h = 0.5 * h * (1.0 + lax.erf(h / jnp.sqrt(2.0)))
    return (h @ w2 + b2).astype(x.dtype)


if __name__ == "__main__":
    # Small shapes consistent with the module (embedding_dim=128, mlp_size=512).
    # B*S = 400 -> tm is chosen as 200 (2 grid steps, zero tail padding).
    B, S, E, M = 2, 200, 128, 512

    key = jax.random.PRNGKey(0)
    kx, kg, kb, kw1, kb1, kw2, kb2 = jax.random.split(key, 7)

    x = jax.random.normal(kx, (B, S, E), dtype=jnp.float32)

    gamma = 1.0 + 0.1 * jax.random.normal(kg, (E,), jnp.float32)
    beta = 0.05 * jax.random.normal(kb, (E,), jnp.float32)
    w1 = jax.random.normal(kw1, (E, M), jnp.float32) * (1.0 / jnp.sqrt(E))
    b1 = jax.random.normal(kb1, (M,), jnp.float32) * 0.01
    w2 = jax.random.normal(kw2, (M, E), jnp.float32) * (1.0 / jnp.sqrt(M))
    b2 = jax.random.normal(kb2, (E,), jnp.float32) * 0.01

    out = jax.block_until_ready(mlp_block(x, gamma, beta, w1, b1, w2, b2))

    ref = reference(x, gamma, beta, w1, b1, w2, b2)
    assert out.shape == (B, S, E)
    # bf16 MXU operands (f32 accumulation) + tanh-approx GELU vs all-f32
    # exact-erf reference: tolerance loosened accordingly.
    assert jnp.allclose(out, ref, atol=5e-2, rtol=5e-2), "mismatch vs reference"

    print("KERNEL_OK")
</pallas_src>

<mosaic_0001>
module attributes {stable_mosaic.version = 11 : i64} {
  func.func @mlp_block_kernel(%arg0: i32, %arg1: memref<200x128xf32, #tpu.memory_space<vmem>>, %arg2: memref<1x128xf32, #tpu.memory_space<vmem>>, %arg3: memref<1x128xf32, #tpu.memory_space<vmem>>, %arg4: memref<128x512xbf16, #tpu.memory_space<vmem>>, %arg5: memref<1x512xf32, #tpu.memory_space<vmem>>, %arg6: memref<512x128xbf16, #tpu.memory_space<vmem>>, %arg7: memref<1x128xf32, #tpu.memory_space<vmem>>, %arg8: memref<200x128xf32, #tpu.memory_space<vmem>>) attributes {dimension_semantics = [#tpu.dimension_semantics<parallel>], iteration_bounds = array<i64: 2>, scalar_prefetch = 0 : i64, scratch_operands = 0 : i64, tpu.core_type = #tpu.core_type<tc>, window_params = [{transform_indices = @transform_0, window_bounds = array<i64: 200, 128>}, {pipeline_mode = #tpu.pipeline_mode<synchronous>, transform_indices = @transform_1, window_bounds = array<i64: 1, 128>}, {pipeline_mode = #tpu.pipeline_mode<synchronous>, transform_indices = @transform_2, window_bounds = array<i64: 1, 128>}, {pipeline_mode = #tpu.pipeline_mode<synchronous>, transform_indices = @transform_3, window_bounds = array<i64: 128, 512>}, {pipeline_mode = #tpu.pipeline_mode<synchronous>, transform_indices = @transform_4, window_bounds = array<i64: 1, 512>}, {pipeline_mode = #tpu.pipeline_mode<synchronous>, transform_indices = @transform_5, window_bounds = array<i64: 512, 128>}, {pipeline_mode = #tpu.pipeline_mode<synchronous>, transform_indices = @transform_6, window_bounds = array<i64: 1, 128>}, {transform_indices = @transform_7, window_bounds = array<i64: 200, 128>}]} {
    %c0 = arith.constant 0 : index
    %c0_0 = arith.constant 0 : index
    %0 = vector.load %arg1[%c0, %c0_0] : memref<200x128xf32, #tpu.memory_space<vmem>>, vector<200x128xf32>
    %cst = arith.constant dense<0.000000e+00> : vector<200xf32>
    %1 = vector.multi_reduction <add>, %0, %cst [1] : vector<200x128xf32> to vector<200xf32>
    %2 = vector.shape_cast %1 : vector<200xf32> to vector<200x1xf32>
    %cst_1 = arith.constant 1.280000e+02 : f32
    %3 = vector.broadcast %cst_1 : f32 to vector<200x1xf32>
    %4 = arith.divf %2, %3 : vector<200x1xf32>
    %5 = vector.broadcast %4 : vector<200x1xf32> to vector<200x128xf32>
    %6 = arith.subf %0, %5 : vector<200x128xf32>
    %7 = arith.mulf %6, %6 : vector<200x128xf32>
    %cst_2 = arith.constant dense<0.000000e+00> : vector<200xf32>
    %8 = vector.multi_reduction <add>, %7, %cst_2 [1] : vector<200x128xf32> to vector<200xf32>
    %9 = vector.shape_cast %8 : vector<200xf32> to vector<200x1xf32>
    %cst_3 = arith.constant 1.280000e+02 : f32
    %10 = vector.broadcast %cst_3 : f32 to vector<200x1xf32>
    %11 = arith.divf %9, %10 : vector<200x1xf32>
    %cst_4 = arith.constant 9.99999974E-6 : f32
    %12 = vector.broadcast %cst_4 : f32 to vector<200x1xf32>
    %13 = arith.addf %11, %12 : vector<200x1xf32>
    %14 = math.rsqrt %13 : vector<200x1xf32>
    %15 = vector.broadcast %14 : vector<200x1xf32> to vector<200x128xf32>
    %16 = arith.mulf %6, %15 : vector<200x128xf32>
    %c0_5 = arith.constant 0 : index
    %c0_6 = arith.constant 0 : index
    %17 = vector.load %arg2[%c0_5, %c0_6] : memref<1x128xf32, #tpu.memory_space<vmem>>, vector<1x128xf32>
    %18 = vector.broadcast %17 : vector<1x128xf32> to vector<200x128xf32>
    %19 = arith.mulf %16, %18 : vector<200x128xf32>
    %c0_7 = arith.constant 0 : index
    %c0_8 = arith.constant 0 : index
    %20 = vector.load %arg3[%c0_7, %c0_8] : memref<1x128xf32, #tpu.memory_space<vmem>>, vector<1x128xf32>
    %21 = vector.broadcast %20 : vector<1x128xf32> to vector<200x128xf32>
    %22 = arith.addf %19, %21 : vector<200x128xf32>
    %23 = arith.truncf %22 : vector<200x128xf32> to vector<200x128xbf16>
    %c0_9 = arith.constant 0 : index
    %c0_10 = arith.constant 0 : index
    %24 = vector.load %arg4[%c0_9, %c0_10] : memref<128x512xbf16, #tpu.memory_space<vmem>>, vector<128x512xbf16>
    %cst_11 = arith.constant dense<0.000000e+00> : vector<200x512xf32>
    %25 = tpu.matmul %23, %24, %cst_11 {dimension_numbers = #tpu.dot_dimension_numbers<[1], [0], [0], [1], [0, 0, 1, 1], [], []>} : vector<200x128xbf16>, vector<128x512xbf16>, vector<200x512xf32> -> vector<200x512xf32>
    %c0_12 = arith.constant 0 : index
    %c0_13 = arith.constant 0 : index
    %26 = vector.load %arg5[%c0_12, %c0_13] : memref<1x512xf32, #tpu.memory_space<vmem>>, vector<1x512xf32>
    %27 = vector.broadcast %26 : vector<1x512xf32> to vector<200x512xf32>
    %28 = arith.addf %25, %27 : vector<200x512xf32>
    %cst_14 = arith.constant 5.000000e-01 : f32
    %29 = vector.broadcast %cst_14 : f32 to vector<200x512xf32>
    %30 = arith.mulf %29, %28 : vector<200x512xf32>
    %cst_15 = arith.constant 4.471500e-02 : f32
    %31 = vector.broadcast %cst_15 : f32 to vector<200x512xf32>
    %32 = arith.mulf %31, %28 : vector<200x512xf32>
    %33 = arith.mulf %32, %28 : vector<200x512xf32>
    %34 = arith.mulf %33, %28 : vector<200x512xf32>
    %35 = arith.addf %28, %34 : vector<200x512xf32>
    %cst_16 = arith.constant 0.797884583 : f32
    %36 = vector.broadcast %cst_16 : f32 to vector<200x512xf32>
    %37 = arith.mulf %36, %35 : vector<200x512xf32>
    %38 = math.tanh %37 : vector<200x512xf32>
    %cst_17 = arith.constant 1.000000e+00 : f32
    %39 = vector.broadcast %cst_17 : f32 to vector<200x512xf32>
    %40 = arith.addf %39, %38 : vector<200x512xf32>
    %41 = arith.mulf %30, %40 : vector<200x512xf32>
    %42 = arith.truncf %41 : vector<200x512xf32> to vector<200x512xbf16>
    %c0_18 = arith.constant 0 : index
    %c0_19 = arith.constant 0 : index
    %43 = vector.load %arg6[%c0_18, %c0_19] : memref<512x128xbf16, #tpu.memory_space<vmem>>, vector<512x128xbf16>
    %cst_20 = arith.constant dense<0.000000e+00> : vector<200x128xf32>
    %44 = tpu.matmul %42, %43, %cst_20 {dimension_numbers = #tpu.dot_dimension_numbers<[1], [0], [0], [1], [0, 0, 1, 1], [], []>} : vector<200x512xbf16>, vector<512x128xbf16>, vector<200x128xf32> -> vector<200x128xf32>
    %c0_21 = arith.constant 0 : index
    %c0_22 = arith.constant 0 : index
    %45 = vector.load %arg7[%c0_21, %c0_22] : memref<1x128xf32, #tpu.memory_space<vmem>>, vector<1x128xf32>
    %46 = vector.broadcast %45 : vector<1x128xf32> to vector<200x128xf32>
    %47 = arith.addf %44, %46 : vector<200x128xf32>
    %c0_23 = arith.constant 0 : index
    %c0_24 = arith.constant 0 : index
    %48 = vector.load %arg8[%c0_23, %c0_24] : memref<200x128xf32, #tpu.memory_space<vmem>>, vector<200x128xf32>
    tpu.vector_store %arg8[%c0_23, %c0_24], %47 {strides = array<i32>} : memref<200x128xf32, #tpu.memory_space<vmem>>, vector<200x128xf32>,
    return
  }
  func.func @transform_0(%arg0: i32) -> (i32, i32) {
    %c0_i32 = arith.constant 0 : i32
    %c0_i32_0 = arith.constant 0 : i32
    return %arg0, %c0_i32 : i32, i32
  }
  func.func @transform_1(%arg0: i32) -> (i32, i32) {
    %c0_i32 = arith.constant 0 : i32
    %c0_i32_0 = arith.constant 0 : i32
    %c0_i32_1 = arith.constant 0 : i32
    return %c0_i32, %c0_i32_0 : i32, i32
  }
  func.func @transform_2(%arg0: i32) -> (i32, i32) {
    %c0_i32 = arith.constant 0 : i32
    %c0_i32_0 = arith.constant 0 : i32
    %c0_i32_1 = arith.constant 0 : i32
    return %c0_i32, %c0_i32_0 : i32, i32
  }
  func.func @transform_3(%arg0: i32) -> (i32, i32) {
    %c0_i32 = arith.constant 0 : i32
    %c0_i32_0 = arith.constant 0 : i32
    %c0_i32_1 = arith.constant 0 : i32
    return %c0_i32, %c0_i32_0 : i32, i32
  }
  func.func @transform_4(%arg0: i32) -> (i32, i32) {
    %c0_i32 = arith.constant 0 : i32
    %c0_i32_0 = arith.constant 0 : i32
    %c0_i32_1 = arith.constant 0 : i32
    return %c0_i32, %c0_i32_0 : i32, i32
  }
  func.func @transform_5(%arg0: i32) -> (i32, i32) {
    %c0_i32 = arith.constant 0 : i32
    %c0_i32_0 = arith.constant 0 : i32
    %c0_i32_1 = arith.constant 0 : i32
    return %c0_i32, %c0_i32_0 : i32, i32
  }
  func.func @transform_6(%arg0: i32) -> (i32, i32) {
    %c0_i32 = arith.constant 0 : i32
    %c0_i32_0 = arith.constant 0 : i32
    %c0_i32_1 = arith.constant 0 : i32
    return %c0_i32, %c0_i32_0 : i32, i32
  }
  func.func @transform_7(%arg0: i32) -> (i32, i32) {
    %c0_i32 = arith.constant 0 : i32
    %c0_i32_0 = arith.constant 0 : i32
    return %arg0, %c0_i32 : i32, i32
  }
}

</mosaic_0001>

<bundles_post_ra>
// kernel: tpu_custom_call.1
= control target key start
LH: loop header
LB: loop body
LE: loop exit
PB: predicated region body
PF: predicated region fallthrough
CT: control target
= control target key end

     0   :  { %s5697_s0 = inlined_call_operand.hbm [shape: f32[400,128], index: 0, kind: input, shape index: {}]   ;;  %s5698_s1 = inlined_call_operand.vmem [shape: f32[1,128], index: 1, kind: input, shape index: {}]   ;;  %s5699_s2 = inlined_call_operand.vmem [shape: f32[1,128], index: 2, kind: input, shape index: {}]   ;;  %s5700_s3 = inlined_call_operand.hbm [shape: bf16[128,512], index: 3, kind: input, shape index: {}]   ;;  %s5701_s4 = inlined_call_operand.vmem [shape: f32[1,512], index: 4, kind: input, shape index: {}]   ;;  %s5702_s5 = inlined_call_operand.hbm [shape: bf16[512,128], index: 5, kind: input, shape index: {}]   ;;  %s5703_s6 = inlined_call_operand.vmem [shape: f32[1,128], index: 6, kind: input, shape index: {}]   ;;  %s5704_s7 = inlined_call_operand.hbm [shape: f32[400,128], index: 7, kind: output, shape index: {}]  }
   0x1   :  { %5802 = sst [smem:[#allocation81_spill]] %s5700_s3 }
   0x2   :  { %12 = vsyncpa [#allocation3], 0 }
   0x3   :  { %14 = vsyncpa [#allocation3 + $0x1], 0 }
   0x4   :  { %15 = vsyncpa [#allocation6], 0 }
   0x5   :  { %16 = vsyncpa [#allocation4], 0 }
   0x6   :  { %18 = vsyncpa [#allocation4 + $0x1], 0  ;;  %s3749_s24 = smov 0   ;;  %s3751_s25 = smov 0  }
   0x7   :  { %s3753_s26 = smov 0   ;;  %s3755_s27 = smov 0  }
   0x8 LB: > { %s3770_s28 = sadd.s32 4294967295, %s3694_s27   ;;  %s2861_s29 = sadd.s32 4294967294, %s3694_s27   ;;  %s3694_s27 = sphi %s3755_s27, %s6048_s27   ;;  %s3690_s26 = sphi %s3753_s26, %s6047_s26   ;;  %s3686_s25 = sphi %s3751_s25, %s6046_s25   ;;  %s3682_s24 = sphi %s3749_s24, %s6045_s24  }
   0x9   : > { %p44_p0 = scmp.ne.s32.totalorder %s3686_s25, %s3682_s24  ;;  %p5705_p1 = scmp.eq.s32.totalorder %s3770_s28, 0 }
   0xa   : > { %p200_p3 = scmp.eq.s32.totalorder %s2861_s29, 1  ;;  %p2862_p5 = scmp.ge.s32.totalorder %s3694_s27, 1 }
   0xb   : > { %p3779_p4 = por %p5705_p1, %p44_p0  ;;  %p207_p7 = scmp.lt.s32.totalorder %s3694_s27, 3 }
   0xc   : > { %p3784_p6 = por %p200_p3, %p44_p0  ;;  %s3696_s10 = smov [#allocation5]  }
   0xd   : > { %s5803_s30 = scalar_select %p3779_p4, 1, 0 }
   0xe   : > { %s5804_s8 = scalar_select %p3784_p6, 1, 0 }
   0xf   : > { %p3789_p8 = pnand %p2862_p5, %p207_p7  ;;  %s225_s11 = sshll.u32 %s3696_s10, 4  ;;  %s3793_s11 = int_to_ptr.vmem [resolvable:$true] %s225_s11 }
  0x10   : > { %s3697_s13 = smov [#allocation7]   ;;  %s5807_s3 = sld [smem:[#allocation81_spill]] }
  0x11   : > { %p3144_p9 = pneg %p3789_p8  ;;  %s241_s14 = sshll.u32 %s3697_s13, 4  ;;  %s3804_s14 = int_to_ptr.vmem [resolvable:$true] %s241_s14 }
  0x13   : > { %p3800_p11 = pnand %p3144_p9, %p5705_p1 }
  0x15   : > { %p3540_p13 = pneg %p3800_p11 }
  0x16   : > { %s3538_s17 = scalar_lea.hbm %s5807_s3, 4096 }
  0x17   : > { %p3539_p12 = scmp.ne.s32.totalorder %s5807_s3, %s3538_s17  ;;  %p3545_p5 = scmp.lt.u32.totalorder %s3538_s17, %s5807_s3 }
  0x19   : > { %p3541_p0 = pnand %p3540_p13, %p3539_p12 }
  0x1b   : > { %p3542_p3 = pneg %p3541_p0 }
  0x1d   : > { %p3547_p7 = pnand %p3545_p5, %p3542_p3 }
  0x1f   : > { %3550 = shalt.err (!%p3547_p7)
}
  0x20   : > { %s3551_s22 = scalar_lea.vmem %s3793_s11, 4096  ;;  %p3559_p2 = scmp.lt.s32.totalorder %s3793_s11, %s3793_s11 }
  0x21   : > { %p3552_p9 = scmp.ne.s32.totalorder %s3793_s11, %s3551_s22  ;;  %p3560_p12 = scmp.lt.s32.totalorder %s3551_s22, %s3551_s22 }
  0x23   : > { %p3554_p10 = pnand %p3552_p9, %p3540_p13  ;;  %p3561_p0 = por %p3560_p12, %p3559_p2 }
  0x25   : > { %p3555_p1 = pneg %p3554_p10 }
  0x27   : > { %p3562_p6 = pnand %p3561_p0, %p3555_p1 }
  0x29   : > { %3565 = shalt.err (!%p3562_p6)
}
  0x2a   : > { %s3698_s23 = smov 256   ;;  %s3699_s29 = smov 16  }
  0x2b   : > { %3147 = dma.hbm_to_vmem [thread:$0]  (!%p3800_p11), %s5807_s3, 4096, %s3793_s11, [#allocation6], %s3698_s23, %s3698_s23, %s3699_s29  }
  0x2c   : > { %s3566_s17 = scalar_lea.hbm %s5702_s5, 4096 }
  0x2d   : > { %p3567_p2 = scmp.ne.s32.totalorder %s5702_s5, %s3566_s17  ;;  %p3573_p10 = scmp.lt.u32.totalorder %s3566_s17, %s5702_s5 }
  0x2f   : > { %p3569_p1 = pnand %p3567_p2, %p3540_p13 }
  0x31   : > { %p3570_p6 = pneg %p3569_p1 }
  0x33   : > { %p3575_p3 = pnand %p3573_p10, %p3570_p6 }
  0x35   : > { %3578 = shalt.err (!%p3575_p3)
}
  0x36   : > { %s3579_s11 = scalar_lea.vmem %s3804_s14, 4096  ;;  %p3587_p12 = scmp.lt.s32.totalorder %s3804_s14, %s3804_s14 }
  0x37   : > { %p3580_p5 = scmp.ne.s32.totalorder %s3804_s14, %s3579_s11  ;;  %p3588_p0 = scmp.lt.s32.totalorder %s3579_s11, %s3579_s11 }
  0x39   : > { %p3582_p7 = pnand %p3580_p5, %p3540_p13  ;;  %p3589_p2 = por %p3588_p0, %p3587_p12 }
  0x3b   : > { %p3583_p9 = pneg %p3582_p7 }
  0x3d   : > { %p3590_p1 = pnand %p3589_p2, %p3583_p9 }
  0x3f   : > { %3593 = shalt.err (!%p3590_p1)
}
  0x40   : > { %s3700_s22 = smov 64   ;;  %s3701_s23 = smov 4  }
  0x41   : > { %3150 = dma.hbm_to_vmem [thread:$0]  (!%p3800_p11), %s5702_s5, 4096, %s3804_s14, [#allocation6], %s3700_s22, %s3700_s22, %s3701_s23  }
  0x42   : > { %s3859_s13 = sadd.s32 1, %s3694_s27   ;;  %s31_s16 = sadd.s32 1, %s3690_s26 }
  0x43   : > { %s28_s15 = ssub.s32 %s3694_s27, %s3859_s13  ;;  %p38_p6 = scmp.ne.s32.totalorder %s3690_s26, %s3686_s25 }
  0x44   : > { %p29_p13 = scmp.eq.s32.totalorder %s28_s15, 0  ;;  %p39_p10 = scmp.eq.s32.totalorder %s3694_s27, 0 }
  0x45   : > { %p5808_p5 = scmp.eq.s32.totalorder %s3770_s28, 1  ;;  %p3161_p9 = scmp.lt.s32.totalorder %s3694_s27, 2 }
  0x46   : > { %s3868_s17 = scalar_select %p29_p13, %s3690_s26, %s31_s16  }
  0x47   : > { %p40_p3 = por %p39_p10, %p38_p6  ;;  %p3872_p7 = por %p5808_p5, %p38_p6 }
  0x48   : > { %s258_s12 = sand.u32 1, %s3690_s26   ;;  %s2940_s14 = smul.u32 3200, %s3694_s27 }
  0x49   : > { %s5809_s18 = scalar_select %p3872_p7, 1, 0 }
  0x4a   : > { %s3130_s19 = smul.u32 200, %s258_s12  ;;  %p3879_p11 = pnand %p3161_p9, %p40_p3 }
  0x4b   : > { %s3886_s22 = scalar_lea.hbm %s5697_s0, %s2940_s14  ;;  %s3890_s10 = scalar_lea.sflag [#allocation3], %s258_s12 }
  0x4c   : > { %s262_s23 = scalar_lea.vmem [#allocation2], %s3130_s19  ;;  %s3594_s15 = scalar_lea.hbm %s3886_s22, 3200 }
  0x4d   : > { %s269_s29 = sshll.u32 %s262_s23, 4  ;;  %p3595_p12 = scmp.ne.s32.totalorder %s3886_s22, %s3594_s15  ;;  %s3888_s29 = int_to_ptr.vmem [resolvable:$true] %s269_s29 }
  0x4e   : > { %p3596_p0 = pneg %p3879_p11  ;;  %s3599_s21 = scalar_lea.hbm %s5697_s0, 6400 }
  0x4f   : > { %p3600_p13 = scmp.lt.u32.totalorder %s3886_s22, %s5697_s0  ;;  %p3601_p6 = scmp.lt.u32.totalorder %s3599_s21, %s3594_s15 }
  0x50   : > { %p3597_p2 = pnand %p3596_p0, %p3595_p12  ;;  %p3603_p3 = scmp.lt.u32.totalorder %s3594_s15, %s3886_s22 }
  0x51   : > { %p3602_p10 = por %p3601_p6, %p3600_p13 }
  0x52   : > { %p3598_p1 = pneg %p3597_p2 }
  0x53   : > { %p3604_p5 = por %p3603_p3, %p3602_p10 }
  0x55   : > { %p3605_p9 = pnand %p3604_p5, %p3598_p1 }
  0x57   : > { %3608 = shalt.err (!%p3605_p9)
}
  0x58   : > { %s3609_s12 = scalar_lea.vmem %s3888_s29, 3200  ;;  %s3702_s19 = smov [#allocation2]  }
  0x59   : > { %p3610_p12 = scmp.ne.s32.totalorder %s3888_s29, %s3609_s12  ;;  %s3614_s23 = sshll.u32 %s3702_s19, 4  ;;  %s3615_s23 = int_to_ptr.vmem [resolvable:$false] %s3614_s23 }
  0x5a   : > { %s3616_s3 = scalar_lea.vmem %s3615_s23, 6400  ;;  %p3617_p4 = scmp.lt.s32.totalorder %s3888_s29, %s3615_s23 }
  0x5b   : > { %p3612_p2 = pnand %p3610_p12, %p3596_p0  ;;  %p3618_p13 = scmp.lt.s32.totalorder %s3616_s3, %s3609_s12 }
  0x5d   : > { %p3613_p7 = pneg %p3612_p2  ;;  %p3619_p6 = por %p3618_p13, %p3617_p4 }
  0x5f   : > { %p3620_p10 = pnand %p3619_p6, %p3613_p7 }
  0x61   : > { %3623 = shalt.err (!%p3620_p10)
}
  0x62   : > { %s3703_s15 = smov 128   ;;  %s3704_s16 = smov 8  }
  0x63   : > { %3154 = dma.hbm_to_vmem [thread:$0]  (!%p3879_p11), %s3886_s22, 3200, %s3888_s29, %s3890_s10, %s3703_s15, %s3703_s15, %s3704_s16  }
  0x64   : > { %281 = sbr.rel (%p3789_p8) target bundleno = 1156 (0x484), region = 48 }
  0x6b   : > { %s3921_s14 = sand.u32 1, %s3686_s25   ;;  %p5811_p4 = scmp.ne.s32.totalorder %s5803_s30, 0 }
  0x6c   : > { %s3131_s21 = smul.u32 200, %s3921_s14  ;;  %s284_s11 = scalar_lea.sflag [#allocation3], %s3921_s14 }
  0x6e   : > { %s3927_s12 = scalar_lea.vmem [#allocation2], %s3131_s21 }
  0x6f   : > { %3669 = dma.done.wait (%p5811_p4), %s284_s11, 3200  }
  0x70   : > { %3671 = vsyncadd (%p5811_p4), %s284_s11, 4294964096  ;;  %p5812_p7 = scmp.eq.s32.totalorder %s3770_s28, 0 }
  0x72   : > { %3673 = dma.done.wait (%p5812_p7), [#allocation6], 8192   ;;  %p5813_p8 = pmov %p5812_p7 }
  0x73   : > { %v329_v0 = vld [vmem:[%s3927_s12] sm:$0xff]  ;;  %v331_v1 = vld [vmem:[%s3927_s12 + $0x10] sm:$0xff]  ;;  %v330_v2 = vld [vmem:[%s3927_s12 + $0x8] sm:$0xff]  ;;  %s5596_s3 = scalar_lea.vmem [#allocation8], %s3131_s21  ;;  %s2941_s15 = smul.u32 3200, %s3770_s28 }
  0x74   : > { %3675 = vsyncadd (%p5813_p8), [#allocation6], 4294959104  ;;  %354 = vadd.xlane.f32.xlu0 %v329_v0  ;;  %358 = vadd.xlane.f32.xlu1 %v331_v1  ;;  %v3941_v3 = vld [vmem:[%s3927_s12 + $0x18] sm:$0xff]  ;;  %v3945_v4 = vld [vmem:[%s3927_s12 + $0x20] sm:$0xff]  ;;  %s2769_s16 = sshll.u32 %s5596_s3, 4  ;;  %s2756_s28 = scalar_lea.sflag [#allocation4], %s3921_s14  ;;  %s5652_s16 = int_to_ptr.vmem [resolvable:$true] %s2769_s16 }
  0x75   : > { %v3948_v5 = vld [vmem:[%s3927_s12 + $0x28] sm:$0xff]  ;;  %v3951_v6 = vld [vmem:[%s3927_s12 + $0x38] sm:$0xff]  ;;  %v3954_v7 = vld [vmem:[%s3927_s12 + $0x30] sm:$0xff]  ;;  %s3624_s30 = scalar_lea.vmem %s5652_s16, 3200  ;;  %p6042_p0 = scmp.ne.s32.totalorder %s5809_s18, 0 }
  0x76   : > { %v3959_v8 = vld [vmem:[%s3927_s12 + $0x48] sm:$0xff]  ;;  %v3962_v9 = vld [vmem:[%s3927_s12 + $0x40] sm:$0xff]  ;;  %v3967_v10 = vld [vmem:[%s3927_s12 + $0x58] sm:$0xff]  ;;  %p3625_p11 = scmp.ne.s32.totalorder %s5652_s16, %s3624_s30  ;;  %s3706_s9 = smov [#allocation8]  }
  0x77   : > { %v3970_v11 = vld [vmem:[%s3927_s12 + $0x50] sm:$0xff]  ;;  %v3975_v12 = vld [vmem:[%s3927_s12 + $0x68] sm:$0xff]  ;;  %v3980_v13 = vld [vmem:[%s3927_s12 + $0x60] sm:$0xff]  ;;  %s3628_s20 = sshll.u32 %s3706_s9, 4  ;;  %s3629_s20 = int_to_ptr.vmem [resolvable:$false] %s3628_s20 }
  0x78   : > { %356 = vadd.xlane.f32.xlu0 %v330_v2  ;;  %360 = vadd.xlane.f32.xlu1 %v3941_v3  ;;  %v3983_v14 = vld [vmem:[%s3927_s12 + $0x78] sm:$0xff]  ;;  %v3986_v15 = vld [vmem:[%s3927_s12 + $0x70] sm:$0xff]  ;;  %v3991_v16 = vld [vmem:[%s3927_s12 + $0x88] sm:$0xff]  ;;  %p3626_p1 = pnand %p3625_p11, %p6042_p0  ;;  %s3630_s22 = scalar_lea.vmem %s3629_s20, 6400 }
  0x79   : > { %v3996_v17 = vld [vmem:[%s3927_s12 + $0x80] sm:$0xff]  ;;  %v3999_v18 = vld [vmem:[%s3927_s12 + $0x98] sm:$0xff]  ;;  %v4004_v19 = vld [vmem:[%s3927_s12 + $0x90] sm:$0xff]  ;;  %p3631_p5 = scmp.lt.s32.totalorder %s5652_s16, %s3629_s20  ;;  %p3632_p9 = scmp.lt.s32.totalorder %s3630_s22, %s3624_s30 }
  0x7a   : > { %v3208_v20 = vld [vmem:[#allocation5 + $0x4] ss:$16 sps:$4 sm:$0xff]   ;;  %v3210_v21 = vld [vmem:[#allocation5 + $0xc] ss:$16 sps:$4 sm:$0xff]   ;;  %v3212_v22 = vld [vmem:[#allocation5] ss:$16 sps:$4 sm:$0xff]   ;;  %p3627_p3 = pneg %p3626_p1 }
  0x7b   : > { %v3213_v23 = vld [vmem:[#allocation5 + $0x8] ss:$16 sps:$4 sm:$0xff]   ;;  %v3214_v24 = vld [vmem:[#allocation5 + $0x24] ss:$16 sps:$4 sm:$0xff]   ;;  %v3216_v25 = vld [vmem:[#allocation5 + $0x2c] ss:$16 sps:$4 sm:$0xff]   ;;  %921 = vmatprep.subr.bf16.mxu0 %v3208_v20  ;;  %1082 = vmatprep.subr.bf16.mxu1 %v3210_v21  ;;  %p3633_p12 = por %p3632_p9, %p3631_p5 }
  0x7c   : > { %362 = vadd.xlane.f32.xlu0 %v3945_v4  ;;  %364 = vadd.xlane.f32.xlu1 %v3948_v5  ;;  %v4017_v38 = vld [vmem:[%s3927_s12 + $0xa0] sm:$0xff]  ;;  %v4028_v45 = vld [vmem:[%s3927_s12 + $0xa8] sm:$0xff]  ;;  %v4037_v51 = vld [vmem:[%s3927_s12 + $0xb0] sm:$0xff] }
  0x7d   : > { %922 = vmatpush1.bf16.msra.mxu0 %v3212_v22  ;;  %1083 = vmatpush1.bf16.msra.mxu1 %v3213_v23  ;;  %v3218_v58 = vld [vmem:[#allocation5 + $0x20] ss:$16 sps:$4 sm:$0xff]   ;;  %v3219_v59 = vld [vmem:[#allocation5 + $0x28] ss:$16 sps:$4 sm:$0xff]   ;;  %p3634_p2 = pnand %p3633_p12, %p3627_p3 }
  0x7e   : > { %923 = vmatprep.subr.bf16.mxu0 %v3214_v24  ;;  %1084 = vmatprep.subr.bf16.mxu1 %v3216_v25  ;;  %v4046_v60 = vld [vmem:[%s3927_s12 + $0xb8] sm:$0xff]  ;;  %v4058_v22 = vld [vmem:[%s3927_s12 + $0xc0] sm:$0xff]  ;;  %s5650_s12 = scalar_lea.hbm %s5704_s7, %s2941_s15 }
  0x7f   : > { %v3224_v20 = vld [vmem:[#allocation5 + $0x40] ss:$16 sps:$4 sm:$0xff]   ;;  %v3225_v21 = vld [vmem:[#allocation5 + $0x48] ss:$16 sps:$4 sm:$0xff]  }
  0x80   : > { %368 = vadd.xlane.f32.xlu1 %v3951_v6  ;;  %366 = vadd.xlane.f32.xlu0 %v3954_v7 }
  0x81   : > { %924 = vmatpush1.bf16.msra.mxu0 %v3218_v58  ;;  %1085 = vmatpush1.bf16.msra.mxu1 %v3219_v59 }
  0x84   : > { %372 = vadd.xlane.f32.xlu1 %v3959_v8  ;;  %370 = vadd.xlane.f32.xlu0 %v3962_v9 }
  0x88   : > { %376 = vadd.xlane.f32.xlu1 %v3967_v10  ;;  %374 = vadd.xlane.f32.xlu0 %v3970_v11 }
  0x8c   : > { %380 = vadd.xlane.f32.xlu1 %v3975_v12  ;;  %378 = vadd.xlane.f32.xlu0 %v3980_v13 }
  0x90   : > { %384 = vadd.xlane.f32.xlu1 %v3983_v14  ;;  %382 = vadd.xlane.f32.xlu0 %v3986_v15 }
  0x94   : > { %388 = vadd.xlane.f32.xlu1 %v3991_v16  ;;  %386 = vadd.xlane.f32.xlu0 %v3996_v17 }
  0x98   : > { %392 = vadd.xlane.f32.xlu1 %v3999_v18  ;;  %390 = vadd.xlane.f32.xlu0 %v4004_v19 }
 0x101   : > { %v355_v26 = vpop.xlane.xlu0 %354  ;;  %v359_v27 = vpop.xlane.xlu1 %358 }
 0x102   : > { %v405_v28 = vmul.f32 0.0078125, %v355_v26  ;;  %v407_v30 = vmul.f32 0.0078125, %v359_v27  ;;  %v3228_v26 = vld [vmem:[#allocation5 + $0x6c] ss:$16 sps:$4 sm:$0xff]  }
 0x104   : > { %v4008_v29 = vsub.f32 %v329_v0, %v405_v28  ;;  %v4014_v36 = vsub.f32 %v331_v1, %v407_v30  ;;  %v3220_v0 = vld [vmem:[#allocation5 + $0x44] ss:$16 sps:$4 sm:$0xff]   ;;  %v3222_v1 = vld [vmem:[#allocation5 + $0x4c] ss:$16 sps:$4 sm:$0xff]  }
 0x105   : > { %v357_v31 = vpop.xlane.xlu0 %356  ;;  %v361_v32 = vpop.xlane.xlu1 %360  ;;  %925 = vmatprep.subr.bf16.mxu0 %v3220_v0  ;;  %1086 = vmatprep.subr.bf16.mxu1 %v3222_v1  ;;  %v3244_v1 = vld [vmem:[#allocation5 + $0xc4] ss:$16 sps:$4 sm:$0xff]  }
 0x106   : > { %v406_v33 = vmul.f32 0.0078125, %v357_v31  ;;  %v455_v34 = vmul.f32 %v4008_v29, %v4008_v29  ;;  %v408_v37 = vmul.f32 0.0078125, %v361_v32  ;;  %v457_v43 = vmul.f32 %v4014_v36, %v4014_v36  ;;  %926 = vmatpush1.bf16.msra.mxu0 %v3224_v20  ;;  %1087 = vmatpush1.bf16.msra.mxu1 %v3225_v21  ;;  %v3230_v32 = vld [vmem:[#allocation5 + $0x60] ss:$16 sps:$4 sm:$0xff]  }
 0x107   : > { %1088 = vmatprep.subr.bf16.mxu1 %v3228_v26  ;;  %v3248_v21 = vld [vmem:[#allocation5 + $0xc0] ss:$16 sps:$4 sm:$0xff]   ;;  %v3252_v26 = vld [vmem:[#allocation5 + $0xec] ss:$16 sps:$4 sm:$0xff]  }
 0x108   : > { %v4012_v35 = vsub.f32 %v330_v2, %v406_v33  ;;  %480 = vadd.xlane.f32.xlu0 %v455_v34  ;;  %v4023_v42 = vsub.f32 %v3941_v3, %v408_v37  ;;  %v3231_v33 = vld [vmem:[#allocation5 + $0x68] ss:$16 sps:$4 sm:$0xff]  }
 0x109   : > { %v363_v39 = vpop.xlane.xlu0 %362  ;;  %v365_v40 = vpop.xlane.xlu1 %364 }
 0x10a   : > { %v456_v41 = vmul.f32 %v4012_v35, %v4012_v35  ;;  %v409_v44 = vmul.f32 0.0078125, %v363_v39  ;;  %v458_v49 = vmul.f32 %v4023_v42, %v4023_v42  ;;  %v410_v50 = vmul.f32 0.0078125, %v365_v40  ;;  %1089 = vmatpush1.bf16.msra.mxu1 %v3231_v33  ;;  %v3232_v39 = vld [vmem:[#allocation5 + $0x84] ss:$16 sps:$4 sm:$0xff]   ;;  %v3234_v40 = vld [vmem:[#allocation5 + $0x8c] ss:$16 sps:$4 sm:$0xff]  }
 0x10b   : > { %1090 = vmatprep.subr.bf16.mxu1 %v3234_v40  ;;  %v3254_v33 = vld [vmem:[#allocation5 + $0xe0] ss:$16 sps:$4 sm:$0xff]  }
 0x10c   : > { %394 = vadd.xlane.f32.xlu0 %v4017_v38  ;;  %482 = vadd.xlane.f32.xlu1 %v456_v41  ;;  %v4032_v48 = vsub.f32 %v3945_v4, %v409_v44  ;;  %v4041_v54 = vsub.f32 %v3948_v5, %v410_v50 }
 0x10d   : > { %v369_v46 = vpop.xlane.xlu1 %368  ;;  %v367_v47 = vpop.xlane.xlu0 %366 }
 0x10e   : > { %v459_v55 = vmul.f32 %v4032_v48, %v4032_v48  ;;  %v412_v56 = vmul.f32 0.0078125, %v369_v46  ;;  %v411_v57 = vmul.f32 0.0078125, %v367_v47  ;;  %v460_v4 = vmul.f32 %v4041_v54, %v4041_v54  ;;  %v3236_v47 = vld [vmem:[#allocation5 + $0x80] ss:$16 sps:$4 sm:$0xff]  }
 0x110   : > { %484 = vadd.xlane.f32.xlu0 %v457_v43  ;;  %396 = vadd.xlane.f32.xlu1 %v4028_v45  ;;  %v4050_v2 = vsub.f32 %v3951_v6, %v412_v56  ;;  %v4053_v3 = vsub.f32 %v3954_v7, %v411_v57  ;;  %v3226_v7 = vld [vmem:[#allocation5 + $0x64] ss:$16 sps:$4 sm:$0xff]  }
 0x111   : > { %v373_v52 = vpop.xlane.xlu1 %372  ;;  %v371_v53 = vpop.xlane.xlu0 %370  ;;  %927 = vmatprep.subr.bf16.mxu0 %v3226_v7  ;;  %v3250_v7 = vld [vmem:[#allocation5 + $0xe4] ss:$16 sps:$4 sm:$0xff]  }
 0x112   : > { %v414_v63 = vmul.f32 0.0078125, %v373_v52  ;;  %v413_v5 = vmul.f32 0.0078125, %v371_v53  ;;  %v462_v28 = vmul.f32 %v4050_v2, %v4050_v2  ;;  %v461_v30 = vmul.f32 %v4053_v3, %v4053_v3  ;;  %928 = vmatpush1.bf16.msra.mxu0 %v3230_v32 }
 0x113   : > { %929 = vmatprep.subr.bf16.mxu0 %v3232_v39  ;;  %v3705_v39 = vmov 0  }
 0x114   : > { %398 = vadd.xlane.f32.xlu0 %v4037_v51  ;;  %486 = vadd.xlane.f32.xlu1 %v458_v49  ;;  %v4061_v6 = vsub.f32 %v3959_v8, %v414_v63  ;;  %v4065_v27 = vsub.f32 %v3962_v9, %v413_v5  ;;  %v3237_v49 = vld [vmem:[#allocation5 + $0x88] ss:$16 sps:$4 sm:$0xff]  }
 0x115   : > { %v377_v61 = vpop.xlane.xlu1 %376  ;;  %v375_v62 = vpop.xlane.xlu0 %374  ;;  %1091 = vmatpush1.bf16.msra.mxu1 %v3237_v49  ;;  %953 = vmatprep.mubr.bf16.mxu0 %v3705_v39 }
 0x116   : > { %v416_v25 = vmul.f32 0.0078125, %v377_v61  ;;  %v415_v31 = vmul.f32 0.0078125, %v375_v62  ;;  %v464_v9 = vmul.f32 %v4061_v6, %v4061_v6  ;;  %v463_v43 = vmul.f32 %v4065_v27, %v4065_v27  ;;  %930 = vmatpush1.bf16.msra.mxu0 %v3236_v47  ;;  %v3242_v61 = vld [vmem:[#allocation5 + $0xa0] ss:$16 sps:$4 sm:$0xff]   ;;  %v3243_v62 = vld [vmem:[#allocation5 + $0xa8] ss:$16 sps:$4 sm:$0xff]   ;;  %1114 = vmatprep.mubr.bf16.mxu1 %v3705_v39 }
 0x118   : > { %400 = vadd.xlane.f32.xlu1 %v4046_v60  ;;  %488 = vadd.xlane.f32.xlu0 %v459_v55  ;;  %v4072_v37 = vsub.f32 %v3967_v10, %v416_v25  ;;  %v4077_v41 = vsub.f32 %v3970_v11, %v415_v31  ;;  %v3238_v55 = vld [vmem:[#allocation5 + $0xa4] ss:$16 sps:$4 sm:$0xff]   ;;  %v3240_v11 = vld [vmem:[#allocation5 + $0xac] ss:$16 sps:$4 sm:$0xff]  }
 0x119   : > { %v381_v23 = vpop.xlane.xlu1 %380  ;;  %v379_v24 = vpop.xlane.xlu0 %378  ;;  %931 = vmatprep.subr.bf16.mxu0 %v3238_v55  ;;  %1092 = vmatprep.subr.bf16.mxu1 %v3240_v11 }
 0x11a   : > { %v418_v44 = vmul.f32 0.0078125, %v381_v23  ;;  %v417_v46 = vmul.f32 0.0078125, %v379_v24  ;;  %v466_v10 = vmul.f32 %v4072_v37, %v4072_v37  ;;  %v465_v58 = vmul.f32 %v4077_v41, %v4077_v41  ;;  %932 = vmatpush1.bf16.msra.mxu0 %v3242_v61  ;;  %1093 = vmatpush1.bf16.msra.mxu1 %v3243_v62  ;;  %v3249_v23 = vld [vmem:[#allocation5 + $0xc8] ss:$16 sps:$4 sm:$0xff]  }
 0x11b   : > { %933 = vmatprep.subr.bf16.mxu0 %v3244_v1 }
 0x11c   : > { %490 = vadd.xlane.f32.xlu1 %v460_v4  ;;  %402 = vadd.xlane.f32.xlu0 %v4058_v22  ;;  %v4084_v56 = vsub.f32 %v3975_v12, %v418_v44  ;;  %v4087_v57 = vsub.f32 %v3980_v13, %v417_v46  ;;  %v3246_v12 = vld [vmem:[#allocation5 + $0xcc] ss:$16 sps:$4 sm:$0xff]  }
 0x11d   : > { %v385_v8 = vpop.xlane.xlu1 %384  ;;  %v383_v34 = vpop.xlane.xlu0 %382  ;;  %1094 = vmatprep.subr.bf16.mxu1 %v3246_v12 }
 0x11e   : > { %v420_v50 = vmul.f32 0.0078125, %v385_v8  ;;  %v419_v59 = vmul.f32 0.0078125, %v383_v34  ;;  %v468_v4 = vmul.f32 %v4084_v56, %v4084_v56  ;;  %v467_v5 = vmul.f32 %v4087_v57, %v4087_v57  ;;  %934 = vmatpush1.bf16.msra.mxu0 %v3248_v21  ;;  %1095 = vmatpush1.bf16.msra.mxu1 %v3249_v23 }
 0x11f   : > { %935 = vmatprep.subr.bf16.mxu0 %v3250_v7  ;;  %1096 = vmatprep.subr.bf16.mxu1 %v3252_v26  ;;  %v4146_v26 = vld [vmem:[%s5698_s1] ss:$0 sm:$0xff] }
 0x120   : > { %494 = vadd.xlane.f32.xlu0 %v462_v28  ;;  %492 = vadd.xlane.f32.xlu1 %v461_v30  ;;  %v4092_v63 = vsub.f32 %v3983_v14, %v420_v50  ;;  %v4095_v13 = vsub.f32 %v3986_v15, %v419_v59 }
 0x121   : > { %v389_v52 = vpop.xlane.xlu1 %388  ;;  %v387_v53 = vpop.xlane.xlu0 %386 }
 0x122   : > { %v422_v0 = vmul.f32 0.0078125, %v389_v52  ;;  %v421_v20 = vmul.f32 0.0078125, %v387_v53  ;;  %v470_v15 = vmul.f32 %v4092_v63, %v4092_v63  ;;  %v469_v30 = vmul.f32 %v4095_v13, %v4095_v13  ;;  %936 = vmatpush1.bf16.msra.mxu0 %v3254_v33 }
 0x124   : > { %498 = vadd.xlane.f32.xlu0 %v464_v9  ;;  %496 = vadd.xlane.f32.xlu1 %v463_v43  ;;  %v4102_v25 = vsub.f32 %v3991_v16, %v422_v0  ;;  %v4107_v28 = vsub.f32 %v3996_v17, %v421_v20  ;;  %v3255_v16 = vld [vmem:[#allocation5 + $0xe8] ss:$16 sps:$4 sm:$0xff]  }
 0x125   : > { %v393_v24 = vpop.xlane.xlu1 %392  ;;  %v391_v14 = vpop.xlane.xlu0 %390  ;;  %1097 = vmatpush1.bf16.msra.mxu1 %v3255_v16 }
 0x126   : > { %v424_v31 = vmul.f32 0.0078125, %v393_v24  ;;  %v423_v32 = vmul.f32 0.0078125, %v391_v14  ;;  %v472_v8 = vmul.f32 %v4102_v25, %v4102_v25  ;;  %v471_v9 = vmul.f32 %v4107_v28, %v4107_v28 }
 0x128   : > { %502 = vadd.xlane.f32.xlu0 %v466_v10  ;;  %500 = vadd.xlane.f32.xlu1 %v465_v58  ;;  %v4114_v34 = vsub.f32 %v3999_v18, %v424_v31  ;;  %v4117_v17 = vsub.f32 %v4004_v19, %v423_v32 }
 0x12a   : > { %v474_v40 = vmul.f32 %v4114_v34, %v4114_v34  ;;  %v473_v18 = vmul.f32 %v4117_v17, %v4117_v17 }
 0x12c   : > { %506 = vadd.xlane.f32.xlu0 %v468_v4  ;;  %504 = vadd.xlane.f32.xlu1 %v467_v5 }
 0x130   : > { %510 = vadd.xlane.f32.xlu0 %v470_v15  ;;  %508 = vadd.xlane.f32.xlu1 %v469_v30 }
 0x134   : > { %514 = vadd.xlane.f32.xlu0 %v472_v8  ;;  %512 = vadd.xlane.f32.xlu1 %v471_v9 }
 0x138   : > { %518 = vadd.xlane.f32.xlu0 %v474_v40  ;;  %516 = vadd.xlane.f32.xlu1 %v473_v18  ;;  %v4158_v18 = vld [vmem:[%s5699_s2] ss:$0 sm:$0xff] }
 0x195   : > { %v481_v19 = vpop.xlane.xlu0 %480 }
 0x196   : > { %v530_v43 = vmul.f32 0.0078125, %v481_v19 }
 0x198   : > { %v555_v44 = vadd.f32 1e-05, %v530_v43 }
 0x199   : > { %v483_v46 = vpop.xlane.xlu1 %482  ;;  %v395_v47 = vpop.xlane.xlu0 %394 }
 0x19a   : > { %3288 = vrsqrt.f32 %v555_v44  ;;  %v531_v49 = vmul.f32 0.0078125, %v483_v46  ;;  %v425_v10 = vmul.f32 0.0078125, %v395_v47 }
 0x19c   : > { %v556_v50 = vadd.f32 1e-05, %v531_v49  ;;  %v4128_v52 = vsub.f32 %v4017_v38, %v425_v10 }
 0x19d   : > { %v397_v53 = vpop.xlane.xlu1 %396  ;;  %v485_v55 = vpop.xlane.xlu0 %484 }
 0x19e   : > { %3290 = vrsqrt.f32 %v556_v50  ;;  %v426_v11 = vmul.f32 0.0078125, %v397_v53  ;;  %v532_v58 = vmul.f32 0.0078125, %v485_v55  ;;  %v475_v59 = vmul.f32 %v4128_v52, %v4128_v52 }
 0x1a0   : > { %v4133_v61 = vsub.f32 %v4028_v45, %v426_v11  ;;  %v557_v62 = vadd.f32 1e-05, %v532_v58  ;;  %520 = vadd.xlane.f32.xlu1 %v475_v59 }
 0x1a1   : > { %v487_v0 = vpop.xlane.xlu1 %486  ;;  %v399_v1 = vpop.xlane.xlu0 %398 }
 0x1a2   : > { %3292 = vrsqrt.f32 %v557_v62  ;;  %v533_v12 = vmul.f32 0.0078125, %v487_v0  ;;  %v427_v4 = vmul.f32 0.0078125, %v399_v1  ;;  %v476_v38 = vmul.f32 %v4133_v61, %v4133_v61 }
 0x1a4   : > { %v3289_v5 = vpop.eup %3288  ;;  %v558_v20 = vadd.f32 1e-05, %v533_v12  ;;  %v4138_v21 = vsub.f32 %v4037_v51, %v427_v4  ;;  %522 = vadd.xlane.f32.xlu0 %v476_v38 }
 0x1a5   : > { %v401_v23 = vpop.xlane.xlu1 %400  ;;  %v489_v24 = vpop.xlane.xlu0 %488  ;;  %v605_v45 = vmul.f32 %v3289_v5, %v4008_v29 }
 0x1a6   : > { %3294 = vrsqrt.f32 %v558_v20  ;;  %v428_v14 = vmul.f32 0.0078125, %v401_v23  ;;  %v534_v15 = vmul.f32 0.0078125, %v489_v24  ;;  %v477_v7 = vmul.f32 %v4138_v21, %v4138_v21 }
 0x1a7   : > { %v637_v16 = vmul.f32 %v4146_v26, %v605_v45 }
 0x1a8   : > { %v3291_v30 = vpop.eup %3290  ;;  %v4149_v51 = vsub.f32 %v4046_v60, %v428_v14  ;;  %v559_v31 = vadd.f32 1e-05, %v534_v15  ;;  %524 = vadd.xlane.f32.xlu1 %v477_v7 }
 0x1a9   : > { %v491_v32 = vpop.xlane.xlu1 %490  ;;  %v403_v33 = vpop.xlane.xlu0 %402  ;;  %v606_v29 = vmul.f32 %v3291_v30, %v4012_v35  ;;  %v669_v47 = vadd.f32 %v4158_v18, %v637_v16 }
 0x1aa   : > { %3296 = vrsqrt.f32 %v559_v31  ;;  %v535_v8 = vmul.f32 0.0078125, %v491_v32  ;;  %v429_v9 = vmul.f32 0.0078125, %v403_v33  ;;  %v478_v40 = vmul.f32 %v4149_v51, %v4149_v51 }
 0x1ab   : > { %v638_v60 = vmul.f32 %v4146_v26, %v606_v29 }
 0x1ac   : > { %v3293_v19 = vpop.eup %3292  ;;  %v560_v43 = vadd.f32 1e-05, %v535_v8  ;;  %v4162_v44 = vsub.f32 %v4058_v22, %v429_v9  ;;  %526 = vadd.xlane.f32.xlu0 %v478_v40 }
 0x1ad   : > { %v493_v35 = vpop.xlane.xlu1 %492  ;;  %v495_v46 = vpop.xlane.xlu0 %494  ;;  %v670_v49 = vadd.f32 %v4158_v18, %v638_v60  ;;  %v607_v10 = vmul.f32 %v3293_v19, %v4014_v36 }
 0x1ae   : > { %3298 = vrsqrt.f32 %v560_v43  ;;  %v536_v50 = vmul.f32 0.0078125, %v493_v35  ;;  %v537_v53 = vmul.f32 0.0078125, %v495_v46  ;;  %v479_v55 = vmul.f32 %v4162_v44, %v4162_v44 }
 0x1af   : > { %v694_v11 = vpack.c.bf16 %v670_v49, %v669_v47  ;;  %v639_v12 = vmul.f32 %v4146_v26, %v607_v10 }
 0x1b0   : > { %v3295_v58 = vpop.eup %3294  ;;  %v561_v59 = vadd.f32 1e-05, %v536_v50  ;;  %v562_v22 = vadd.f32 1e-05, %v537_v53  ;;  %528 = vadd.xlane.f32.xlu1 %v479_v55 }
 0x1b1   : > { %v497_v62 = vpop.xlane.xlu1 %496  ;;  %954 = vmatmul.mubr.bf16.vlgmr.msra.gmra.mrb[0].mxu0 %v694_v11  ;;  %1115 = vmatmul.mubr.bf16.vlgmr.msra.gmra.mrb[0].mxu1 %v694_v11  ;;  %v499_v0 = vpop.xlane.xlu0 %498  ;;  %v608_v1 = vmul.f32 %v3295_v58, %v4023_v42  ;;  %v671_v14 = vadd.f32 %v4158_v18, %v639_v12 }
 0x1b2   : > { %3300 = vrsqrt.f32 %v561_v59  ;;  %v538_v36 = vmul.f32 0.0078125, %v497_v62  ;;  %v539_v4 = vmul.f32 0.0078125, %v499_v0  ;;  %963 = vmatprep.mubr.bf16.mxu0 %v3705_v39  ;;  %1124 = vmatprep.mubr.bf16.mxu1 %v3705_v39 }
 0x1b3   : > { %3302 = vrsqrt.f32 %v562_v22  ;;  %v640_v38 = vmul.f32 %v4146_v26, %v608_v1 }
 0x1b4   : > { %v3297_v5 = vpop.eup %3296  ;;  %v563_v20 = vadd.f32 1e-05, %v538_v36  ;;  %v564_v23 = vadd.f32 1e-05, %v539_v4 }
 0x1b5   : > { %v501_v24 = vpop.xlane.xlu1 %500  ;;  %v503_v45 = vpop.xlane.xlu0 %502  ;;  %v672_v42 = vadd.f32 %v4158_v18, %v640_v38  ;;  %v609_v15 = vmul.f32 %v3297_v5, %v4032_v48 }
 0x1b6   : > { %3304 = vrsqrt.f32 %v563_v20  ;;  %v540_v7 = vmul.f32 0.0078125, %v501_v24  ;;  %v541_v30 = vmul.f32 0.0078125, %v503_v45 }
 0x1b7   : > { %3306 = vrsqrt.f32 %v564_v23  ;;  %v695_v31 = vpack.c.bf16 %v672_v42, %v671_v14  ;;  %v641_v33 = vmul.f32 %v4146_v26, %v609_v15 }
 0x1b8   : > { %v3299_v32 = vpop.eup %3298  ;;  %v565_v29 = vadd.f32 1e-05, %v540_v7  ;;  %v566_v8 = vadd.f32 1e-05, %v541_v30 }
 0x1b9   : > { %964 = vmatmul.mubr.bf16.gmra.mrb[4].mxu0 %v695_v31  ;;  %1125 = vmatmul.mubr.bf16.gmra.mrb[4].mxu1 %v695_v31  ;;  %v610_v16 = vmul.f32 %v3299_v32, %v4041_v54  ;;  %v505_v9 = vpop.xlane.xlu1 %504  ;;  %v507_v48 = vpop.xlane.xlu0 %506  ;;  %v673_v19 = vadd.f32 %v4158_v18, %v641_v33 }
 0x1ba   : > { %973 = vmatprep.mubr.bf16.mxu0 %v3705_v39  ;;  %1134 = vmatprep.mubr.bf16.mxu1 %v3705_v39  ;;  %3308 = vrsqrt.f32 %v565_v29  ;;  %v542_v35 = vmul.f32 0.0078125, %v505_v9  ;;  %v543_v54 = vmul.f32 0.0078125, %v507_v48 }
 0x1bb   : > { %v642_v40 = vmul.f32 %v4146_v26, %v610_v16  ;;  %3310 = vrsqrt.f32 %v566_v8 }
 0x1bc   : > { %v3301_v60 = vpop.eup %3300  ;;  %v567_v58 = vadd.f32 1e-05, %v542_v35  ;;  %v568_v59 = vadd.f32 1e-05, %v543_v54 }
 0x1bd   : > { %v3303_v43 = vpop.eup %3302  ;;  %v674_v46 = vadd.f32 %v4158_v18, %v642_v40  ;;  %v611_v47 = vmul.f32 %v3301_v60, %v4053_v3  ;;  %v509_v22 = vpop.xlane.xlu1 %508 }
 0x1be   : > { %v612_v49 = vmul.f32 %v3303_v43, %v4050_v2  ;;  %v511_v3 = vpop.xlane.xlu0 %510  ;;  %3312 = vrsqrt.f32 %v567_v58  ;;  %v544_v12 = vmul.f32 0.0078125, %v509_v22 }
 0x1bf   : > { %v696_v10 = vpack.c.bf16 %v674_v46, %v673_v19  ;;  %v643_v50 = vmul.f32 %v4146_v26, %v611_v47  ;;  %3314 = vrsqrt.f32 %v568_v59  ;;  %v545_v36 = vmul.f32 0.0078125, %v511_v3 }
 0x1c0   : > { %v3305_v53 = vpop.eup %3304  ;;  %v644_v55 = vmul.f32 %v4146_v26, %v612_v49  ;;  %v569_v24 = vadd.f32 1e-05, %v544_v12 }
 0x1c1   : > { %v3307_v11 = vpop.eup %3306  ;;  %974 = vmatmul.mubr.bf16.gmra.mrb[8].mxu0 %v696_v10  ;;  %1135 = vmatmul.mubr.bf16.gmra.mrb[8].mxu1 %v696_v10  ;;  %v675_v62 = vadd.f32 %v4158_v18, %v643_v50  ;;  %v613_v0 = vmul.f32 %v3305_v53, %v4065_v27  ;;  %v570_v45 = vadd.f32 1e-05, %v545_v36  ;;  %v513_v14 = vpop.xlane.xlu1 %512 }
 0x1c2   : > { %983 = vmatprep.mubr.bf16.mxu0 %v3705_v39  ;;  %1144 = vmatprep.mubr.bf16.mxu1 %v3705_v39  ;;  %v676_v2 = vadd.f32 %v4158_v18, %v644_v55  ;;  %v614_v1 = vmul.f32 %v3307_v11, %v4061_v6  ;;  %v515_v6 = vpop.xlane.xlu0 %514  ;;  %3316 = vrsqrt.f32 %v569_v24  ;;  %v546_v30 = vmul.f32 0.0078125, %v513_v14 }
 0x1c3   : > { %v645_v5 = vmul.f32 %v4146_v26, %v613_v0  ;;  %3318 = vrsqrt.f32 %v570_v45  ;;  %v547_v31 = vmul.f32 0.0078125, %v515_v6 }
 0x1c4   : > { %v3309_v4 = vpop.eup %3308  ;;  %v697_v38 = vpack.c.bf16 %v676_v2, %v675_v62  ;;  %v646_v20 = vmul.f32 %v4146_v26, %v614_v1  ;;  %v571_v9 = vadd.f32 1e-05, %v546_v30  ;;  %v3260_v30 = vld [vmem:[#allocation7 + $0x48] sm:$0xff]  }
 0x1c5   : > { %v3311_v23 = vpop.eup %3310  ;;  %v677_v27 = vadd.f32 %v4158_v18, %v645_v5  ;;  %v615_v15 = vmul.f32 %v3309_v4, %v4077_v41  ;;  %v572_v48 = vadd.f32 1e-05, %v547_v31  ;;  %v517_v40 = vpop.xlane.xlu1 %516  ;;  %v3261_v31 = vld [vmem:[#allocation7 + $0xc8] sm:$0xff]  }
 0x1c6   : > { %v678_v42 = vadd.f32 %v4158_v18, %v646_v20  ;;  %v616_v7 = vmul.f32 %v3311_v23, %v4072_v37  ;;  %v519_v37 = vpop.xlane.xlu0 %518  ;;  %3320 = vrsqrt.f32 %v571_v9  ;;  %v548_v35 = vmul.f32 0.0078125, %v517_v40  ;;  %v3267_v9 = vld [vmem:[#allocation7 + $0x90] sm:$0xff]   ;;  %v3269_v40 = vld [vmem:[#allocation7 + $0xd8] sm:$0xff]  }
 0x1c7   : > { %v647_v29 = vmul.f32 %v4146_v26, %v615_v15  ;;  %3322 = vrsqrt.f32 %v572_v48  ;;  %v549_v46 = vmul.f32 0.0078125, %v519_v37  ;;  %v3257_v15 = vld [vmem:[#allocation7] sm:$0xff]   ;;  %v3268_v48 = vld [vmem:[#allocation7 + $0x58] sm:$0xff]  }
 0x1c8   : > { %v3313_v32 = vpop.eup %3312  ;;  %v698_v33 = vpack.c.bf16 %v678_v42, %v677_v27  ;;  %v648_v16 = vmul.f32 %v4146_v26, %v616_v7  ;;  %v573_v53 = vadd.f32 1e-05, %v548_v35  ;;  %v3259_v7 = vld [vmem:[#allocation7 + $0x80] sm:$0xff]   ;;  %v3270_v37 = vld [vmem:[#allocation7 + $0x18] sm:$0xff]  }
 0x1c9   : > { %984 = vmatmul.mubr.bf16.gmra.mrb[12].mxu0 %v697_v38  ;;  %1145 = vmatmul.mubr.bf16.gmra.mrb[12].mxu1 %v697_v38  ;;  %v3315_v8 = vpop.eup %3314  ;;  %v679_v41 = vadd.f32 %v4158_v18, %v647_v29  ;;  %v617_v19 = vmul.f32 %v3313_v32, %v4087_v57  ;;  %v574_v55 = vadd.f32 1e-05, %v549_v46  ;;  %v3262_v32 = vld [vmem:[#allocation7 + $0x8] sm:$0xff]   ;;  %v3264_v29 = vld [vmem:[#allocation7 + $0x50] sm:$0xff]   ;;  %v3275_v35 = vld [vmem:[#allocation7 + $0xa0] sm:$0xff]  }
 0x1ca   : > { %993 = vmatprep.mubr.bf16.mxu0 %v3705_v39  ;;  %1154 = vmatprep.mubr.bf16.mxu1 %v3705_v39  ;;  %v680_v60 = vadd.f32 %v4158_v18, %v648_v16  ;;  %v618_v43 = vmul.f32 %v3315_v8, %v4084_v56  ;;  %3324 = vrsqrt.f32 %v573_v53  ;;  %v3265_v16 = vld [vmem:[#allocation7 + $0xd0] sm:$0xff]   ;;  %v3276_v46 = vld [vmem:[#allocation7 + $0x68] sm:$0xff]  }
 0x1cb   : > { %v649_v49 = vmul.f32 %v4146_v26, %v617_v19  ;;  %3326 = vrsqrt.f32 %v574_v55  ;;  %v3266_v8 = vld [vmem:[#allocation7 + $0x10] sm:$0xff]   ;;  %v3273_v19 = vld [vmem:[#allocation7 + $0xe0] sm:$0xff]  }
 0x1cc   : > { %v3317_v47 = vpop.eup %3316  ;;  %v699_v54 = vpack.c.bf16 %v680_v60, %v679_v41  ;;  %v650_v10 = vmul.f32 %v4146_v26, %v618_v43  ;;  %v3271_v41 = vld [vmem:[#allocation7 + $0x98] sm:$0xff]   ;;  %v3272_v60 = vld [vmem:[#allocation7 + $0x60] sm:$0xff]   ;;  %v3282_v53 = vld [vmem:[#allocation7 + $0x30] sm:$0xff]  }
 0x1cd   : > { %v3319_v50 = vpop.eup %3318  ;;  %v681_v56 = vadd.f32 %v4158_v18, %v649_v49  ;;  %v619_v11 = vmul.f32 %v3317_v47, %v4095_v13  ;;  %v3274_v43 = vld [vmem:[#allocation7 + $0x20] sm:$0xff]   ;;  %v3277_v47 = vld [vmem:[#allocation7 + $0xe8] sm:$0xff]   ;;  %v3283_v55 = vld [vmem:[#allocation7 + $0xb0] sm:$0xff]  }
 0x1ce   : > { %v682_v57 = vadd.f32 %v4158_v18, %v650_v10  ;;  %v620_v58 = vmul.f32 %v3319_v50, %v4092_v63  ;;  %v3279_v49 = vld [vmem:[#allocation7 + $0xa8] sm:$0xff]   ;;  %v3280_v10 = vld [vmem:[#allocation7 + $0x70] sm:$0xff]  }
 0x1cf   : > { %v651_v3 = vmul.f32 %v4146_v26, %v619_v11  ;;  %v3281_v50 = vld [vmem:[#allocation7 + $0xf0] sm:$0xff]   ;;  %v3286_v11 = vld [vmem:[#allocation7 + $0x38] sm:$0xff]  }
 0x1d0   : > { %v3321_v59 = vpop.eup %3320  ;;  %v700_v22 = vpack.c.bf16 %v682_v57, %v681_v56  ;;  %v652_v62 = vmul.f32 %v4146_v26, %v620_v58  ;;  %v3284_v56 = vld [vmem:[#allocation7 + $0x78] sm:$0xff]  }
 0x1d1   : > { %994 = vmatmul.mubr.bf16.gmra.mrb[16].mxu0 %v698_v33  ;;  %1155 = vmatmul.mubr.bf16.gmra.mrb[16].mxu1 %v698_v33  ;;  %v3323_v2 = vpop.eup %3322  ;;  %v683_v0 = vadd.f32 %v4158_v18, %v651_v3  ;;  %v621_v63 = vmul.f32 %v3321_v59, %v4107_v28  ;;  %v3263_v33 = vld [vmem:[#allocation7 + $0x88] sm:$0xff]   ;;  %v3285_v57 = vld [vmem:[#allocation7 + $0xf8] sm:$0xff]  }
 0x1d2   : > { %1003 = vmatprep.mubr.bf16.mxu0 %v3705_v39  ;;  %1164 = vmatprep.mubr.bf16.mxu1 %v3705_v39  ;;  %v684_v13 = vadd.f32 %v4158_v18, %v652_v62  ;;  %v622_v1 = vmul.f32 %v3323_v2, %v4102_v25  ;;  %v3287_v58 = vld [vmem:[#allocation7 + $0xb8] sm:$0xff]  }
 0x1d3   : > { %v653_v4 = vmul.f32 %v4146_v26, %v621_v63 }
 0x1d4   : > { %v3325_v12 = vpop.eup %3324  ;;  %v701_v36 = vpack.c.bf16 %v684_v13, %v683_v0  ;;  %v654_v38 = vmul.f32 %v4146_v26, %v622_v1 }
 0x1d5   : > { %v3327_v5 = vpop.eup %3326  ;;  %v685_v20 = vadd.f32 %v4158_v18, %v653_v4  ;;  %v623_v28 = vmul.f32 %v3325_v12, %v4117_v17  ;;  %v3258_v17 = vld [vmem:[#allocation7 + $0xc0] sm:$0xff]  }
 0x1d6   : > { %v686_v23 = vadd.f32 %v4158_v18, %v654_v38  ;;  %v624_v25 = vmul.f32 %v3327_v5, %v4114_v34  ;;  %v3256_v34 = vld [vmem:[#allocation7 + $0x40] sm:$0xff]   ;;  %3036 = vmatprep.subr.bf16.mxu1 %v3258_v17 }
 0x1d7   : > { %v655_v45 = vmul.f32 %v4146_v26, %v623_v28  ;;  %2942 = vmatprep.subr.bf16.mxu0 %v3256_v34  ;;  %3037 = vmatpush3.bf16.msra.mxu1 %v3259_v7 }
 0x1d8   : > { %v702_v24 = vpack.c.bf16 %v686_v23, %v685_v20  ;;  %v656_v14 = vmul.f32 %v4146_v26, %v624_v25  ;;  %2943 = vmatpush3.bf16.msra.mxu0 %v3257_v15  ;;  %3038 = vmatprep.subr.bf16.mxu1 %v3261_v31 }
 0x1d9   : > { %1004 = vmatmul.mubr.bf16.gmra.mrb[20].mxu0 %v699_v54  ;;  %1165 = vmatmul.mubr.bf16.gmra.mrb[20].mxu1 %v699_v54  ;;  %v687_v6 = vadd.f32 %v4158_v18, %v655_v45  ;;  %v3278_v54 = vld [vmem:[#allocation7 + $0x28] sm:$0xff]  }
 0x1da   : > { %1013 = vmatprep.mubr.bf16.mxu0 %v3705_v39  ;;  %1174 = vmatprep.mubr.bf16.mxu1 %v3705_v39  ;;  %v688_v27 = vadd.f32 %v4158_v18, %v656_v14 }
 0x1db   : > { %2944 = vmatprep.subr.bf16.mxu0 %v3260_v30  ;;  %3039 = vmatpush3.bf16.msra.mxu1 %v3263_v33 }
 0x1dc   : > { %v703_v42 = vpack.c.bf16 %v688_v27, %v687_v6  ;;  %2945 = vmatpush3.bf16.msra.mxu0 %v3262_v32  ;;  %3040 = vmatprep.subr.bf16.mxu1 %v3265_v16 }
 0x1dd   : > { %2946 = vmatprep.subr.bf16.mxu0 %v3264_v29 }
 0x1df   : > { %3041 = vmatpush3.bf16.msra.mxu1 %v3267_v9 }
 0x1e0   : > { %2947 = vmatpush3.bf16.msra.mxu0 %v3266_v8  ;;  %3042 = vmatprep.subr.bf16.mxu1 %v3269_v40  ;;  %v741_v8 = vlaneseq }
 0x1e1   : > { %1014 = vmatmul.mubr.bf16.gmra.mrb[24].mxu0 %v700_v22  ;;  %1175 = vmatmul.mubr.bf16.gmra.mrb[24].mxu1 %v700_v22 }
 0x1e2   : > { %1023 = vmatprep.mubr.bf16.mxu0 %v3705_v39  ;;  %1184 = vmatprep.mubr.bf16.mxu1 %v3705_v39  ;;  %v742_v9 = vshrl.u32 %v741_v8, 7 }
 0x1e3   : > { %2948 = vmatprep.subr.bf16.mxu0 %v3268_v48  ;;  %3043 = vmatpush3.bf16.msra.mxu1 %v3271_v41 }
 0x1e4   : > { %2949 = vmatpush3.bf16.msra.mxu0 %v3270_v37  ;;  %3044 = vmatprep.subr.bf16.mxu1 %v3273_v19  ;;  %v743_v48 = vsub.s32 0, %v742_v9  ;;  %v751_v40 = vsub.s32 2, %v742_v9  ;;  %v755_v37 = vsub.s32 3, %v742_v9 }
 0x1e5   : > { %2950 = vmatprep.subr.bf16.mxu0 %v3272_v60 }
 0x1e7   : > { %3045 = vmatpush3.bf16.msra.mxu1 %v3275_v35 }
 0x1e8   : > { %2951 = vmatpush3.bf16.msra.mxu0 %v3274_v43  ;;  %3046 = vmatprep.subr.bf16.mxu1 %v3277_v47 }
 0x1e9   : > { %1024 = vmatmul.mubr.bf16.gmra.mrb[28].mxu0 %v701_v36  ;;  %1185 = vmatmul.mubr.bf16.gmra.mrb[28].mxu1 %v701_v36 }
 0x1ea   : > { %1033 = vmatprep.mubr.bf16.mxu0 %v3705_v39  ;;  %1194 = vmatprep.mubr.bf16.mxu1 %v3705_v39 }
 0x1eb   : > { %2952 = vmatprep.subr.bf16.mxu0 %v3276_v46  ;;  %3047 = vmatpush3.bf16.msra.mxu1 %v3279_v49 }
 0x1ec   : > { %2953 = vmatpush3.bf16.msra.mxu0 %v3278_v54  ;;  %3048 = vmatprep.subr.bf16.mxu1 %v3281_v50 }
 0x1ed   : > { %2954 = vmatprep.subr.bf16.mxu0 %v3280_v10 }
 0x1ef   : > { %3049 = vmatpush3.bf16.msra.mxu1 %v3283_v55 }
 0x1f0   : > { %2955 = vmatpush3.bf16.msra.mxu0 %v3282_v53  ;;  %3050 = vmatprep.subr.bf16.mxu1 %v3285_v57 }
 0x1f1   : > { %1034 = vmatmul.mubr.bf16.gmra.mrb[32].mxu0 %v702_v24  ;;  %1195 = vmatmul.mubr.bf16.gmra.mrb[32].mxu1 %v702_v24 }
 0x1f2   : > { %1043 = vmatprep.mubr.bf16.mxu0 %v3705_v39  ;;  %1204 = vmatprep.mubr.bf16.mxu1 %v3705_v39 }
 0x1f3   : > { %2956 = vmatprep.subr.bf16.mxu0 %v3284_v56  ;;  %3051 = vmatpush3.bf16.msra.mxu1 %v3287_v58 }
 0x1f4   : > { %2957 = vmatpush3.bf16.msra.mxu0 %v3286_v11 }
 0x1f9   : > { %1044 = vmatmul.mubr.bf16.gmra.mrb[36].mxu0 %v703_v42  ;;  %1205 = vmatmul.mubr.bf16.gmra.mrb[36].mxu1 %v703_v42 }
 0x1fa   : > { %1053 = vmatprep.mubr.bf16.mxu0 %v3705_v39  ;;  %1214 = vmatprep.mubr.bf16.mxu1 %v3705_v39 }
 0x22d   : > { %v521_v59 = vpop.xlane.xlu1 %520 }
 0x22e   : > { %v550_v22 = vmul.f32 0.0078125, %v521_v59 }
 0x230   : > { %v575_v3 = vadd.f32 1e-05, %v550_v22 }
 0x231   : > { %v523_v62 = vpop.xlane.xlu0 %522 }
 0x232   : > { %3328 = vrsqrt.f32 %v575_v3  ;;  %v551_v2 = vmul.f32 0.0078125, %v523_v62 }
 0x234   : > { %v576_v0 = vadd.f32 1e-05, %v551_v2 }
 0x235   : > { %v525_v13 = vpop.xlane.xlu1 %524 }
 0x236   : > { %3330 = vrsqrt.f32 %v576_v0  ;;  %v552_v63 = vmul.f32 0.0078125, %v525_v13 }
 0x238   : > { %v577_v1 = vadd.f32 1e-05, %v552_v63 }
 0x239   : > { %v527_v12 = vpop.xlane.xlu0 %526 }
 0x23a   : > { %3332 = vrsqrt.f32 %v577_v1  ;;  %v553_v36 = vmul.f32 0.0078125, %v527_v12 }
 0x23c   : > { %v3329_v4 = vpop.eup %3328  ;;  %v578_v38 = vadd.f32 1e-05, %v553_v36 }
 0x23d   : > { %v529_v5 = vpop.xlane.xlu1 %528  ;;  %v625_v20 = vmul.f32 %v3329_v4, %v4128_v52 }
 0x23e   : > { %3334 = vrsqrt.f32 %v578_v38  ;;  %v554_v23 = vmul.f32 0.0078125, %v529_v5 }
 0x23f   : > { %v657_v45 = vmul.f32 %v4146_v26, %v625_v20 }
 0x240   : > { %v3331_v28 = vpop.eup %3330  ;;  %v579_v25 = vadd.f32 1e-05, %v554_v23 }
 0x241   : > { %v626_v24 = vmul.f32 %v3331_v28, %v4133_v61  ;;  %v689_v27 = vadd.f32 %v4158_v18, %v657_v45 }
 0x242   : > { %3336 = vrsqrt.f32 %v579_v25 }
 0x243   : > { %v658_v14 = vmul.f32 %v4146_v26, %v626_v24 }
 0x244   : > { %v3333_v6 = vpop.eup %3332 }
 0x245   : > { %v690_v42 = vadd.f32 %v4158_v18, %v658_v14  ;;  %v627_v34 = vmul.f32 %v3333_v6, %v4138_v21 }
 0x247   : > { %v704_v17 = vpack.c.bf16 %v690_v42, %v689_v27  ;;  %v659_v61 = vmul.f32 %v4146_v26, %v627_v34 }
 0x248   : > { %v3335_v52 = vpop.eup %3334 }
 0x249   : > { %1054 = vmatmul.mubr.bf16.gmra.mrb[40].mxu0 %v704_v17  ;;  %1215 = vmatmul.mubr.bf16.gmra.mrb[40].mxu1 %v704_v17  ;;  %v628_v15 = vmul.f32 %v3335_v52, %v4149_v51  ;;  %v691_v31 = vadd.f32 %v4158_v18, %v659_v61 }
 0x24a   : > { %1063 = vmatprep.mubr.bf16.mxu0 %v3705_v39  ;;  %1224 = vmatprep.mubr.bf16.mxu1 %v3705_v39 }
 0x24b   : > { %v660_v7 = vmul.f32 %v4146_v26, %v628_v15 }
 0x24c   : > { %v3337_v30 = vpop.eup %3336 }
 0x24d   : > { %v692_v32 = vadd.f32 %v4158_v18, %v660_v7  ;;  %v629_v21 = vmul.f32 %v3337_v30, %v4162_v44  ;;  %v739_v44 = vld [vmem:[%s5701_s4] sm:$0xf] }
 0x24e   : > { %v4264_v41 = vrot.slane %v739_v44, %v743_v48  ;;  %v4266_v60 = vrot.slane %v739_v44, %v751_v40 }
 0x24f   : > { %v705_v33 = vpack.c.bf16 %v692_v32, %v691_v31  ;;  %v661_v29 = vmul.f32 %v4146_v26, %v629_v21  ;;  %v747_v26 = vsub.s32 1, %v742_v9 }
 0x250   : > { %5814 = vst [vmem:[#allocation12_spill] sm:$0xff] %v4266_v60 }
 0x251   : > { %1064 = vmatmul.mubr.bf16.gmra.mrb[44].mxu0 %v705_v33  ;;  %1225 = vmatmul.mubr.bf16.gmra.mrb[44].mxu1 %v705_v33  ;;  %v693_v51 = vadd.f32 %v4158_v18, %v661_v29  ;;  %v4270_v18 = vrot.slane %v739_v44, %v755_v37 }
 0x252   : > { %1073 = vmatprep.mubr.bf16.mxu0 %v3705_v39  ;;  %1234 = vmatprep.mubr.bf16.mxu1 %v3705_v39  ;;  %v4268_v39 = vrot.slane %v739_v44, %v747_v26 }
 0x253   : > { %v706_v16 = vpack.c.bf16 %v693_v51, %v693_v51  ;;  %5816 = vst [vmem:[#allocation14_spill] sm:$0xff] %v4270_v18 }
 0x254   : > { %5815 = vst [vmem:[#allocation13_spill] sm:$0xff] %v4268_v39 }
 0x259   : > { %1074 = vmatmul.mubr.bf16.gmra.mrb[48].mxu0 %v706_v16  ;;  %1235 = vmatmul.mubr.bf16.gmra.mrb[48].mxu1 %v706_v16 }
 0x284   : > { %v955_v19 = vpop.f32.mrb[0].mxu0  ;;  %v1116_v43 = vpop.f32.mrb[0].mxu1 }
 0x285   : > { %v956_v35 = vadd.f32 %v955_v19, %v4264_v41  ;;  %v1117_v46 = vadd.f32 %v1116_v43, %v4266_v60  ;;  %v957_v47 = vpop.f32.mrb[1].mxu0  ;;  %v1118_v54 = vpop.f32.mrb[1].mxu1 }
 0x286   : > { %v4275_v49 = vadd.f32 %v957_v47, %v4268_v39  ;;  %v4278_v10 = vadd.f32 %v1118_v54, %v4270_v18  ;;  %v959_v50 = vpop.f32.mrb[2].mxu0  ;;  %v1120_v53 = vpop.f32.mrb[2].mxu1 }
 0x287   : > { %v1343_v55 = vmul.f32 0.044715, %v956_v35  ;;  %v1345_v56 = vmul.f32 0.044715, %v1117_v46  ;;  %v960_v58 = vadd.f32 %v959_v50, %v4264_v41  ;;  %v1121_v59 = vadd.f32 %v1120_v53, %v4266_v60  ;;  %v961_v22 = vpop.f32.mrb[3].mxu0  ;;  %v1122_v3 = vpop.f32.mrb[3].mxu1 }
 0x288   : > { %v1344_v57 = vmul.f32 0.044715, %v4275_v49  ;;  %v1346_v11 = vmul.f32 0.044715, %v4278_v10  ;;  %v4285_v0 = vadd.f32 %v961_v22, %v4268_v39  ;;  %v4288_v13 = vadd.f32 %v1122_v3, %v4270_v18 }
 0x289   : > { %v1443_v62 = vmul.f32 %v1343_v55, %v956_v35  ;;  %v1445_v2 = vmul.f32 %v1345_v56, %v1117_v46  ;;  %v1347_v63 = vmul.f32 0.044715, %v960_v58  ;;  %v1349_v36 = vmul.f32 0.044715, %v1121_v59 }
 0x28a   : > { %v1444_v4 = vmul.f32 %v1344_v57, %v4275_v49  ;;  %v1446_v38 = vmul.f32 %v1346_v11, %v4278_v10  ;;  %v1348_v20 = vmul.f32 0.044715, %v4285_v0  ;;  %v1350_v14 = vmul.f32 0.044715, %v4288_v13 }
 0x28b   : > { %v1543_v1 = vmul.f32 %v1443_v62, %v956_v35  ;;  %v1545_v12 = vmul.f32 %v1445_v2, %v1117_v46  ;;  %v1447_v5 = vmul.f32 %v1347_v63, %v960_v58  ;;  %v1449_v45 = vmul.f32 %v1349_v36, %v1121_v59 }
 0x28c   : > { %v965_v23 = vpop.f32.mrb[4].mxu0  ;;  %v1126_v28 = vpop.f32.mrb[4].mxu1  ;;  %v1448_v34 = vmul.f32 %v1348_v20, %v4285_v0  ;;  %v4301_v7 = vmul.f32 0.5, %v956_v35  ;;  %v4303_v31 = vmul.f32 0.5, %v1117_v46  ;;  %v4305_v29 = vmul.f32 0.5, %v960_v58 }
 0x28d   : > { %v1643_v25 = vadd.f32 %v1543_v1, %v956_v35  ;;  %v1645_v24 = vadd.f32 %v1545_v12, %v1117_v46  ;;  %v967_v6 = vpop.f32.mrb[5].mxu0  ;;  %v1128_v27 = vpop.f32.mrb[5].mxu1  ;;  %v1547_v42 = vmul.f32 %v1447_v5, %v960_v58  ;;  %v4296_v17 = vadd.f32 %v965_v23, %v4264_v41 }
 0x28e   : > { %v4299_v52 = vadd.f32 %v1126_v28, %v4266_v60  ;;  %v969_v15 = vpop.f32.mrb[6].mxu0  ;;  %v1130_v61 = vpop.f32.mrb[6].mxu1  ;;  %v1549_v32 = vmul.f32 %v1449_v45, %v1121_v59  ;;  %v4307_v16 = vmul.f32 0.5, %v1121_v59  ;;  %v4311_v9 = vmul.f32 %v1444_v4, %v4275_v49 }
 0x28f   : > { %5817 = vst [vmem:[#allocation15_spill] sm:$0xff] %v4296_v17  ;;  %v1743_v30 = vmul.f32 0.7978846, %v1643_v25  ;;  %v971_v21 = vpop.f32.mrb[7].mxu0  ;;  %v1132_v33 = vpop.f32.mrb[7].mxu1  ;;  %v1647_v51 = vadd.f32 %v1547_v42, %v960_v58  ;;  %v4315_v44 = vadd.f32 %v967_v6, %v4268_v39  ;;  %v4318_v37 = vmul.f32 %v1446_v38, %v4278_v10 }
 0x290   : > { %5818 = vst [vmem:[#allocation16_spill] sm:$0xff] %v4299_v52  ;;  %v1351_v8 = vmul.f32 0.044715, %v4296_v17  ;;  %v1649_v48 = vadd.f32 %v1549_v32, %v1121_v59  ;;  %v1353_v40 = vmul.f32 0.044715, %v4299_v52  ;;  %v4321_v19 = vmul.f32 %v1448_v34, %v4285_v0 }
 0x291   : > { %v1745_v26 = vmul.f32 0.7978846, %v1645_v24  ;;  %v1450_v43 = vmul.f32 %v1350_v14, %v4288_v13  ;;  %3338 = vtanh.f32 %v1743_v30  ;;  %v1352_v35 = vmul.f32 0.044715, %v4315_v44 }
 0x292   : > { %v4326_v46 = vadd.f32 %v1128_v27, %v4270_v18  ;;  %v4329_v47 = vadd.f32 %v969_v15, %v4264_v41  ;;  %v1747_v54 = vmul.f32 0.7978846, %v1647_v51  ;;  %v1749_v50 = vmul.f32 0.7978846, %v1649_v48 }
 0x293   : > { %v1451_v53 = vmul.f32 %v1351_v8, %v4296_v17  ;;  %v4333_v55 = vadd.f32 %v1130_v61, %v4266_v60  ;;  %v1453_v11 = vmul.f32 %v1353_v40, %v4299_v52  ;;  %v1452_v58 = vmul.f32 %v1352_v35, %v4315_v44 }
 0x294   : > { %5819 = vst [vmem:[#allocation17_spill] sm:$0xff] %v4329_v47  ;;  %v975_v56 = vpop.f32.mrb[8].mxu0  ;;  %v1136_v57 = vpop.f32.mrb[8].mxu1  ;;  %v1354_v59 = vmul.f32 0.044715, %v4326_v46  ;;  %v4341_v63 = vadd.f32 %v971_v21, %v4268_v39  ;;  %v4344_v1 = vadd.f32 %v1132_v33, %v4270_v18  ;;  %3340 = vtanh.f32 %v1745_v26 }
 0x295   : > { %5820 = vst [vmem:[#allocation18_spill] sm:$0xff] %v4333_v55  ;;  %v1355_v22 = vmul.f32 0.044715, %v4329_v47  ;;  %v977_v3 = vpop.f32.mrb[9].mxu0  ;;  %v1138_v62 = vpop.f32.mrb[9].mxu1  ;;  %v4347_v12 = vadd.f32 %v975_v56, %v4264_v41  ;;  %v4350_v38 = vmul.f32 %v1450_v43, %v4288_v13  ;;  %v4354_v20 = vadd.f32 %v1136_v57, %v4266_v60 }
 0x296   : > { %v1357_v2 = vmul.f32 0.044715, %v4333_v55  ;;  %5821 = vst [vmem:[#allocation19_spill] sm:$0xff] %v4344_v1  ;;  %v979_v36 = vpop.f32.mrb[10].mxu0  ;;  %v1140_v4 = vpop.f32.mrb[10].mxu1  ;;  %v1454_v5 = vmul.f32 %v1354_v59, %v4326_v46  ;;  %3342 = vtanh.f32 %v1747_v54  ;;  %v4360_v14 = vmul.f32 %v1451_v53, %v4296_v17 }
 0x297   : > { %5822 = vst [vmem:[#allocation20_spill] sm:$0xff] %v4347_v12  ;;  %5823 = vst [vmem:[#allocation21_spill] sm:$0xff] %v4354_v20  ;;  %v981_v23 = vpop.f32.mrb[11].mxu0  ;;  %v1142_v28 = vpop.f32.mrb[11].mxu1  ;;  %v1356_v25 = vmul.f32 0.044715, %v4341_v63  ;;  %v4363_v6 = vmul.f32 %v1453_v11, %v4299_v52  ;;  %v4367_v42 = vadd.f32 %v977_v3, %v4268_v39  ;;  %3344 = vtanh.f32 %v1749_v50 }
 0x298   : > { %v1358_v24 = vmul.f32 0.044715, %v4344_v1  ;;  %v1359_v45 = vmul.f32 0.044715, %v4347_v12  ;;  %5824 = vst [vmem:[#allocation22_spill] sm:$0xff] %v4360_v14  ;;  %v4370_v34 = vmul.f32 %v1452_v58, %v4315_v44  ;;  %v1455_v15 = vmul.f32 %v1355_v22, %v4329_v47 }
 0x299   : > { %5825 = vst [vmem:[#allocation23_spill] sm:$0xff] %v4363_v6  ;;  %v1361_v27 = vmul.f32 0.044715, %v4354_v20  ;;  %5826 = vst [vmem:[#allocation24_spill] sm:$0xff] %v4367_v42  ;;  %v1457_v61 = vmul.f32 %v1357_v2, %v4333_v55  ;;  %v4375_v30 = vmul.f32 %v1454_v5, %v4326_v46  ;;  %v1360_v32 = vmul.f32 0.044715, %v4367_v42 }
 0x29a   : > { %v4379_v21 = vadd.f32 %v1138_v62, %v4270_v18  ;;  %v4382_v33 = vadd.f32 %v979_v36, %v4264_v41  ;;  %v1456_v51 = vmul.f32 %v1356_v25, %v4341_v63  ;;  %v1458_v8 = vmul.f32 %v1358_v24, %v4344_v1 }
 0x29b   : > { %5827 = vst [vmem:[#allocation25_spill] sm:$0xff] %v4375_v30  ;;  %v1459_v48 = vmul.f32 %v1359_v45, %v4347_v12  ;;  %v4388_v40 = vadd.f32 %v1140_v4, %v4266_v60  ;;  %v4390_v35 = vpop.eup %3338  ;;  %v1461_v54 = vmul.f32 %v1361_v27, %v4354_v20  ;;  %v1460_v50 = vmul.f32 %v1360_v32, %v4367_v42 }
 0x29c   : > { %5828 = vst [vmem:[#allocation26_spill] sm:$0xff] %v4379_v21  ;;  %5829 = vst [vmem:[#allocation27_spill] sm:$0xff] %v4382_v33  ;;  %v985_v26 = vpop.f32.mrb[12].mxu0  ;;  %v1146_v43 = vpop.f32.mrb[12].mxu1  ;;  %v1362_v53 = vmul.f32 0.044715, %v4379_v21  ;;  %v4398_v59 = vadd.f32 %v981_v23, %v4268_v39  ;;  %v4401_v22 = vadd.f32 %v1142_v28, %v4270_v18  ;;  %v4407_v36 = vmul.f32 %v1455_v15, %v4329_v47 }
 0x29d   : > { %v1363_v56 = vmul.f32 0.044715, %v4382_v33  ;;  %v987_v57 = vpop.f32.mrb[13].mxu0  ;;  %v1148_v11 = vpop.f32.mrb[13].mxu1  ;;  %v1365_v58 = vmul.f32 0.044715, %v4388_v40  ;;  %v4404_v3 = vadd.f32 %v985_v26, %v4264_v41  ;;  %v4410_v4 = vmul.f32 %v1457_v61, %v4333_v55 }
 0x29e   : > { %v989_v62 = vpop.f32.mrb[14].mxu0  ;;  %v1150_v2 = vpop.f32.mrb[14].mxu1  ;;  %5831 = vst [vmem:[#allocation29_spill] sm:$0xff] %v4407_v36  ;;  %v1462_v5 = vmul.f32 %v1362_v53, %v4379_v21  ;;  %v4414_v25 = vadd.f32 %v1146_v43, %v4266_v60  ;;  %v4417_v28 = vmul.f32 %v1456_v51, %v4341_v63  ;;  %v1364_v27 = vmul.f32 0.044715, %v4398_v59 }
 0x29f   : > { %5830 = vst [vmem:[#allocation28_spill] sm:$0xff] %v4404_v3  ;;  %5832 = vst [vmem:[#allocation30_spill] sm:$0xff] %v4410_v4  ;;  %v991_v23 = vpop.f32.mrb[15].mxu0  ;;  %v1152_v24 = vpop.f32.mrb[15].mxu1  ;;  %v1463_v45 = vmul.f32 %v1363_v56, %v4382_v33  ;;  %v1366_v15 = vmul.f32 0.044715, %v4401_v22  ;;  %v4425_v61 = vmul.f32 %v1458_v8, %v4344_v1  ;;  %v4430_v53 = vadd.f32 %v987_v57, %v4268_v39 }
 0x2a0   : > { %5833 = vst [vmem:[#allocation31_spill] sm:$0xff] %v4414_v25  ;;  %v4422_v32 = vpop.eup %3340  ;;  %v1367_v26 = vmul.f32 0.044715, %v4404_v3  ;;  %v1369_v43 = vmul.f32 0.044715, %v4414_v25  ;;  %v4435_v56 = vmul.f32 %v1459_v48, %v4347_v12  ;;  %v4438_v4 = vmul.f32 %v1461_v54, %v4354_v20 }
 0x2a1   : > { %5834 = vst [vmem:[#allocation32_spill] sm:$0xff] %v4425_v61  ;;  %v4432_v51 = vpop.eup %3342  ;;  %v4441_v55 = vmul.f32 %v1460_v50, %v4367_v42  ;;  %v1465_v8 = vmul.f32 %v1365_v58, %v4388_v40  ;;  %v4445_v6 = vmul.f32 %v1462_v5, %v4379_v21  ;;  %v1368_v52 = vmul.f32 0.044715, %v4430_v53 }
 0x2a2   : > { %5835 = vst [vmem:[#allocation33_spill] sm:$0xff] %v4435_v56  ;;  %5836 = vst [vmem:[#allocation34_spill] sm:$0xff] %v4438_v4  ;;  %v4449_v57 = vadd.f32 %v1148_v11, %v4270_v18  ;;  %v4452_v36 = vadd.f32 %v989_v62, %v4264_v41  ;;  %v4454_v48 = vpop.eup %3344  ;;  %v4457_v54 = vmul.f32 %v1463_v45, %v4382_v33 }
 0x2a3   : > { %5837 = vst [vmem:[#allocation35_spill] sm:$0xff] %v4441_v55  ;;  %5838 = vst [vmem:[#allocation36_spill] sm:$0xff] %v4445_v6  ;;  %v1464_v50 = vmul.f32 %v1364_v27, %v4398_v59  ;;  %v1466_v58 = vmul.f32 %v1366_v15, %v4401_v22  ;;  %v4462_v5 = vadd.f32 %v1150_v2, %v4266_v60 }
 0x2a4   : > { %5839 = vst [vmem:[#allocation37_spill] sm:$0xff] %v4449_v57  ;;  %5840 = vst [vmem:[#allocation38_spill] sm:$0xff] %v4452_v36  ;;  %v995_v4 = vpop.f32.mrb[16].mxu0  ;;  %v1156_v20 = vpop.f32.mrb[16].mxu1  ;;  %v1467_v11 = vmul.f32 %v1367_v26, %v4404_v3  ;;  %v1469_v56 = vmul.f32 %v1369_v43, %v4414_v25  ;;  %v1370_v62 = vmul.f32 0.044715, %v4449_v57  ;;  %v4470_v27 = vadd.f32 %v991_v23, %v4268_v39 }
 0x2a5   : > { %5841 = vst [vmem:[#allocation39_spill] sm:$0xff] %v4457_v54  ;;  %5842 = vst [vmem:[#allocation40_spill] sm:$0xff] %v4462_v5  ;;  %v1371_v12 = vmul.f32 0.044715, %v4452_v36  ;;  %v997_v6 = vpop.f32.mrb[17].mxu0  ;;  %v1158_v45 = vpop.f32.mrb[17].mxu1  ;;  %v4473_v2 = vadd.f32 %v1152_v24, %v4270_v18  ;;  %v4476_v15 = vadd.f32 %v995_v4, %v4264_v41  ;;  %v1468_v43 = vmul.f32 %v1368_v52, %v4430_v53 }
 0x2a6   : > { %v1373_v54 = vmul.f32 0.044715, %v4462_v5  ;;  %5843 = vst [vmem:[#allocation41_spill] sm:$0xff] %v4470_v27  ;;  %v999_v26 = vpop.f32.mrb[18].mxu0  ;;  %v1160_v33 = vpop.f32.mrb[18].mxu1  ;;  %v1470_v21 = vmul.f32 %v1370_v62, %v4449_v57  ;;  %v4482_v42 = vadd.f32 %v1156_v20, %v4266_v60  ;;  %v4493_v52 = vmul.f32 %v1465_v8, %v4388_v40 }
 0x2a7   : > { %5844 = vst [vmem:[#allocation42_spill] sm:$0xff] %v4473_v2  ;;  %5845 = vst [vmem:[#allocation43_spill] sm:$0xff] %v4476_v15  ;;  %v1471_v55 = vmul.f32 %v1371_v12, %v4452_v36  ;;  %v4484_v47 = vpop.f32.mrb[19].mxu0  ;;  %v4486_v23 = vpop.f32.mrb[19].mxu1  ;;  %v1372_v4 = vmul.f32 0.044715, %v4470_v27  ;;  %v4496_v12 = vmul.f32 %v1464_v50, %v4398_v59  ;;  %v4500_v62 = vadd.f32 %v997_v6, %v4268_v39 }
 0x2a8   : > { %5846 = vst [vmem:[#allocation44_spill] sm:$0xff] %v4482_v42  ;;  %v1473_v24 = vmul.f32 %v1373_v54, %v4462_v5  ;;  %v1374_v14 = vmul.f32 0.044715, %v4473_v2  ;;  %v1375_v17 = vmul.f32 0.044715, %v4476_v15  ;;  %5847 = vst [vmem:[#allocation45_spill] sm:$0xff] %v4493_v52  ;;  %v4503_v61 = vmul.f32 %v1466_v58, %v4401_v22 }
 0x2a9   : > { %v1377_v20 = vmul.f32 0.044715, %v4482_v42  ;;  %5848 = vst [vmem:[#allocation46_spill] sm:$0xff] %v4500_v62  ;;  %v4506_v54 = vmul.f32 %v1467_v11, %v4404_v3  ;;  %v1472_v1 = vmul.f32 %v1372_v4, %v4470_v27  ;;  %v4511_v8 = vmul.f32 %v1469_v56, %v4414_v25 }
 0x2aa   : > { %v1474_v30 = vmul.f32 %v1374_v14, %v4473_v2  ;;  %v4514_v50 = vmul.f32 %v1468_v43, %v4430_v53  ;;  %v1475_v52 = vmul.f32 %v1375_v17, %v4476_v15  ;;  %v4518_v6 = vadd.f32 %v1158_v45, %v4270_v18 }
 0x2ab   : > { %5849 = vst [vmem:[#allocation47_spill] sm:$0xff] %v4506_v54  ;;  %5850 = vst [vmem:[#allocation48_spill] sm:$0xff] %v4511_v8  ;;  %v4521_v58 = vmul.f32 %v1470_v21, %v4449_v57  ;;  %v4524_v11 = vmul.f32 %v1471_v55, %v4452_v36  ;;  %v4527_v4 = vmul.f32 %v1473_v24, %v4462_v5  ;;  %v1376_v17 = vmul.f32 0.044715, %v4500_v62 }
 0x2ac   : > { %5851 = vst [vmem:[#allocation49_spill] sm:$0xff] %v4518_v6  ;;  %v1477_v14 = vmul.f32 %v1377_v20, %v4482_v42  ;;  %v1005_v56 = vpop.f32.mrb[20].mxu0  ;;  %v1166_v8 = vpop.f32.mrb[20].mxu1  ;;  %v4531_v43 = vmul.f32 %v1472_v1, %v4470_v27  ;;  %v4535_v45 = vmul.f32 0.5, %v4275_v49  ;;  %v1644_v21 = vadd.f32 %v4311_v9, %v4275_v49 }
 0x2ad   : > { %5852 = vst [vmem:[#allocation50_spill] sm:$0xff] %v4521_v58  ;;  %5853 = vst [vmem:[#allocation51_spill] sm:$0xff] %v4524_v11  ;;  %v1007_v55 = vpop.f32.mrb[21].mxu0  ;;  %v1168_v25 = vpop.f32.mrb[21].mxu1  ;;  %v4540_v24 = vmul.f32 %v1474_v30, %v4473_v2  ;;  %v4543_v20 = vmul.f32 0.5, %v4285_v0  ;;  %v1648_v1 = vadd.f32 %v4321_v19, %v4285_v0  ;;  %v4554_v49 = vmul.f32 %v1475_v52, %v4476_v15 }
 0x2ae   : > { %5854 = vst [vmem:[#allocation52_spill] sm:$0xff] %v4527_v4  ;;  %5855 = vst [vmem:[#allocation53_spill] sm:$0xff] %v4531_v43  ;;  %v1646_v4 = vadd.f32 %v4318_v37, %v4278_v10  ;;  %v4549_v5 = vpop.f32.mrb[22].mxu0  ;;  %v4551_v11 = vpop.f32.mrb[22].mxu1  ;;  %v1378_v9 = vmul.f32 0.044715, %v4518_v6  ;;  %v1650_v36 = vadd.f32 %v4350_v38, %v4288_v13  ;;  %v4564_v37 = vadd.f32 %v999_v26, %v4264_v41 }
 0x2af   : > { %5856 = vst [vmem:[#allocation54_spill] sm:$0xff] %v4540_v24  ;;  %5857 = vst [vmem:[#allocation55_spill] sm:$0xff] %v4554_v49  ;;  %v1744_v30 = vmul.f32 0.7978846, %v1644_v21  ;;  %v4559_v54 = vpop.f32.mrb[23].mxu0  ;;  %v4561_v3 = vpop.f32.mrb[23].mxu1  ;;  %v4567_v24 = vadd.f32 %v1160_v33, %v4266_v60  ;;  %v4570_v52 = vmul.f32 %v1477_v14, %v4482_v42  ;;  %v1476_v38 = vmul.f32 %v1376_v17, %v4500_v62 }
 0x2b0   : > { %v1748_v0 = vmul.f32 0.7978846, %v1648_v1  ;;  %v1746_v19 = vmul.f32 0.7978846, %v1646_v4  ;;  %5858 = vst [vmem:[#allocation56_spill] sm:$0xff] %v4564_v37  ;;  %v1943_v49 = vadd.f32 1.0, %v4390_v35  ;;  %v1478_v26 = vmul.f32 %v1378_v9, %v4518_v6 }
 0x2b1   : > { %5859 = vst [vmem:[#allocation57_spill] sm:$0xff] %v4567_v24  ;;  %5860 = vst [vmem:[#allocation58_spill] sm:$0xff] %v4570_v52  ;;  %3346 = vtanh.f32 %v1744_v30  ;;  %v1750_v21 = vmul.f32 0.7978846, %v1650_v36  ;;  %v1379_v15 = vmul.f32 0.044715, %v4564_v37  ;;  %v4639_v52 = vmul.f32 %v1476_v38, %v4500_v62 }
 0x2b2   : > { %3348 = vtanh.f32 %v1748_v0  ;;  %v1947_v4 = vadd.f32 1.0, %v4432_v51  ;;  %v1945_v33 = vadd.f32 1.0, %v4422_v32  ;;  %v1949_v1 = vadd.f32 1.0, %v4454_v48 }
 0x2b3   : > { %3350 = vtanh.f32 %v1746_v19  ;;  %v1381_v14 = vmul.f32 0.044715, %v4567_v24  ;;  %v4581_v36 = vmul.f32 %v1943_v49, %v4301_v7  ;;  %v4598_v48 = vadd.f32 %v4484_v47, %v4268_v39  ;;  %5866 = vst [vmem:[#allocation64_spill] sm:$0xff] %v4639_v52 }
 0x2b4   : > { %3352 = vtanh.f32 %v1750_v21  ;;  %v4584_v35 = vmul.f32 %v1947_v4, %v4305_v29  ;;  %v4586_v17 = vpop.f32.mrb[24].mxu0  ;;  %v4588_v30 = vpop.f32.mrb[24].mxu1  ;;  %v4591_v51 = vmul.f32 %v1945_v33, %v4303_v31  ;;  %v4594_v32 = vmul.f32 %v1949_v1, %v4307_v16 }
 0x2b5   : > { %v4602_v7 = vadd.f32 %v4486_v23, %v4270_v18  ;;  %v4604_v29 = vpop.f32.mrb[25].mxu0  ;;  %v4606_v49 = vpop.f32.mrb[25].mxu1  ;;  %v1246_v9 = vmul.f32 0.5, %v4278_v10  ;;  %v1479_v31 = vmul.f32 %v1379_v15, %v4564_v37  ;;  %v4613_v0 = vadd.f32 %v1005_v56, %v4264_v41 }
 0x2b6   : > { %v4615_v47 = vpop.f32.mrb[26].mxu0  ;;  %v4617_v19 = vpop.f32.mrb[26].mxu1  ;;  %v1380_v21 = vmul.f32 0.044715, %v4598_v48  ;;  %v4624_v10 = vadd.f32 %v1166_v8, %v4266_v60  ;;  %v1481_v56 = vmul.f32 %v1381_v14, %v4567_v24  ;;  %v4633_v16 = vadd.f32 %v1007_v55, %v4268_v39 }
 0x2b7   : > { %5861 = vst [vmem:[#allocation59_spill] sm:$0xff] %v4602_v7  ;;  %5862 = vst [vmem:[#allocation60_spill] sm:$0xff] %v4613_v0  ;;  %v1382_v4 = vmul.f32 0.044715, %v4602_v7  ;;  %v4626_v15 = vpop.f32.mrb[27].mxu0  ;;  %v4628_v33 = vpop.f32.mrb[27].mxu1  ;;  %v4636_v23 = vadd.f32 %v1168_v25, %v4270_v18  ;;  %v4642_v8 = vmul.f32 %v1478_v26, %v4518_v6  ;;  %v1652_v25 = vadd.f32 %v4370_v34, %v4315_v44 }
 0x2b8   : > { %5863 = vst [vmem:[#allocation61_spill] sm:$0xff] %v4624_v10  ;;  %v1383_v1 = vmul.f32 0.044715, %v4613_v0  ;;  %5864 = vst [vmem:[#allocation62_spill] sm:$0xff] %v4633_v16  ;;  %v1250_v42 = vmul.f32 0.5, %v4288_v13  ;;  %v1480_v2 = vmul.f32 %v1380_v21, %v4598_v48  ;;  %v4652_v38 = vmul.f32 %v1479_v31, %v4564_v37 }
 0x2b9   : > { %5865 = vst [vmem:[#allocation63_spill] sm:$0xff] %v4636_v23  ;;  %5867 = vst [vmem:[#allocation65_spill] sm:$0xff] %v4642_v8  ;;  %v1482_v14 = vmul.f32 %v1382_v4, %v4602_v7  ;;  %v1385_v55 = vmul.f32 0.044715, %v4624_v10  ;;  %v1384_v26 = vmul.f32 0.044715, %v4633_v16  ;;  %v1656_v13 = vadd.f32 %v4417_v28, %v4341_v63 }
 0x2ba   : > { %v1483_v58 = vmul.f32 %v1383_v1, %v4613_v0  ;;  %5868 = vst [vmem:[#allocation66_spill] sm:$0xff] %v4652_v38  ;;  %v4656_v8 = vmul.f32 0.5, %v4315_v44  ;;  %v4661_v1 = vmul.f32 %v1481_v56, %v4567_v24  ;;  %v1386_v6 = vmul.f32 0.044715, %v4636_v23 }
 0x2bb   : > { %v3347_v57 = vpop.eup %3346  ;;  %v4665_v34 = vmul.f32 0.5, %v4341_v63  ;;  %v4672_v52 = vmul.f32 %v1480_v2, %v4598_v48  ;;  %v1752_v28 = vmul.f32 0.7978846, %v1652_v25  ;;  %v1756_v62 = vmul.f32 0.7978846, %v1656_v13 }
 0x2bc   : > { %v3349_v21 = vpop.eup %3348  ;;  %v1944_v4 = vadd.f32 1.0, %v3347_v57  ;;  %5869 = vst [vmem:[#allocation67_spill] sm:$0xff] %v4661_v1  ;;  %v4667_v31 = vpop.f32.mrb[28].mxu0  ;;  %v4677_v24 = vmul.f32 %v1482_v14, %v4602_v7  ;;  %v4680_v63 = vmul.f32 %v1483_v58, %v4613_v0  ;;  %v1485_v43 = vmul.f32 %v1385_v55, %v4624_v10  ;;  %v5873_v55 = vld [vmem:[#allocation25_spill] sm:$0xff] }
 0x2bd   : > { %v4669_v38 = vpop.f32.mrb[28].mxu1  ;;  %v3351_v37 = vpop.eup %3350  ;;  %v1948_v44 = vadd.f32 1.0, %v3349_v21  ;;  %5870 = vst [vmem:[#allocation68_spill] sm:$0xff] %v4672_v52  ;;  %3354 = vtanh.f32 %v1752_v28  ;;  %v1484_v58 = vmul.f32 %v1384_v26, %v4633_v16  ;;  %v4710_v26 = vadd.f32 %v4551_v11, %v4266_v60  ;;  %v5883_v11 = vld [vmem:[#allocation17_spill] sm:$0xff] }
 0x2be   : > { %v4674_v57 = vpop.f32.mrb[29].mxu0  ;;  %v3353_v56 = vpop.eup %3352  ;;  %v1946_v1 = vadd.f32 1.0, %v3351_v37  ;;  %5871 = vst [vmem:[#allocation69_spill] sm:$0xff] %v4677_v24  ;;  %5872 = vst [vmem:[#allocation70_spill] sm:$0xff] %v4680_v63  ;;  %v2044_v2 = vmul.f32 %v1944_v4, %v4535_v45  ;;  %3356 = vtanh.f32 %v1756_v62  ;;  %v1654_v63 = vadd.f32 %v5873_v55, %v4326_v46  ;;  %v5874_v45 = vld [vmem:[#allocation19_spill] sm:$0xff]  ;;  %v5875_v4 = vld [vmem:[#allocation32_spill] sm:$0xff] }
 0x2bf   : > { %v4683_v27 = vpop.f32.mrb[29].mxu1  ;;  %v4685_v21 = vpop.f32.mrb[30].mxu0  ;;  %v2048_v25 = vmul.f32 %v1948_v44, %v4543_v20  ;;  %v1950_v13 = vadd.f32 1.0, %v3353_v56  ;;  %v1658_v20 = vadd.f32 %v5875_v4, %v5874_v45  ;;  %v4702_v44 = vadd.f32 %v4549_v5, %v4264_v41  ;;  %5878 = vst [vmem:[#allocation32_spill] sm:$0xff] %v4710_v26 }
 0x2c0   : > { %v4689_v52 = vpop.f32.mrb[30].mxu1  ;;  %v4691_v37 = vpop.f32.mrb[31].mxu0  ;;  %v2046_v14 = vmul.f32 %v1946_v1, %v1246_v9  ;;  %v4705_v28 = vmul.f32 %v1485_v43, %v4624_v10  ;;  %v1486_v9 = vmul.f32 %v1386_v6, %v4636_v23  ;;  %v1754_v62 = vmul.f32 0.7978846, %v1654_v63  ;;  %v5884_v63 = vld [vmem:[#allocation29_spill] sm:$0xff] }
 0x2c1   : > { %v4696_v0 = vpop.f32.mrb[31].mxu1  ;;  %v2144_v24 = vpack.c.bf16 %v2048_v25, %v2044_v2  ;;  %v2050_v7 = vmul.f32 %v1950_v13, %v1250_v42  ;;  %5876 = vst [vmem:[#allocation25_spill] sm:$0xff] %v4702_v44  ;;  %v1758_v42 = vmul.f32 0.7978846, %v1658_v20  ;;  %v1387_v56 = vmul.f32 0.044715, %v4702_v44 }
 0x2c2   : > { %5877 = vst [vmem:[#allocation19_spill] sm:$0xff] %v4705_v28  ;;  %v5879_v2 = vld [vmem:[#allocation15_spill] sm:$0xff]  ;;  %v5880_v25 = vld [vmem:[#allocation22_spill] sm:$0xff]  ;;  %v5881_v5 = vpack.c.bf16 %v4584_v35, %v4581_v36  ;;  %v4719_v43 = vmul.f32 %v1484_v58, %v4633_v16  ;;  %3358 = vtanh.f32 %v1754_v62  ;;  %v1389_v6 = vmul.f32 0.044715, %v4710_v26 }
 0x2c3   : > { %2490 = vmatprep.mubr.bf16.mxu0 %v2144_v24  ;;  %v2146_v1 = vpack.c.bf16 %v2050_v7, %v2046_v14  ;;  %v1651_v13 = vadd.f32 %v5880_v25, %v5879_v2  ;;  %v1655_v24 = vadd.f32 %v5884_v63, %v5883_v11  ;;  %v4729_v55 = vmul.f32 0.5, %v4326_v46  ;;  %v5886_v25 = vld [vmem:[#allocation16_spill] sm:$0xff]  ;;  %v5887_v46 = vld [vmem:[#allocation23_spill] sm:$0xff]  ;;  %v5888_v63 = vld [vmem:[#allocation18_spill] sm:$0xff] }
 0x2c4   : > { %2491 = vmatmul.mubr.bf16.vlgmr.msra.gmra.mrb[52].mxu0 %v5881_v5  ;;  %5882 = vst [vmem:[#allocation15_spill] sm:$0xff] %v4719_v43  ;;  %v4724_v7 = vpop.f32.mrb[32].mxu0  ;;  %v4726_v14 = vpop.f32.mrb[32].mxu1  ;;  %v4732_v36 = vmul.f32 0.5, %v5874_v45  ;;  %3360 = vtanh.f32 %v1758_v42  ;;  %v5885_v20 = vpack.c.bf16 %v4594_v32, %v4591_v51  ;;  %v4742_v62 = vmul.f32 0.5, %v5879_v2  ;;  %v5889_v45 = vld [vmem:[#allocation30_spill] sm:$0xff] }
 0x2c5   : > { %2626 = vmatprep.mubr.bf16.mxu1 %v2146_v1  ;;  %v1751_v35 = vmul.f32 0.7978846, %v1651_v13  ;;  %v4734_v58 = vpop.f32.mrb[33].mxu0  ;;  %v4736_v4 = vpop.f32.mrb[33].mxu1  ;;  %v1755_v1 = vmul.f32 0.7978846, %v1655_v24  ;;  %v1653_v5 = vadd.f32 %v5887_v46, %v5886_v25  ;;  %v1657_v28 = vadd.f32 %v5889_v45, %v5888_v63 }
 0x2c6   : > { %2627 = vmatmul.mubr.bf16.vlgmr.msra.gmra.mrb[52].mxu1 %v5885_v20  ;;  %v4748_v42 = vpop.f32.mrb[34].mxu0  ;;  %v4750_v13 = vpop.f32.mrb[34].mxu1  ;;  %v1487_v10 = vmul.f32 %v1387_v56, %v4702_v44  ;;  %v4755_v51 = vadd.f32 %v4559_v54, %v4268_v39  ;;  %v4759_v32 = vadd.f32 %v4561_v3, %v4270_v18  ;;  %v1489_v20 = vmul.f32 %v1389_v6, %v4710_v26 }
 0x2c7   : > { %5890 = vst [vmem:[#allocation22_spill] sm:$0xff] %v4750_v13  ;;  %3362 = vtanh.f32 %v1751_v35  ;;  %v4761_v2 = vpop.f32.mrb[35].mxu0  ;;  %v4763_v24 = vpop.f32.mrb[35].mxu1  ;;  %v1753_v46 = vmul.f32 0.7978846, %v1653_v5  ;;  %v4770_v54 = vadd.f32 %v4586_v17, %v4264_v41  ;;  %v4774_v3 = vadd.f32 %v4588_v30, %v4266_v60 }
 0x2c8   : > { %5891 = vst [vmem:[#allocation17_spill] sm:$0xff] %v4755_v51  ;;  %5892 = vst [vmem:[#allocation29_spill] sm:$0xff] %v4759_v32  ;;  %3364 = vtanh.f32 %v1755_v1  ;;  %v1757_v45 = vmul.f32 0.7978846, %v1657_v28  ;;  %v3355_v43 = vpop.eup %3354  ;;  %v1388_v56 = vmul.f32 0.044715, %v4755_v51  ;;  %v4778_v6 = vadd.f32 %v4604_v29, %v4268_v39 }
 0x2c9   : > { %5893 = vst [vmem:[#allocation16_spill] sm:$0xff] %v4761_v2  ;;  %5894 = vst [vmem:[#allocation23_spill] sm:$0xff] %v4763_v24  ;;  %v1390_v35 = vmul.f32 0.044715, %v4759_v32  ;;  %v3357_v16 = vpop.eup %3356  ;;  %v1952_v24 = vadd.f32 1.0, %v3355_v43  ;;  %3366 = vtanh.f32 %v1753_v46  ;;  %v4782_v28 = vadd.f32 %v4606_v49, %v4270_v18 }
 0x2ca   : > { %v1956_v1 = vadd.f32 1.0, %v3357_v16  ;;  %3368 = vtanh.f32 %v1757_v45  ;;  %v1488_v17 = vmul.f32 %v1388_v56, %v4755_v51  ;;  %v4787_v30 = vmul.f32 %v1486_v9, %v4636_v23 }
 0x2cb   : > { %v1490_v5 = vmul.f32 %v1390_v35, %v4759_v32  ;;  %v1391_v43 = vmul.f32 0.044715, %v4770_v54  ;;  %v1393_v46 = vmul.f32 0.044715, %v4774_v3  ;;  %v1392_v29 = vmul.f32 0.044715, %v4778_v6 }
 0x2cc   : > { %5895 = vst [vmem:[#allocation18_spill] sm:$0xff] %v4787_v30  ;;  %v2052_v2 = vmul.f32 %v1952_v24, %v4656_v8  ;;  %v2056_v49 = vmul.f32 %v1956_v1, %v4665_v34  ;;  %v1255_v16 = vmul.f32 0.5, %v5883_v11  ;;  %v1394_v45 = vmul.f32 0.044715, %v4782_v28  ;;  %v4796_v56 = vpop.f32.mrb[36].mxu0  ;;  %v4798_v35 = vpop.f32.mrb[36].mxu1 }
 0x2cd   : > { %5896 = vst [vmem:[#allocation30_spill] sm:$0xff] %v4796_v56  ;;  %5897 = vst [vmem:[#allocation71_spill] sm:$0xff] %v4798_v35  ;;  %v3359_v9 = vpop.eup %3358  ;;  %v4801_v30 = vmul.f32 %v1487_v10, %v4702_v44  ;;  %v4804_v23 = vmul.f32 %v1489_v20, %v4710_v26  ;;  %v1253_v13 = vmul.f32 0.5, %v5886_v25  ;;  %v1257_v8 = vmul.f32 0.5, %v5888_v63  ;;  %v4808_v34 = vpop.f32.mrb[37].mxu0 }
 0x2ce   : > { %v4810_v11 = vpop.f32.mrb[37].mxu1  ;;  %v3361_v24 = vpop.eup %3360  ;;  %v2148_v1 = vpack.c.bf16 %v2056_v49, %v2052_v2  ;;  %v1954_v56 = vadd.f32 1.0, %v3359_v9  ;;  %v4813_v35 = vmul.f32 %v1488_v17, %v4755_v51  ;;  %v4816_v10 = vmul.f32 %v1490_v5, %v4759_v32  ;;  %v5907_v49 = vld [vmem:[#allocation24_spill] sm:$0xff]  ;;  %v5909_v32 = vld [vmem:[#allocation26_spill] sm:$0xff] }
 0x2cf   : > { %5898 = vst [vmem:[#allocation72_spill] sm:$0xff] %v4801_v30  ;;  %5899 = vst [vmem:[#allocation73_spill] sm:$0xff] %v4804_v23  ;;  %v4818_v30 = vpop.f32.mrb[38].mxu0  ;;  %v4820_v20 = vpop.f32.mrb[38].mxu1  ;;  %v1958_v25 = vadd.f32 1.0, %v3361_v24  ;;  %v1491_v63 = vmul.f32 %v1391_v43, %v4770_v54  ;;  %v1493_v23 = vmul.f32 %v1393_v46, %v4774_v3  ;;  %v1492_v26 = vmul.f32 %v1392_v29, %v4778_v6 }
 0x2d0   : > { %5900 = vst [vmem:[#allocation74_spill] sm:$0xff] %v4810_v11  ;;  %5901 = vst [vmem:[#allocation75_spill] sm:$0xff] %v4813_v35  ;;  %v4825_v44 = vpop.f32.mrb[39].mxu0  ;;  %v4827_v2 = vpop.f32.mrb[39].mxu1  ;;  %2498 = vmatprep.mubr.bf16.mxu0 %v2148_v1  ;;  %v1494_v5 = vmul.f32 %v1394_v45, %v4782_v28  ;;  %v4831_v9 = vmul.f32 0.5, %v5907_v49  ;;  %v1664_v43 = vadd.f32 %v4496_v12, %v4398_v59  ;;  %v5910_v35 = vld [vmem:[#allocation36_spill] sm:$0xff] }
 0x2d1   : > { %5902 = vst [vmem:[#allocation76_spill] sm:$0xff] %v4816_v10  ;;  %5903 = vst [vmem:[#allocation77_spill] sm:$0xff] %v4818_v30  ;;  %v3363_v17 = vpop.eup %3362  ;;  %v2054_v29 = vmul.f32 %v1954_v56, %v4729_v55  ;;  %v1662_v51 = vadd.f32 %v5910_v35, %v5909_v32  ;;  %v1666_v12 = vadd.f32 %v4503_v61, %v4401_v22 }
 0x2d2   : > { %5904 = vst [vmem:[#allocation78_spill] sm:$0xff] %v4820_v20  ;;  %5905 = vst [vmem:[#allocation79_spill] sm:$0xff] %v4825_v44  ;;  %v5908_v20 = vld [vmem:[#allocation35_spill] sm:$0xff]  ;;  %v3365_v46 = vpop.eup %3364  ;;  %v2058_v44 = vmul.f32 %v1958_v25, %v4732_v36  ;;  %v1951_v30 = vadd.f32 1.0, %v3363_v17  ;;  %v1764_v10 = vmul.f32 0.7978846, %v1664_v43  ;;  %v4849_v55 = vadd.f32 %v4615_v47, %v4264_v41 }
 0x2d3   : > { %5906 = vst [vmem:[#allocation80_spill] sm:$0xff] %v4827_v2  ;;  %v1660_v24 = vadd.f32 %v5908_v20, %v5907_v49  ;;  %v4840_v2 = vmul.f32 0.5, %v4398_v59  ;;  %v1955_v1 = vadd.f32 1.0, %v3365_v46  ;;  %v3367_v11 = vpop.eup %3366  ;;  %v1762_v25 = vmul.f32 0.7978846, %v1662_v51  ;;  %v5913_v46 = vld [vmem:[#allocation27_spill] sm:$0xff] }
 0x2d4   : > { %v2150_v20 = vpack.c.bf16 %v2058_v44, %v2054_v29  ;;  %v2051_v49 = vmul.f32 %v1951_v30, %v4742_v62  ;;  %v3369_v36 = vpop.eup %3368  ;;  %v1953_v56 = vadd.f32 1.0, %v3367_v11  ;;  %v1766_v35 = vmul.f32 0.7978846, %v1666_v12  ;;  %v5914_v29 = vld [vmem:[#allocation39_spill] sm:$0xff] }
 0x2d5   : > { %v1760_v45 = vmul.f32 0.7978846, %v1660_v24  ;;  %v2055_v59 = vmul.f32 %v1955_v1, %v1255_v16  ;;  %v1957_v17 = vadd.f32 1.0, %v3369_v36  ;;  %v1395_v44 = vmul.f32 0.044715, %v4849_v55  ;;  %v5917_v36 = vld [vmem:[#allocation45_spill] sm:$0xff] }
 0x2d6   : > { %2634 = vmatprep.mubr.bf16.mxu1 %v2150_v20  ;;  %v4853_v62 = vmul.f32 %v1491_v63, %v4770_v54  ;;  %v4857_v61 = vadd.f32 %v4617_v19, %v4266_v60  ;;  %v2053_v47 = vmul.f32 %v1953_v56, %v1253_v13  ;;  %v4860_v16 = vmul.f32 %v1493_v23, %v4774_v3  ;;  %v5912_v63 = vld [vmem:[#allocation33_spill] sm:$0xff] }
 0x2d7   : > { %3370 = vtanh.f32 %v1760_v45  ;;  %v2147_v24 = vpack.c.bf16 %v2055_v59, %v2051_v49  ;;  %v2057_v30 = vmul.f32 %v1957_v17, %v1257_v8  ;;  %v4863_v51 = vmul.f32 %v1492_v26, %v4778_v6  ;;  %v5915_v49 = vld [vmem:[#allocation21_spill] sm:$0xff] }
 0x2d8   : > { %3372 = vtanh.f32 %v1764_v10  ;;  %v4866_v11 = vmul.f32 %v1494_v5, %v4782_v28  ;;  %v5911_v10 = vld [vmem:[#allocation20_spill] sm:$0xff]  ;;  %v1663_v19 = vadd.f32 %v5914_v29, %v5913_v46  ;;  %v1262_v13 = vmul.f32 0.5, %v5909_v32  ;;  %v5916_v5 = vld [vmem:[#allocation34_spill] sm:$0xff] }
 0x2d9   : > { %3374 = vtanh.f32 %v1762_v25  ;;  %2499 = vmatmul.mubr.bf16.gmra.mrb[56].mxu0 %v2147_v24  ;;  %v1659_v43 = vadd.f32 %v5912_v63, %v5911_v10  ;;  %v2149_v1 = vpack.c.bf16 %v2057_v30, %v2053_v47  ;;  %v1266_v23 = vmul.f32 0.5, %v4401_v22 }
 0x2da   : > { %3376 = vtanh.f32 %v1766_v35  ;;  %v1495_v8 = vmul.f32 %v1395_v44, %v4849_v55  ;;  %v1397_v45 = vmul.f32 0.044715, %v4857_v61  ;;  %v1763_v20 = vmul.f32 0.7978846, %v1663_v19 }
 0x2db   : > { %v1759_v26 = vmul.f32 0.7978846, %v1659_v43  ;;  %v1661_v12 = vadd.f32 %v5916_v5, %v5915_v49  ;;  %2635 = vmatmul.mubr.bf16.gmra.mrb[56].mxu1 %v2149_v1  ;;  %v1665_v59 = vadd.f32 %v5917_v36, %v4388_v40  ;;  %v4882_v56 = vadd.f32 %v4626_v15, %v4268_v39 }
 0x2dc   : > { %v4886_v22 = vadd.f32 %v4628_v33, %v4270_v18  ;;  %v4890_v32 = vadd.f32 %v4667_v31, %v4264_v41  ;;  %v1259_v25 = vmul.f32 0.5, %v5911_v10  ;;  %v4895_v35 = vadd.f32 %v4669_v38, %v4266_v60 }
 0x2dd   : > { %3378 = vtanh.f32 %v1759_v26  ;;  %v1761_v17 = vmul.f32 0.7978846, %v1661_v12  ;;  %v1765_v44 = vmul.f32 0.7978846, %v1665_v59  ;;  %v1396_v15 = vmul.f32 0.044715, %v4882_v56 }
 0x2de   : > { %5918 = vst [vmem:[#allocation24_spill] sm:$0xff] %v4890_v32  ;;  %5919 = vst [vmem:[#allocation35_spill] sm:$0xff] %v4895_v35  ;;  %3380 = vtanh.f32 %v1763_v20  ;;  %v1398_v24 = vmul.f32 0.044715, %v4886_v22  ;;  %v1399_v47 = vmul.f32 0.044715, %v4890_v32  ;;  %v4903_v30 = vadd.f32 %v4674_v57, %v4268_v39 }
 0x2df   : > { %3382 = vtanh.f32 %v1761_v17  ;;  %v1401_v31 = vmul.f32 0.044715, %v4895_v35  ;;  %v1497_v38 = vmul.f32 %v1397_v45, %v4857_v61  ;;  %v1496_v43 = vmul.f32 %v1396_v15, %v4882_v56 }
 0x2e0   : > { %3384 = vtanh.f32 %v1765_v44  ;;  %v4908_v1 = vmul.f32 %v1495_v8, %v4849_v55  ;;  %v1263_v26 = vmul.f32 0.5, %v5913_v46  ;;  %v1261_v20 = vmul.f32 0.5, %v5915_v49 }
 0x2e1   : > { %v3371_v33 = vpop.eup %3370  ;;  %v1498_v57 = vmul.f32 %v1398_v24, %v4886_v22  ;;  %v1499_v36 = vmul.f32 %v1399_v47, %v4890_v32  ;;  %v1501_v45 = vmul.f32 %v1401_v31, %v4895_v35  ;;  %v1400_v8 = vmul.f32 0.044715, %v4903_v30 }
 0x2e2   : > { %v3373_v10 = vpop.eup %3372  ;;  %v1960_v63 = vadd.f32 1.0, %v3371_v33  ;;  %v4919_v15 = vmul.f32 %v1497_v38, %v4857_v61  ;;  %v1265_v46 = vmul.f32 0.5, %v4388_v40  ;;  %v4923_v49 = vmul.f32 %v1496_v43, %v4882_v56  ;;  %v5923_v38 = vld [vmem:[#allocation53_spill] sm:$0xff] }
 0x2e3   : > { %v3375_v29 = vpop.eup %3374  ;;  %v1964_v19 = vadd.f32 1.0, %v3373_v10  ;;  %v4927_v24 = vadd.f32 %v4683_v27, %v4270_v18  ;;  %v4932_v31 = vmul.f32 %v1498_v57, %v4886_v22  ;;  %v4935_v10 = vmul.f32 %v1499_v36, %v4890_v32 }
 0x2e4   : > { %v3377_v5 = vpop.eup %3376  ;;  %v1962_v12 = vadd.f32 1.0, %v3375_v29  ;;  %v2060_v59 = vmul.f32 %v1960_v63, %v4831_v9  ;;  %v4938_v40 = vmul.f32 %v1501_v45, %v4895_v35  ;;  %v5922_v63 = vld [vmem:[#allocation41_spill] sm:$0xff]  ;;  %v5927_v45 = vld [vmem:[#allocation54_spill] sm:$0xff] }
 0x2e5   : > { %v2064_v17 = vmul.f32 %v1964_v19, %v4840_v2  ;;  %v1966_v44 = vadd.f32 1.0, %v3377_v5  ;;  %v1668_v2 = vadd.f32 %v4514_v50, %v4430_v53  ;;  %5920 = vst [vmem:[#allocation26_spill] sm:$0xff] %v4935_v10  ;;  %v1672_v43 = vadd.f32 %v5923_v38, %v5922_v63  ;;  %v5924_v19 = vld [vmem:[#allocation37_spill] sm:$0xff]  ;;  %v5925_v50 = vld [vmem:[#allocation50_spill] sm:$0xff] }
 0x2e6   : > { %v2062_v47 = vmul.f32 %v1962_v12, %v1262_v13  ;;  %5921 = vst [vmem:[#allocation36_spill] sm:$0xff] %v4938_v40  ;;  %v1500_v13 = vmul.f32 %v1400_v8, %v4903_v30  ;;  %v1670_v5 = vadd.f32 %v5925_v50, %v5924_v19  ;;  %v1402_v36 = vmul.f32 0.044715, %v4927_v24 }
 0x2e7   : > { %v2152_v33 = vpack.c.bf16 %v2064_v17, %v2060_v59  ;;  %v2066_v9 = vmul.f32 %v1966_v44, %v1266_v23  ;;  %v3379_v27 = vpop.eup %3378  ;;  %v1768_v23 = vmul.f32 0.7978846, %v1668_v2  ;;  %v1772_v59 = vmul.f32 0.7978846, %v1672_v43  ;;  %v5926_v17 = vld [vmem:[#allocation42_spill] sm:$0xff] }
 0x2e8   : > { %v3381_v12 = vpop.eup %3380  ;;  %v1959_v57 = vadd.f32 1.0, %v3379_v27  ;;  %v1674_v44 = vadd.f32 %v5927_v45, %v5926_v17  ;;  %v4951_v27 = vadd.f32 %v4685_v21, %v4264_v41  ;;  %v4954_v45 = vmul.f32 %v1500_v13, %v4903_v30 }
 0x2e9   : > { %2506 = vmatprep.mubr.bf16.mxu0 %v2152_v33  ;;  %v2154_v29 = vpack.c.bf16 %v2066_v9, %v2062_v47  ;;  %v3383_v40 = vpop.eup %3382  ;;  %v1963_v38 = vadd.f32 1.0, %v3381_v12  ;;  %v1268_v33 = vmul.f32 0.5, %v4430_v53  ;;  %3386 = vtanh.f32 %v1768_v23  ;;  %v5930_v12 = vld [vmem:[#allocation28_spill] sm:$0xff] }
 0x2ea   : > { %v1770_v47 = vmul.f32 0.7978846, %v1670_v5  ;;  %v3385_v8 = vpop.eup %3384  ;;  %v2059_v9 = vmul.f32 %v1959_v57, %v1259_v25  ;;  %v1961_v2 = vadd.f32 1.0, %v3383_v40  ;;  %3388 = vtanh.f32 %v1772_v59  ;;  %5928 = vst [vmem:[#allocation20_spill] sm:$0xff] %v4951_v27  ;;  %v5931_v57 = vld [vmem:[#allocation47_spill] sm:$0xff]  ;;  %v5932_v59 = vld [vmem:[#allocation38_spill] sm:$0xff] }
 0x2eb   : > { %2642 = vmatprep.mubr.bf16.mxu1 %v2154_v29  ;;  %v2063_v50 = vmul.f32 %v1963_v38, %v1263_v26  ;;  %v1965_v43 = vadd.f32 1.0, %v3385_v8  ;;  %v1774_v35 = vmul.f32 0.7978846, %v1674_v44  ;;  %v1502_v29 = vmul.f32 %v1402_v36, %v4927_v24  ;;  %v5933_v44 = vld [vmem:[#allocation51_spill] sm:$0xff] }
 0x2ec   : > { %3390 = vtanh.f32 %v1770_v47  ;;  %v1272_v53 = vmul.f32 0.5, %v5922_v63  ;;  %v4960_v25 = vadd.f32 %v4689_v52, %v4266_v60  ;;  %v2061_v23 = vmul.f32 %v1961_v2, %v1261_v20  ;;  %v5934_v20 = vld [vmem:[#allocation31_spill] sm:$0xff]  ;;  %v5936_v2 = vld [vmem:[#allocation40_spill] sm:$0xff] }
 0x2ed   : > { %v2151_v40 = vpack.c.bf16 %v2063_v50, %v2059_v9  ;;  %v2065_v5 = vmul.f32 %v1965_v43, %v1265_v46  ;;  %3392 = vtanh.f32 %v1774_v35  ;;  %v1270_v21 = vmul.f32 0.5, %v5924_v19  ;;  %v5935_v46 = vld [vmem:[#allocation48_spill] sm:$0xff] }
 0x2ee   : > { %5929 = vst [vmem:[#allocation33_spill] sm:$0xff] %v4960_v25  ;;  %v1403_v26 = vmul.f32 0.044715, %v4951_v27  ;;  %v1667_v13 = vadd.f32 %v5931_v57, %v5930_v12  ;;  %v1671_v36 = vadd.f32 %v5933_v44, %v5932_v59  ;;  %v1274_v38 = vmul.f32 0.5, %v5926_v17  ;;  %v5937_v50 = vld [vmem:[#allocation52_spill] sm:$0xff] }
 0x2ef   : > { %2507 = vmatmul.mubr.bf16.gmra.mrb[60].mxu0 %v2151_v40  ;;  %v2153_v63 = vpack.c.bf16 %v2065_v5, %v2061_v23  ;;  %v4970_v52 = vmul.f32 0.5, %v5930_v12  ;;  %v1669_v35 = vadd.f32 %v5935_v46, %v5934_v20  ;;  %v4975_v19 = vmul.f32 %v1502_v29, %v4927_v24 }
 0x2f0   : > { %v1405_v47 = vmul.f32 0.044715, %v4960_v25  ;;  %v1767_v8 = vmul.f32 0.7978846, %v1667_v13  ;;  %v1771_v9 = vmul.f32 0.7978846, %v1671_v36  ;;  %v1673_v43 = vadd.f32 %v5937_v50, %v5936_v2 }
 0x2f1   : > { %2643 = vmatmul.mubr.bf16.gmra.mrb[60].mxu1 %v2153_v63  ;;  %v1769_v40 = vmul.f32 0.7978846, %v1669_v35  ;;  %v4982_v17 = vadd.f32 %v4691_v37, %v4268_v39  ;;  %v4986_v23 = vadd.f32 %v4696_v0, %v4270_v18  ;;  %v1503_v29 = vmul.f32 %v1403_v26, %v4951_v27 }
 0x2f2   : > { %3394 = vtanh.f32 %v1767_v8  ;;  %v4991_v5 = vadd.f32 %v4724_v7, %v4264_v41  ;;  %v4995_v12 = vadd.f32 %v4726_v14, %v4266_v60  ;;  %v1773_v13 = vmul.f32 0.7978846, %v1673_v43 }
 0x2f3   : > { %v3387_v57 = vpop.eup %3386  ;;  %3396 = vtanh.f32 %v1771_v9  ;;  %v1404_v37 = vmul.f32 0.044715, %v4982_v17  ;;  %v1406_v44 = vmul.f32 0.044715, %v4986_v23  ;;  %v1505_v35 = vmul.f32 %v1405_v47, %v4960_v25 }
 0x2f4   : > { %5938 = vst [vmem:[#allocation27_spill] sm:$0xff] %v4991_v5  ;;  %5939 = vst [vmem:[#allocation39_spill] sm:$0xff] %v4995_v12  ;;  %v3389_v0 = vpop.eup %3388  ;;  %v1968_v36 = vadd.f32 1.0, %v3387_v57  ;;  %3398 = vtanh.f32 %v1769_v40  ;;  %v1407_v26 = vmul.f32 0.044715, %v4991_v5  ;;  %v1271_v14 = vmul.f32 0.5, %v5932_v59 }
 0x2f5   : > { %v1409_v63 = vmul.f32 0.044715, %v4995_v12  ;;  %v1972_v46 = vadd.f32 1.0, %v3389_v0  ;;  %3400 = vtanh.f32 %v1773_v13  ;;  %v1504_v50 = vmul.f32 %v1404_v37, %v4982_v17 }
 0x2f6   : > { %v3391_v7 = vpop.eup %3390  ;;  %v2068_v8 = vmul.f32 %v1968_v36, %v1268_v33  ;;  %v1506_v43 = vmul.f32 %v1406_v44, %v4986_v23  ;;  %v1507_v40 = vmul.f32 %v1407_v26, %v4991_v5  ;;  %v5009_v0 = vadd.f32 %v4734_v58, %v4268_v39 }
 0x2f7   : > { %v1970_v9 = vadd.f32 1.0, %v3391_v7  ;;  %v3393_v10 = vpop.eup %3392  ;;  %v2072_v57 = vmul.f32 %v1972_v46, %v1272_v53  ;;  %v1509_v32 = vmul.f32 %v1409_v63, %v4995_v12  ;;  %v5012_v59 = vmul.f32 %v1503_v29, %v4951_v27  ;;  %v5945_v63 = vld [vmem:[#allocation64_spill] sm:$0xff] }
 0x2f8   : > { %5940 = vst [vmem:[#allocation21_spill] sm:$0xff] %v5009_v0  ;;  %v1974_v47 = vadd.f32 1.0, %v3393_v10  ;;  %v1269_v33 = vmul.f32 0.5, %v5934_v20  ;;  %v1273_v13 = vmul.f32 0.5, %v5936_v2  ;;  %v5017_v53 = vmul.f32 %v1505_v35, %v4960_v25  ;;  %v5944_v10 = vld [vmem:[#allocation46_spill] sm:$0xff]  ;;  %v5946_v7 = vld [vmem:[#allocation68_spill] sm:$0xff] }
 0x2f9   : > { %5941 = vst [vmem:[#allocation34_spill] sm:$0xff] %v5012_v59  ;;  %v2156_v37 = vpack.c.bf16 %v2072_v57, %v2068_v8  ;;  %v2070_v44 = vmul.f32 %v1970_v9, %v1270_v21  ;;  %v5021_v36 = vadd.f32 %v4736_v4, %v4270_v18  ;;  %v1408_v58 = vmul.f32 0.044715, %v5009_v0  ;;  %v5949_v57 = vld [vmem:[#allocation49_spill] sm:$0xff] }
 0x2fa   : > { %5942 = vst [vmem:[#allocation45_spill] sm:$0xff] %v5017_v53  ;;  %v2074_v26 = vmul.f32 %v1974_v47, %v1274_v38  ;;  %v1676_v29 = vadd.f32 %v5945_v63, %v5944_v10  ;;  %v1680_v20 = vadd.f32 %v5946_v7, %v4598_v48  ;;  %v5029_v2 = vmul.f32 %v1504_v50, %v4982_v17  ;;  %v5950_v47 = vld [vmem:[#allocation65_spill] sm:$0xff]  ;;  %v5951_v53 = vld [vmem:[#allocation59_spill] sm:$0xff] }
 0x2fb   : > { %5943 = vst [vmem:[#allocation41_spill] sm:$0xff] %v5021_v36  ;;  %2514 = vmatprep.mubr.bf16.mxu0 %v2156_v37  ;;  %v5032_v21 = vmul.f32 %v1506_v43, %v4986_v23  ;;  %v5035_v46 = vmul.f32 %v1507_v40, %v4991_v5  ;;  %v5038_v4 = vmul.f32 %v1509_v32, %v4995_v12  ;;  %v1410_v50 = vmul.f32 0.044715, %v5021_v36  ;;  %v5952_v25 = vld [vmem:[#allocation69_spill] sm:$0xff] }
 0x2fc   : > { %v3395_v38 = vpop.eup %3394  ;;  %v2158_v35 = vpack.c.bf16 %v2074_v26, %v2070_v44  ;;  %v1776_v8 = vmul.f32 0.7978846, %v1676_v29  ;;  %v1780_v9 = vmul.f32 0.7978846, %v1680_v20  ;;  %v1678_v63 = vadd.f32 %v5950_v47, %v5949_v57 }
 0x2fd   : > { %5947 = vst [vmem:[#allocation53_spill] sm:$0xff] %v5035_v46  ;;  %5948 = vst [vmem:[#allocation37_spill] sm:$0xff] %v5038_v4  ;;  %v3397_v37 = vpop.eup %3396  ;;  %v1967_v7 = vadd.f32 1.0, %v3395_v38  ;;  %v1276_v43 = vmul.f32 0.5, %v5944_v10  ;;  %v1682_v40 = vadd.f32 %v5952_v25, %v5951_v53  ;;  %v1508_v4 = vmul.f32 %v1408_v58, %v5009_v0 }
 0x2fe   : > { %v3399_v46 = vpop.eup %3398  ;;  %2650 = vmatprep.mubr.bf16.mxu1 %v2158_v35  ;;  %v1971_v32 = vadd.f32 1.0, %v3397_v37  ;;  %3402 = vtanh.f32 %v1776_v8  ;;  %v1778_v44 = vmul.f32 0.7978846, %v1678_v63  ;;  %v5050_v38 = vadd.f32 %v4748_v42, %v4264_v41  ;;  %v5954_v8 = vld [vmem:[#allocation22_spill] sm:$0xff]  ;;  %v5956_v37 = vld [vmem:[#allocation43_spill] sm:$0xff] }
 0x2ff   : > { %v3401_v26 = vpop.eup %3400  ;;  %v2067_v29 = vmul.f32 %v1967_v7, %v4970_v52  ;;  %v1969_v20 = vadd.f32 1.0, %v3399_v46  ;;  %3404 = vtanh.f32 %v1780_v9  ;;  %v1782_v12 = vmul.f32 0.7978846, %v1682_v40  ;;  %v5957_v7 = vld [vmem:[#allocation55_spill] sm:$0xff] }
 0x300   : > { %5953 = vst [vmem:[#allocation50_spill] sm:$0xff] %v5050_v38  ;;  %v2071_v10 = vmul.f32 %v1971_v32, %v1271_v14  ;;  %v1973_v47 = vadd.f32 1.0, %v3401_v26  ;;  %3406 = vtanh.f32 %v1778_v44  ;;  %v1510_v25 = vmul.f32 %v1410_v50, %v5021_v36  ;;  %v5958_v50 = vld [vmem:[#allocation56_spill] sm:$0xff]  ;;  %v5959_v32 = vld [vmem:[#allocation66_spill] sm:$0xff] }
 0x301   : > { %v1280_v35 = vmul.f32 0.5, %v4598_v48  ;;  %v1278_v58 = vmul.f32 0.5, %v5949_v57  ;;  %v5057_v63 = vadd.f32 %v5954_v8, %v4266_v60  ;;  %v2069_v46 = vmul.f32 %v1969_v20, %v1269_v33  ;;  %v5961_v33 = vld [vmem:[#allocation44_spill] sm:$0xff]  ;;  %v5965_v8 = vld [vmem:[#allocation67_spill] sm:$0xff] }
 0x302   : > { %v2155_v52 = vpack.c.bf16 %v2071_v10, %v2067_v29  ;;  %v2073_v9 = vmul.f32 %v1973_v47, %v1273_v13  ;;  %3408 = vtanh.f32 %v1782_v12  ;;  %v1282_v42 = vmul.f32 0.5, %v5951_v53  ;;  %v5962_v12 = vld [vmem:[#allocation58_spill] sm:$0xff]  ;;  %v5964_v47 = vld [vmem:[#allocation57_spill] sm:$0xff] }
 0x303   : > { %5955 = vst [vmem:[#allocation42_spill] sm:$0xff] %v5057_v63  ;;  %v1411_v14 = vmul.f32 0.044715, %v5050_v38  ;;  %v1675_v40 = vadd.f32 %v5957_v7, %v5956_v37  ;;  %v1679_v48 = vadd.f32 %v5959_v32, %v5958_v50  ;;  %v5066_v44 = vmul.f32 %v1508_v4, %v5009_v0  ;;  %v5966_v4 = vld [vmem:[#allocation16_spill] sm:$0xff]  ;;  %v5968_v32 = vld [vmem:[#allocation30_spill] sm:$0xff] }
 0x304   : > { %2515 = vmatmul.mubr.bf16.gmra.mrb[64].mxu0 %v2155_v52  ;;  %v2157_v57 = vpack.c.bf16 %v2073_v9, %v2069_v46  ;;  %v5069_v26 = vmul.f32 0.5, %v5956_v37  ;;  %v1677_v13 = vadd.f32 %v5962_v12, %v5961_v33  ;;  %v5074_v53 = vmul.f32 %v1510_v25, %v5021_v36  ;;  %v5967_v37 = vld [vmem:[#allocation23_spill] sm:$0xff] }
 0x305   : > { %5960 = vst [vmem:[#allocation54_spill] sm:$0xff] %v5066_v44  ;;  %v1413_v29 = vmul.f32 0.044715, %v5057_v63  ;;  %v1775_v20 = vmul.f32 0.7978846, %v1675_v40  ;;  %v1681_v52 = vadd.f32 %v5965_v8, %v5964_v47  ;;  %v5081_v9 = vadd.f32 %v5966_v4, %v4268_v39 }
 0x306   : > { %5963 = vst [vmem:[#allocation28_spill] sm:$0xff] %v5074_v53  ;;  %v1779_v10 = vmul.f32 0.7978846, %v1679_v48  ;;  %2651 = vmatmul.mubr.bf16.gmra.mrb[64].mxu1 %v2157_v57  ;;  %v1777_v46 = vmul.f32 0.7978846, %v1677_v13  ;;  %v5085_v7 = vadd.f32 %v5967_v37, %v4270_v18  ;;  %v1511_v25 = vmul.f32 %v1411_v14, %v5050_v38  ;;  %v5970_v48 = vld [vmem:[#allocation71_spill] sm:$0xff] }
 0x307   : > { %3410 = vtanh.f32 %v1775_v20  ;;  %v5090_v40 = vadd.f32 %v5968_v32, %v4264_v41  ;;  %v5094_v57 = vadd.f32 %v5970_v48, %v4266_v60  ;;  %v1781_v13 = vmul.f32 0.7978846, %v1681_v52 }
 0x308   : > { %v3403_v12 = vpop.eup %3402  ;;  %3412 = vtanh.f32 %v1779_v10  ;;  %v1412_v8 = vmul.f32 0.044715, %v5081_v9  ;;  %v1414_v4 = vmul.f32 0.044715, %v5085_v7  ;;  %v1513_v36 = vmul.f32 %v1413_v29, %v5057_v63 }
 0x309   : > { %5969 = vst [vmem:[#allocation47_spill] sm:$0xff] %v5090_v40  ;;  %5971 = vst [vmem:[#allocation38_spill] sm:$0xff] %v5094_v57  ;;  %v3405_v37 = vpop.eup %3404  ;;  %v1976_v5 = vadd.f32 1.0, %v3403_v12  ;;  %3414 = vtanh.f32 %v1777_v46  ;;  %v1415_v14 = vmul.f32 0.044715, %v5090_v40  ;;  %v1279_v48 = vmul.f32 0.5, %v5958_v50 }
 0x30a   : > { %v1417_v20 = vmul.f32 0.044715, %v5094_v57  ;;  %v3407_v32 = vpop.eup %3406  ;;  %v1980_v53 = vadd.f32 1.0, %v3405_v37  ;;  %3416 = vtanh.f32 %v1781_v13  ;;  %v1512_v44 = vmul.f32 %v1412_v8, %v5081_v9 }
 0x30b   : > { %v2076_v10 = vmul.f32 %v1976_v5, %v1276_v43  ;;  %v1978_v52 = vadd.f32 1.0, %v3407_v32  ;;  %v1514_v0 = vmul.f32 %v1414_v4, %v5085_v7  ;;  %v1515_v46 = vmul.f32 %v1415_v14, %v5090_v40  ;;  %v5977_v32 = vld [vmem:[#allocation17_spill] sm:$0xff] }
 0x30c   : > { %v3409_v59 = vpop.eup %3408  ;;  %v2080_v12 = vmul.f32 %v1980_v53, %v1280_v35  ;;  %v1517_v27 = vmul.f32 %v1417_v20, %v5094_v57  ;;  %v5108_v37 = vadd.f32 %v4808_v34, %v4268_v39  ;;  %v5111_v50 = vmul.f32 %v1511_v25, %v5050_v38  ;;  %v5974_v53 = vld [vmem:[#allocation74_spill] sm:$0xff]  ;;  %v5976_v20 = vld [vmem:[#allocation15_spill] sm:$0xff] }
 0x30d   : > { %v1982_v29 = vadd.f32 1.0, %v3409_v59  ;;  %v1277_v5 = vmul.f32 0.5, %v5961_v33  ;;  %v1281_v43 = vmul.f32 0.5, %v5964_v47  ;;  %v2078_v8 = vmul.f32 %v1978_v52, %v1278_v58  ;;  %v5975_v59 = vld [vmem:[#allocation62_spill] sm:$0xff] }
 0x30e   : > { %5972 = vst [vmem:[#allocation51_spill] sm:$0xff] %v5111_v50  ;;  %v2160_v13 = vpack.c.bf16 %v2080_v12, %v2076_v10  ;;  %v5116_v35 = vmul.f32 %v1513_v36, %v5057_v63  ;;  %v5120_v4 = vadd.f32 %v5974_v53, %v4270_v18  ;;  %v1416_v34 = vmul.f32 0.044715, %v5108_v37  ;;  %v5978_v50 = vld [vmem:[#allocation75_spill] sm:$0xff]  ;;  %v5983_v63 = vld [vmem:[#allocation29_spill] sm:$0xff] }
 0x30f   : > { %v2082_v14 = vmul.f32 %v1982_v29, %v1282_v42  ;;  %v1684_v25 = vadd.f32 %v5976_v20, %v5975_v59  ;;  %v1688_v33 = vadd.f32 %v5978_v50, %v5977_v32  ;;  %v5128_v47 = vmul.f32 %v1512_v44, %v5081_v9  ;;  %v5981_v53 = vld [vmem:[#allocation63_spill] sm:$0xff]  ;;  %v5982_v20 = vld [vmem:[#allocation18_spill] sm:$0xff] }
 0x310   : > { %5973 = vst [vmem:[#allocation31_spill] sm:$0xff] %v5116_v35  ;;  %2522 = vmatprep.mubr.bf16.mxu0 %v2160_v13  ;;  %v5131_v36 = vmul.f32 %v1514_v0, %v5085_v7  ;;  %v5134_v58 = vmul.f32 %v1515_v46, %v5090_v40  ;;  %v5137_v42 = vmul.f32 %v1517_v27, %v5094_v57  ;;  %v1418_v44 = vmul.f32 0.044715, %v5120_v4  ;;  %v5984_v46 = vld [vmem:[#allocation76_spill] sm:$0xff] }
 0x311   : > { %v3411_v10 = vpop.eup %3410  ;;  %v2162_v52 = vpack.c.bf16 %v2082_v14, %v2078_v8  ;;  %v1784_v12 = vmul.f32 0.7978846, %v1684_v25  ;;  %v1788_v29 = vmul.f32 0.7978846, %v1688_v33  ;;  %v1686_v50 = vadd.f32 %v5982_v20, %v5981_v53 }
 0x312   : > { %5979 = vst [vmem:[#allocation48_spill] sm:$0xff] %v5134_v58  ;;  %5980 = vst [vmem:[#allocation40_spill] sm:$0xff] %v5137_v42  ;;  %v3413_v13 = vpop.eup %3412  ;;  %v1975_v35 = vadd.f32 1.0, %v3411_v10  ;;  %v5143_v0 = vmul.f32 0.5, %v5975_v59  ;;  %v1690_v58 = vadd.f32 %v5984_v46, %v5983_v63  ;;  %v1516_v8 = vmul.f32 %v1416_v34, %v5108_v37  ;;  %v5985_v10 = vld [vmem:[#allocation77_spill] sm:$0xff]  ;;  %v5988_v46 = vld [vmem:[#allocation70_spill] sm:$0xff] }
 0x313   : > { %v3415_v40 = vpop.eup %3414  ;;  %2658 = vmatprep.mubr.bf16.mxu1 %v2162_v52  ;;  %v1979_v27 = vadd.f32 1.0, %v3413_v13  ;;  %3418 = vtanh.f32 %v1784_v12  ;;  %v1786_v14 = vmul.f32 0.7978846, %v1686_v50  ;;  %v5151_v42 = vadd.f32 %v5985_v10, %v4264_v41  ;;  %v5986_v12 = vld [vmem:[#allocation78_spill] sm:$0xff]  ;;  %v5987_v50 = vld [vmem:[#allocation60_spill] sm:$0xff] }
 0x314   : > { %v3417_v25 = vpop.eup %3416  ;;  %v2075_v33 = vmul.f32 %v1975_v35, %v5069_v26  ;;  %v1977_v20 = vadd.f32 1.0, %v3415_v40  ;;  %3420 = vtanh.f32 %v1788_v29  ;;  %v1790_v38 = vmul.f32 0.7978846, %v1690_v58 }
 0x315   : > { %v2079_v59 = vmul.f32 %v1979_v27, %v1279_v48  ;;  %v1981_v57 = vadd.f32 1.0, %v3417_v25  ;;  %3422 = vtanh.f32 %v1786_v14  ;;  %v1518_v52 = vmul.f32 %v1418_v44, %v5120_v4  ;;  %v5989_v27 = vld [vmem:[#allocation25_spill] sm:$0xff] }
 0x316   : > { %v1288_v13 = vmul.f32 0.5, %v5977_v32  ;;  %v5156_v34 = vmul.f32 0.5, %v5981_v53  ;;  %v5160_v26 = vadd.f32 %v5986_v12, %v4266_v60  ;;  %v2077_v35 = vmul.f32 %v1977_v20, %v1277_v5  ;;  %v5990_v32 = vld [vmem:[#allocation72_spill] sm:$0xff]  ;;  %v5991_v5 = vld [vmem:[#allocation61_spill] sm:$0xff] }
 0x317   : > { %v2159_v40 = vpack.c.bf16 %v2079_v59, %v2075_v33  ;;  %v2081_v29 = vmul.f32 %v1981_v57, %v1281_v43  ;;  %3424 = vtanh.f32 %v1790_v38  ;;  %v1419_v48 = vmul.f32 0.044715, %v5151_v42  ;;  %v5992_v57 = vld [vmem:[#allocation19_spill] sm:$0xff]  ;;  %v5993_v12 = vld [vmem:[#allocation32_spill] sm:$0xff] }
 0x318   : > { %v1421_v58 = vmul.f32 0.044715, %v5160_v26  ;;  %v1683_v44 = vadd.f32 %v5988_v46, %v5987_v50  ;;  %v1687_v14 = vadd.f32 %v5990_v32, %v5989_v27  ;;  %v5169_v25 = vmul.f32 %v1516_v8, %v5108_v37  ;;  %v5995_v8 = vld [vmem:[#allocation79_spill] sm:$0xff] }
 0x319   : > { %2523 = vmatmul.mubr.bf16.gmra.mrb[68].mxu0 %v2159_v40  ;;  %v2161_v53 = vpack.c.bf16 %v2081_v29, %v2077_v35  ;;  %v1290_v33 = vmul.f32 0.5, %v5983_v63  ;;  %v1685_v38 = vadd.f32 %v5992_v57, %v5991_v5  ;;  %v5175_v43 = vmul.f32 %v1518_v52, %v5120_v4  ;;  %v5994_v40 = vld [vmem:[#allocation73_spill] sm:$0xff]  ;;  %v5996_v63 = vld [vmem:[#allocation80_spill] sm:$0xff] }
 0x31a   : > { %v5178_v20 = vmul.f32 0.5, %v5987_v50  ;;  %v1783_v10 = vmul.f32 0.7978846, %v1683_v44  ;;  %v1787_v59 = vmul.f32 0.7978846, %v1687_v14  ;;  %v1689_v35 = vadd.f32 %v5994_v40, %v5993_v12 }
 0x31b   : > { %2659 = vmatmul.mubr.bf16.gmra.mrb[68].mxu1 %v2161_v53  ;;  %v1785_v29 = vmul.f32 0.7978846, %v1685_v38  ;;  %v5184_v46 = vadd.f32 %v5995_v8, %v4268_v39  ;;  %v5188_v32 = vadd.f32 %v5996_v63, %v4270_v18  ;;  %v1519_v52 = vmul.f32 %v1419_v48, %v5151_v42 }
 0x31c   : > { %v1521_v50 = vmul.f32 %v1421_v58, %v5160_v26  ;;  %v5193_v44 = vmul.f32 0.5, %v5989_v27  ;;  %3426 = vtanh.f32 %v1783_v10  ;;  %v5195_v14 = vpop.f32.mrb[40].mxu0  ;;  %v5197_v53 = vpop.f32.mrb[40].mxu1  ;;  %v1789_v38 = vmul.f32 0.7978846, %v1689_v35 }
 0x31d   : > { %5997 = vst [vmem:[#allocation52_spill] sm:$0xff] %v5195_v14  ;;  %5998 = vst [vmem:[#allocation46_spill] sm:$0xff] %v5197_v53  ;;  %v3419_v57 = vpop.eup %3418  ;;  %3428 = vtanh.f32 %v1787_v59  ;;  %v1420_v40 = vmul.f32 0.044715, %v5184_v46  ;;  %v1422_v8 = vmul.f32 0.044715, %v5188_v32  ;;  %v1692_v48 = vadd.f32 %v4863_v51, %v4778_v6 }
 0x31e   : > { %v3421_v63 = vpop.eup %3420  ;;  %v1984_v18 = vadd.f32 1.0, %v3419_v57  ;;  %3430 = vtanh.f32 %v1785_v29  ;;  %v1696_v58 = vadd.f32 %v4923_v49, %v4882_v56  ;;  %v5205_v27 = vpop.f32.mrb[41].mxu0  ;;  %v5210_v35 = vmul.f32 0.5, %v5991_v5 }
 0x31f   : > { %5999 = vst [vmem:[#allocation64_spill] sm:$0xff] %v5205_v27  ;;  %v5207_v10 = vpop.f32.mrb[41].mxu1  ;;  %v3423_v39 = vpop.eup %3422  ;;  %v1988_v59 = vadd.f32 1.0, %v3421_v63  ;;  %v5213_v53 = vmul.f32 0.5, %v5993_v12  ;;  %3432 = vtanh.f32 %v1789_v38  ;;  %v5220_v49 = vmul.f32 %v1519_v52, %v5151_v42 }
 0x320   : > { %6000 = vst [vmem:[#allocation68_spill] sm:$0xff] %v5207_v10  ;;  %v5215_v29 = vpop.f32.mrb[42].mxu0  ;;  %v5217_v57 = vpop.f32.mrb[42].mxu1  ;;  %v1986_v51 = vadd.f32 1.0, %v3423_v39  ;;  %v1792_v27 = vmul.f32 0.7978846, %v1692_v48  ;;  %v2084_v5 = vmul.f32 %v1984_v18, %v5143_v0  ;;  %v5226_v12 = vmul.f32 %v1521_v50, %v5160_v26 }
 0x321   : > { %6001 = vst [vmem:[#allocation49_spill] sm:$0xff] %v5215_v29  ;;  %6002 = vst [vmem:[#allocation65_spill] sm:$0xff] %v5217_v57  ;;  %v1796_v60 = vmul.f32 0.7978846, %v1696_v58  ;;  %v5222_v10 = vpop.f32.mrb[43].mxu0  ;;  %v3425_v63 = vpop.eup %3424  ;;  %v2088_v14 = vmul.f32 %v1988_v59, %v1288_v13  ;;  %v1520_v38 = vmul.f32 %v1420_v40, %v5184_v46  ;;  %v1522_v39 = vmul.f32 %v1422_v8, %v5188_v32 }
 0x322   : > { %v5229_v29 = vpop.f32.mrb[43].mxu1  ;;  %v1990_v57 = vadd.f32 1.0, %v3425_v63  ;;  %v5233_v52 = vmul.f32 0.5, %v4778_v6  ;;  %3434 = vtanh.f32 %v1792_v27  ;;  %v1694_v18 = vadd.f32 %v4866_v11, %v4782_v28 }
 0x323   : > { %v2164_v48 = vpack.c.bf16 %v2088_v14, %v2084_v5  ;;  %3436 = vtanh.f32 %v1796_v60  ;;  %v1698_v0 = vadd.f32 %v4932_v31, %v4886_v22  ;;  %v2086_v13 = vmul.f32 %v1986_v51, %v5156_v34 }
 0x324   : > { %v2090_v50 = vmul.f32 %v1990_v57, %v1290_v33  ;;  %v5241_v40 = vmul.f32 0.5, %v4882_v56  ;;  %v1691_v8 = vadd.f32 %v4853_v62, %v4770_v54  ;;  %v5245_v6 = vpop.f32.mrb[44].mxu0  ;;  %v5247_v58 = vpop.f32.mrb[44].mxu1  ;;  %v5250_v60 = vmul.f32 %v1520_v38, %v5184_v46 }
 0x325   : > { %2530 = vmatprep.mubr.bf16.mxu0 %v2164_v48  ;;  %v1794_v11 = vmul.f32 0.7978846, %v1694_v18  ;;  %v1798_v14 = vmul.f32 0.7978846, %v1698_v0  ;;  %v1695_v31 = vadd.f32 %v4908_v1, %v4849_v55  ;;  %v5254_v34 = vpop.f32.mrb[45].mxu0  ;;  %v5257_v27 = vmul.f32 %v1522_v39, %v5188_v32  ;;  %v5261_v57 = vpop.f32.mrb[45].mxu1 }
 0x326   : > { %v3427_v56 = vpop.eup %3426  ;;  %v2166_v33 = vpack.c.bf16 %v2090_v50, %v2086_v13  ;;  %v1791_v62 = vmul.f32 0.7978846, %v1691_v8  ;;  %v1693_v59 = vadd.f32 %v4860_v16, %v4774_v3  ;;  %v5263_v51 = vpop.f32.mrb[46].mxu0  ;;  %v1697_v1 = vadd.f32 %v4919_v15, %v4857_v61 }
 0x327   : > { %v3429_v63 = vpop.eup %3428  ;;  %v1983_v5 = vadd.f32 1.0, %v3427_v56  ;;  %3438 = vtanh.f32 %v1794_v11  ;;  %v1795_v38 = vmul.f32 0.7978846, %v1695_v31  ;;  %v5267_v48 = vpop.f32.mrb[46].mxu1  ;;  %v5272_v16 = vmul.f32 0.5, %v4782_v28 }
 0x328   : > { %v5269_v18 = vpop.f32.mrb[47].mxu0  ;;  %v3431_v39 = vpop.eup %3430  ;;  %2666 = vmatprep.mubr.bf16.mxu1 %v2166_v33  ;;  %v1987_v0 = vadd.f32 1.0, %v3429_v63  ;;  %3440 = vtanh.f32 %v1798_v14  ;;  %v1793_v13 = vmul.f32 0.7978846, %v1693_v59  ;;  %v5277_v31 = vmul.f32 0.5, %v4886_v22 }
 0x329   : > { %6003 = vst [vmem:[#allocation59_spill] sm:$0xff] %v5269_v18  ;;  %v5274_v50 = vpop.f32.mrb[47].mxu1  ;;  %v3433_v8 = vpop.eup %3432  ;;  %v1985_v11 = vadd.f32 1.0, %v3431_v39  ;;  %3442 = vtanh.f32 %v1791_v62  ;;  %v1797_v15 = vmul.f32 0.7978846, %v1697_v1  ;;  %v2083_v56 = vmul.f32 %v1983_v5, %v5178_v20 }
 0x32a   : > { %v2087_v18 = vmul.f32 %v1987_v0, %v5193_v44  ;;  %v1989_v33 = vadd.f32 1.0, %v3433_v8  ;;  %3444 = vtanh.f32 %v1795_v38  ;;  %v5282_v28 = vmul.f32 0.5, %v4770_v54 }
 0x32b   : > { %3446 = vtanh.f32 %v1793_v13  ;;  %v1700_v14 = vadd.f32 %v4954_v45, %v4903_v30  ;;  %v1704_v59 = vadd.f32 %v5029_v2, %v4982_v17  ;;  %v2085_v62 = vmul.f32 %v1985_v11, %v5210_v35 }
 0x32c   : > { %v3435_v22 = vpop.eup %3434  ;;  %v2163_v63 = vpack.c.bf16 %v2087_v18, %v2083_v56  ;;  %v2089_v20 = vmul.f32 %v1989_v33, %v5213_v53  ;;  %3448 = vtanh.f32 %v1797_v15  ;;  %v5290_v44 = vpop.f32.mrb[48].mxu0  ;;  %v1295_v1 = vmul.f32 0.5, %v4849_v55 }
 0x32d   : > { %v5292_v5 = vpop.f32.mrb[48].mxu1  ;;  %v3437_v54 = vpop.eup %3436  ;;  %v1992_v38 = vadd.f32 1.0, %v3435_v22  ;;  %v1800_v39 = vmul.f32 0.7978846, %v1700_v14  ;;  %v1804_v45 = vmul.f32 0.7978846, %v1704_v59  ;;  %v1702_v18 = vadd.f32 %v4975_v19, %v4927_v24 }
 0x32e   : > { %2531 = vmatmul.mubr.bf16.gmra.mrb[72].mxu0 %v2163_v63  ;;  %v2165_v0 = vpack.c.bf16 %v2089_v20, %v2085_v62  ;;  %v1996_v2 = vadd.f32 1.0, %v3437_v54  ;;  %v1706_v53 = vadd.f32 %v5032_v21, %v4986_v23  ;;  %v5299_v35 = vpop.f32.mrb[49].mxu0  ;;  %v5301_v13 = vpop.f32.mrb[49].mxu1  ;;  %v1293_v11 = vmul.f32 0.5, %v4774_v3  ;;  %v6006_v62 = vld [vmem:[#allocation24_spill] sm:$0xff]  ;;  %v6007_v3 = vld [vmem:[#allocation26_spill] sm:$0xff] }
 0x32f   : > { %6004 = vst [vmem:[#allocation69_spill] sm:$0xff] %v5299_v35  ;;  %6005 = vst [vmem:[#allocation22_spill] sm:$0xff] %v5301_v13  ;;  %v2092_v8 = vmul.f32 %v1992_v38, %v5233_v52  ;;  %v1297_v55 = vmul.f32 0.5, %v4857_v61  ;;  %3450 = vtanh.f32 %v1800_v39  ;;  %v1079_v15 = vpop.f32.mrb[50].mxu0  ;;  %v1240_v56 = vpop.f32.mrb[50].mxu1  ;;  %v1300_v63 = vmul.f32 0.5, %v4903_v30 }
 0x330   : > { %2667 = vmatmul.mubr.bf16.gmra.mrb[72].mxu1 %v2165_v0  ;;  %v2096_v33 = vmul.f32 %v1996_v2, %v5241_v40  ;;  %3452 = vtanh.f32 %v1804_v45  ;;  %v1802_v19 = vmul.f32 0.7978846, %v1702_v18  ;;  %v1806_v14 = vmul.f32 0.7978846, %v1706_v53  ;;  %v1080_v21 = vpop.f32.mrb[51].mxu0  ;;  %v1241_v59 = vpop.f32.mrb[51].mxu1 }
 0x331   : > { %v3439_v22 = vpop.eup %3438  ;;  %v1304_v52 = vmul.f32 0.5, %v4982_v17  ;;  %v1699_v20 = vadd.f32 %v6007_v3, %v6006_v62  ;;  %v6008_v61 = vld [vmem:[#allocation20_spill] sm:$0xff]  ;;  %v6009_v54 = vld [vmem:[#allocation34_spill] sm:$0xff]  ;;  %v6010_v40 = vld [vmem:[#allocation35_spill] sm:$0xff]  ;;  %v1302_v59 = vmul.f32 0.5, %v4927_v24 }
 0x332   : > { %v1703_v38 = vadd.f32 %v6009_v54, %v6008_v61  ;;  %v3441_v39 = vpop.eup %3440  ;;  %v2168_v0 = vpack.c.bf16 %v2096_v33, %v2092_v8  ;;  %v1994_v15 = vadd.f32 1.0, %v3439_v22  ;;  %3454 = vtanh.f32 %v1802_v19  ;;  %v6011_v45 = vld [vmem:[#allocation36_spill] sm:$0xff]  ;;  %v6012_v3 = vld [vmem:[#allocation33_spill] sm:$0xff] }
 0x333   : > { %v1701_v2 = vadd.f32 %v6011_v45, %v6010_v40  ;;  %v3443_v18 = vpop.eup %3442  ;;  %v1998_v53 = vadd.f32 1.0, %v3441_v39  ;;  %3456 = vtanh.f32 %v1806_v14  ;;  %v1799_v56 = vmul.f32 0.7978846, %v1699_v20  ;;  %v6013_v13 = vld [vmem:[#allocation45_spill] sm:$0xff] }
 0x334   : > { %v1803_v30 = vmul.f32 0.7978846, %v1703_v38  ;;  %v3445_v21 = vpop.eup %3444  ;;  %2538 = vmatprep.mubr.bf16.mxu0 %v2168_v0  ;;  %v1991_v17 = vadd.f32 1.0, %v3443_v18  ;;  %v1705_v54 = vadd.f32 %v6013_v13, %v6012_v3  ;;  %v2094_v33 = vmul.f32 %v1994_v15, %v5272_v16  ;;  %v6014_v16 = vld [vmem:[#allocation21_spill] sm:$0xff]  ;;  %v6015_v15 = vld [vmem:[#allocation54_spill] sm:$0xff] }
 0x335   : > { %v1801_v35 = vmul.f32 0.7978846, %v1701_v2  ;;  %v3447_v8 = vpop.eup %3446  ;;  %v2098_v19 = vmul.f32 %v1998_v53, %v5277_v31  ;;  %v1995_v22 = vadd.f32 1.0, %v3445_v21  ;;  %3458 = vtanh.f32 %v1799_v56 }
 0x336   : > { %v3449_v39 = vpop.eup %3448  ;;  %v2091_v14 = vmul.f32 %v1991_v17, %v5282_v28  ;;  %v1993_v20 = vadd.f32 1.0, %v3447_v8  ;;  %3460 = vtanh.f32 %v1803_v30  ;;  %v1805_v38 = vmul.f32 0.7978846, %v1705_v54  ;;  %v6017_v54 = vld [vmem:[#allocation28_spill] sm:$0xff] }
 0x337   : > { %v2170_v0 = vpack.c.bf16 %v2098_v19, %v2094_v33  ;;  %v2095_v45 = vmul.f32 %v1995_v22, %v1295_v1  ;;  %v1997_v24 = vadd.f32 1.0, %v3449_v39  ;;  %3462 = vtanh.f32 %v1801_v35 }
 0x338   : > { %v1306_v13 = vmul.f32 0.5, %v4986_v23  ;;  %v1299_v2 = vmul.f32 0.5, %v6006_v62  ;;  %3464 = vtanh.f32 %v1805_v38  ;;  %v1708_v31 = vadd.f32 %v6015_v15, %v6014_v16  ;;  %v6016_v23 = vld [vmem:[#allocation41_spill] sm:$0xff] }
 0x339   : > { %v3451_v18 = vpop.eup %3450  ;;  %2674 = vmatprep.mubr.bf16.mxu1 %v2170_v0  ;;  %v2167_v53 = vpack.c.bf16 %v2095_v45, %v2091_v14  ;;  %v2093_v56 = vmul.f32 %v1993_v20, %v1293_v11  ;;  %v2097_v28 = vmul.f32 %v1997_v24, %v1297_v55  ;;  %v1712_v30 = vadd.f32 %v5128_v47, %v5081_v9  ;;  %v6018_v24 = vld [vmem:[#allocation27_spill] sm:$0xff]  ;;  %v6019_v15 = vld [vmem:[#allocation53_spill] sm:$0xff] }
 0x33a   : > { %v3453_v21 = vpop.eup %3452  ;;  %v2000_v1 = vadd.f32 1.0, %v3451_v18  ;;  %v1303_v35 = vmul.f32 0.5, %v6008_v61  ;;  %v1808_v17 = vmul.f32 0.7978846, %v1708_v31  ;;  %v1710_v62 = vadd.f32 %v6017_v54, %v6016_v23 }
 0x33b   : > { %2539 = vmatmul.mubr.bf16.gmra.mrb[76].mxu0 %v2167_v53  ;;  %v2169_v8 = vpack.c.bf16 %v2097_v28, %v2093_v56  ;;  %v2004_v33 = vadd.f32 1.0, %v3453_v21  ;;  %v1812_v19 = vmul.f32 0.7978846, %v1712_v30  ;;  %v1714_v22 = vadd.f32 %v5131_v36, %v5085_v7  ;;  %v6021_v53 = vld [vmem:[#allocation51_spill] sm:$0xff] }
 0x33c   : > { %v3455_v11 = vpop.eup %3454  ;;  %v2100_v55 = vmul.f32 %v2000_v1, %v1300_v63  ;;  %v1301_v39 = vmul.f32 0.5, %v6010_v40  ;;  %3466 = vtanh.f32 %v1808_v17  ;;  %v1810_v47 = vmul.f32 0.7978846, %v1710_v62  ;;  %v6020_v40 = vld [vmem:[#allocation50_spill] sm:$0xff] }
 0x33d   : > { %v3457_v14 = vpop.eup %3456  ;;  %2675 = vmatmul.mubr.bf16.gmra.mrb[76].mxu1 %v2169_v8  ;;  %v2104_v61 = vmul.f32 %v2004_v33, %v1304_v52  ;;  %v2002_v20 = vadd.f32 1.0, %v3455_v11  ;;  %3468 = vtanh.f32 %v1812_v19  ;;  %v1814_v38 = vmul.f32 0.7978846, %v1714_v22  ;;  %v6022_v8 = vld [vmem:[#allocation39_spill] sm:$0xff]  ;;  %v6023_v33 = vld [vmem:[#allocation37_spill] sm:$0xff] }
 0x33e   : > { %v2006_v0 = vadd.f32 1.0, %v3457_v14  ;;  %v1305_v45 = vmul.f32 0.5, %v6012_v3  ;;  %3470 = vtanh.f32 %v1810_v47  ;;  %v1707_v31 = vadd.f32 %v6019_v15, %v6018_v24 }
 0x33f   : > { %v3459_v36 = vpop.eup %3458  ;;  %v2172_v18 = vpack.c.bf16 %v2104_v61, %v2100_v55  ;;  %v1308_v63 = vmul.f32 0.5, %v6014_v16  ;;  %3472 = vtanh.f32 %v1814_v38  ;;  %v1711_v56 = vadd.f32 %v6021_v53, %v6020_v40 }
 0x340   : > { %v3461_v28 = vpop.eup %3460  ;;  %v2102_v52 = vmul.f32 %v2002_v20, %v1302_v59  ;;  %v2106_v30 = vmul.f32 %v2006_v0, %v1306_v13  ;;  %v1999_v21 = vadd.f32 1.0, %v3459_v36  ;;  %v1807_v1 = vmul.f32 0.7978846, %v1707_v31  ;;  %v6024_v59 = vld [vmem:[#allocation42_spill] sm:$0xff]  ;;  %v6025_v13 = vld [vmem:[#allocation31_spill] sm:$0xff] }
 0x341   : > { %v3463_v17 = vpop.eup %3462  ;;  %2546 = vmatprep.mubr.bf16.mxu0 %v2172_v18  ;;  %v2003_v3 = vadd.f32 1.0, %v3461_v28  ;;  %v1312_v54 = vmul.f32 0.5, %v5081_v9  ;;  %v1811_v62 = vmul.f32 0.7978846, %v1711_v56  ;;  %v1709_v19 = vadd.f32 %v6023_v33, %v6022_v8 }
 0x342   : > { %v3465_v22 = vpop.eup %3464  ;;  %v2174_v16 = vpack.c.bf16 %v2106_v30, %v2102_v52  ;;  %v2099_v11 = vmul.f32 %v1999_v21, %v1299_v2  ;;  %v2001_v55 = vadd.f32 1.0, %v3463_v17  ;;  %3474 = vtanh.f32 %v1807_v1 }
 0x343   : > { %v2103_v47 = vmul.f32 %v2003_v3, %v1303_v35  ;;  %v2005_v14 = vadd.f32 1.0, %v3465_v22  ;;  %3476 = vtanh.f32 %v1811_v62  ;;  %v1713_v61 = vadd.f32 %v6025_v13, %v6024_v59 }
 0x344   : > { %2682 = vmatprep.mubr.bf16.mxu1 %v2174_v16  ;;  %v2101_v20 = vmul.f32 %v2001_v55, %v1301_v39  ;;  %v1310_v38 = vmul.f32 0.5, %v6016_v23  ;;  %v1314_v9 = vmul.f32 0.5, %v5085_v7  ;;  %v1809_v0 = vmul.f32 0.7978846, %v1709_v19  ;;  %v6026_v16 = vld [vmem:[#allocation47_spill] sm:$0xff] }
 0x345   : > { %v2171_v15 = vpack.c.bf16 %v2103_v47, %v2099_v11  ;;  %v2105_v31 = vmul.f32 %v2005_v14, %v1305_v45  ;;  %v1813_v36 = vmul.f32 0.7978846, %v1713_v61  ;;  %v1716_v2 = vadd.f32 %v5169_v25, %v5108_v37 }
 0x346   : > { %v3467_v18 = vpop.eup %3466  ;;  %v1307_v35 = vmul.f32 0.5, %v6018_v24  ;;  %v1311_v53 = vmul.f32 0.5, %v6020_v40  ;;  %3478 = vtanh.f32 %v1809_v0  ;;  %v1720_v39 = vadd.f32 %v5250_v60, %v5184_v46 }
 0x347   : > { %v3469_v56 = vpop.eup %3468  ;;  %2547 = vmatmul.mubr.bf16.gmra.mrb[80].mxu0 %v2171_v15  ;;  %v2173_v23 = vpack.c.bf16 %v2105_v31, %v2101_v20  ;;  %v2008_v7 = vadd.f32 1.0, %v3467_v18  ;;  %3480 = vtanh.f32 %v1813_v36  ;;  %v1816_v28 = vmul.f32 0.7978846, %v1716_v2  ;;  %v6028_v15 = vld [vmem:[#allocation38_spill] sm:$0xff] }
 0x348   : > { %v3471_v45 = vpop.eup %3470  ;;  %v2012_v52 = vadd.f32 1.0, %v3469_v56  ;;  %v1820_v30 = vmul.f32 0.7978846, %v1720_v39  ;;  %v1718_v25 = vadd.f32 %v5175_v43, %v5120_v4  ;;  %v1722_v24 = vadd.f32 %v5257_v27, %v5188_v32  ;;  %v6027_v43 = vld [vmem:[#allocation48_spill] sm:$0xff]  ;;  %v6032_v56 = vld [vmem:[#allocation46_spill] sm:$0xff] }
 0x349   : > { %v3473_v40 = vpop.eup %3472  ;;  %2683 = vmatmul.mubr.bf16.gmra.mrb[80].mxu1 %v2173_v23  ;;  %v2108_v21 = vmul.f32 %v2008_v7, %v1308_v63  ;;  %v2010_v1 = vadd.f32 1.0, %v3471_v45  ;;  %v1309_v60 = vmul.f32 0.5, %v6022_v8  ;;  %3482 = vtanh.f32 %v1816_v28  ;;  %v6031_v39 = vld [vmem:[#allocation12_spill] sm:$0xff]  ;;  %v6033_v45 = vld [vmem:[#allocation13_spill] sm:$0xff] }
 0x34a   : > { %v2112_v17 = vmul.f32 %v2012_v52, %v1312_v54  ;;  %v2014_v3 = vadd.f32 1.0, %v3473_v40  ;;  %3484 = vtanh.f32 %v1820_v30  ;;  %v1818_v62 = vmul.f32 0.7978846, %v1718_v25  ;;  %v6034_v52 = vld [vmem:[#allocation64_spill] sm:$0xff] }
 0x34b   : > { %v2110_v33 = vmul.f32 %v2010_v1, %v1310_v38  ;;  %v1313_v19 = vmul.f32 0.5, %v6024_v59  ;;  %v1822_v22 = vmul.f32 0.7978846, %v1722_v24  ;;  %v1715_v11 = vadd.f32 %v6027_v43, %v6026_v16 }
 0x34c   : > { %v3475_v55 = vpop.eup %3474  ;;  %v2176_v27 = vpack.c.bf16 %v2112_v17, %v2108_v21  ;;  %v2114_v47 = vmul.f32 %v2014_v3, %v1314_v9  ;;  %3486 = vtanh.f32 %v1818_v62  ;;  %v1719_v63 = vadd.f32 %v5220_v49, %v5151_v42  ;;  %v6029_v9 = vld [vmem:[#allocation40_spill] sm:$0xff]  ;;  %v6035_v17 = vld [vmem:[#allocation14_spill] sm:$0xff] }
 0x34d   : > { %v3477_v8 = vpop.eup %3476  ;;  %v2007_v14 = vadd.f32 1.0, %v3475_v55  ;;  %v1316_v54 = vmul.f32 0.5, %v5108_v37  ;;  %3488 = vtanh.f32 %v1822_v22  ;;  %v1815_v13 = vmul.f32 0.7978846, %v1715_v11  ;;  %v6030_v37 = vld [vmem:[#allocation52_spill] sm:$0xff] }
 0x34e   : > { %2554 = vmatprep.mubr.bf16.mxu0 %v2176_v27  ;;  %v2178_v61 = vpack.c.bf16 %v2114_v47, %v2110_v33  ;;  %v2011_v59 = vadd.f32 1.0, %v3477_v8  ;;  %v1320_v20 = vmul.f32 0.5, %v5184_v46  ;;  %v1819_v38 = vmul.f32 0.7978846, %v1719_v63  ;;  %v6036_v3 = vld [vmem:[#allocation68_spill] sm:$0xff] }
 0x34f   : > { %v2107_v0 = vmul.f32 %v2007_v14, %v1307_v35  ;;  %3490 = vtanh.f32 %v1815_v13  ;;  %v1717_v31 = vadd.f32 %v6029_v9, %v6028_v15  ;;  %v1721_v49 = vadd.f32 %v5226_v12, %v5160_v26  ;;  %v6037_v13 = vld [vmem:[#allocation49_spill] sm:$0xff] }
 0x350   : > { %v3479_v36 = vpop.eup %3478  ;;  %2690 = vmatprep.mubr.bf16.mxu1 %v2178_v61  ;;  %v2111_v2 = vmul.f32 %v2011_v59, %v1311_v53  ;;  %3492 = vtanh.f32 %v1819_v38  ;;  %v5370_v18 = vadd.f32 %v6030_v37, %v4264_v41  ;;  %v5374_v46 = vadd.f32 %v6032_v56, %v6031_v39 }
 0x351   : > { %v3481_v35 = vpop.eup %3480  ;;  %v2009_v23 = vadd.f32 1.0, %v3479_v36  ;;  %v1817_v7 = vmul.f32 0.7978846, %v1717_v31  ;;  %v1821_v28 = vmul.f32 0.7978846, %v1721_v49  ;;  %v5378_v30 = vadd.f32 %v6034_v52, %v6033_v45 }
 0x352   : > { %v2175_v12 = vpack.c.bf16 %v2111_v2, %v2107_v0  ;;  %v2013_v25 = vadd.f32 1.0, %v3481_v35  ;;  %v1318_v53 = vmul.f32 0.5, %v5120_v4  ;;  %v1423_v24 = vmul.f32 0.044715, %v5370_v18 }
 0x353   : > { %v3483_v40 = vpop.eup %3482  ;;  %v1322_v21 = vmul.f32 0.5, %v5188_v32  ;;  %3494 = vtanh.f32 %v1817_v7  ;;  %v1425_v1 = vmul.f32 0.044715, %v5374_v46  ;;  %v5386_v62 = vadd.f32 %v6036_v3, %v6035_v17 }
 0x354   : > { %v3485_v33 = vpop.eup %3484  ;;  %2555 = vmatmul.mubr.bf16.gmra.mrb[84].mxu0 %v2175_v12  ;;  %v2109_v22 = vmul.f32 %v2009_v23, %v1309_v60  ;;  %v2113_v43 = vmul.f32 %v2013_v25, %v1313_v19  ;;  %v2016_v11 = vadd.f32 1.0, %v3483_v40  ;;  %3496 = vtanh.f32 %v1821_v28 }
 0x355   : > { %v2020_v55 = vadd.f32 1.0, %v3485_v33  ;;  %v1315_v4 = vmul.f32 0.5, %v6026_v16  ;;  %v1319_v27 = vmul.f32 0.5, %v5151_v42  ;;  %v1424_v32 = vmul.f32 0.044715, %v5378_v30 }
 0x356   : > { %v3487_v47 = vpop.eup %3486  ;;  %v2177_v63 = vpack.c.bf16 %v2113_v43, %v2109_v22  ;;  %v1317_v8 = vmul.f32 0.5, %v6028_v15  ;;  %v1523_v14 = vmul.f32 %v1423_v24, %v5370_v18  ;;  %v5395_v61 = vadd.f32 %v6037_v13, %v4264_v41  ;;  %v6038_v15 = vld [vmem:[#allocation65_spill] sm:$0xff] }
 0x357   : > { %v3489_v60 = vpop.eup %3488  ;;  %v2116_v19 = vmul.f32 %v2016_v11, %v1316_v54  ;;  %v2120_v59 = vmul.f32 %v2020_v55, %v1320_v20  ;;  %v2018_v38 = vadd.f32 1.0, %v3487_v47  ;;  %v1426_v16 = vmul.f32 0.044715, %v5386_v62 }
 0x358   : > { %2691 = vmatmul.mubr.bf16.gmra.mrb[84].mxu1 %v2177_v63  ;;  %v2022_v42 = vadd.f32 1.0, %v3489_v60  ;;  %v1525_v0 = vmul.f32 %v1425_v1, %v5374_v46  ;;  %v1427_v9 = vmul.f32 0.044715, %v5395_v61  ;;  %v5402_v31 = vadd.f32 %v6038_v15, %v6031_v39 }
 0x359   : > { %v3491_v49 = vpop.eup %3490  ;;  %v2180_v36 = vpack.c.bf16 %v2120_v59, %v2116_v19  ;;  %v1321_v2 = vmul.f32 0.5, %v5160_v26  ;;  %v1524_v54 = vmul.f32 %v1424_v32, %v5378_v30  ;;  %v5408_v20 = vadd.f32 %v5222_v10, %v6033_v45 }
 0x35a   : > { %v3493_v37 = vpop.eup %3492  ;;  %v2118_v56 = vmul.f32 %v2018_v38, %v1318_v53  ;;  %v2122_v35 = vmul.f32 %v2022_v42, %v1322_v21  ;;  %v2015_v23 = vadd.f32 1.0, %v3491_v49  ;;  %v5412_v7 = vadd.f32 %v5229_v29, %v6035_v17 }
 0x35b   : > { %2562 = vmatprep.mubr.bf16.mxu0 %v2180_v36  ;;  %v2019_v28 = vadd.f32 1.0, %v3493_v37  ;;  %v5415_v52 = vmul.f32 %v1523_v14, %v5370_v18  ;;  %v1526_v26 = vmul.f32 %v1426_v16, %v5386_v62  ;;  %v5420_v12 = vadd.f32 %v5245_v6, %v4264_v41  ;;  %v6039_v16 = vld [vmem:[#allocation59_spill] sm:$0xff] }
 0x35c   : > { %v2182_v10 = vpack.c.bf16 %v2122_v35, %v2118_v56  ;;  %v5423_v25 = vmul.f32 %v1525_v0, %v5374_v46  ;;  %v1527_v53 = vmul.f32 %v1427_v9, %v5395_v61  ;;  %v1429_v29 = vmul.f32 0.044715, %v5402_v31 }
 0x35d   : > { %v3495_v24 = vpop.eup %3494  ;;  %v2115_v40 = vmul.f32 %v2015_v23, %v1315_v4  ;;  %v2119_v21 = vmul.f32 %v2019_v28, %v1319_v27  ;;  %v1624_v1 = vmul.f32 %v1524_v54, %v5378_v30  ;;  %v1428_v3 = vmul.f32 0.044715, %v5408_v20 }
 0x35e   : > { %v3497_v33 = vpop.eup %3496  ;;  %2698 = vmatprep.mubr.bf16.mxu1 %v2182_v10  ;;  %v2017_v22 = vadd.f32 1.0, %v3495_v24  ;;  %v1430_v6 = vmul.f32 0.044715, %v5412_v7  ;;  %v5432_v43 = vadd.f32 %v5247_v58, %v6031_v39  ;;  %v5436_v11 = vadd.f32 %v5254_v34, %v6033_v45 }
 0x35f   : > { %v2179_v55 = vpack.c.bf16 %v2119_v21, %v2115_v40  ;;  %v2021_v4 = vadd.f32 1.0, %v3497_v33  ;;  %v1626_v27 = vmul.f32 %v1526_v26, %v5386_v62  ;;  %v1431_v32 = vmul.f32 0.044715, %v5420_v12  ;;  %v6041_v33 = vld [vmem:[#allocation22_spill] sm:$0xff] }
 0x360   : > { %v2117_v47 = vmul.f32 %v2017_v22, %v1317_v8  ;;  %v5441_v63 = vmul.f32 %v1527_v53, %v5395_v61  ;;  %v1529_v14 = vmul.f32 %v1429_v29, %v5402_v31  ;;  %v1433_v13 = vmul.f32 0.044715, %v5432_v43  ;;  %v6040_v29 = vld [vmem:[#allocation69_spill] sm:$0xff] }
 0x361   : > { %2563 = vmatmul.mubr.bf16.gmra.mrb[88].mxu0 %v2179_v55  ;;  %v2121_v58 = vmul.f32 %v2021_v4, %v1321_v2  ;;  %v1432_v60 = vmul.f32 0.044715, %v5436_v11  ;;  %v5448_v34 = vadd.f32 %v5261_v57, %v6035_v17  ;;  %v5452_v19 = vadd.f32 %v5263_v51, %v4264_v41 }
 0x362   : > { %v1528_v8 = vmul.f32 %v1428_v3, %v5408_v20  ;;  %v1530_v59 = vmul.f32 %v1430_v6, %v5412_v7  ;;  %v5458_v38 = vadd.f32 %v5267_v48, %v6031_v39  ;;  %v5462_v42 = vadd.f32 %v6039_v16, %v6033_v45 }
 0x363   : > { %v2181_v0 = vpack.c.bf16 %v2121_v58, %v2117_v47  ;;  %v1531_v57 = vmul.f32 %v1431_v32, %v5420_v12  ;;  %v1434_v9 = vmul.f32 0.044715, %v5448_v34  ;;  %v1435_v51 = vmul.f32 0.044715, %v5452_v19 }
 0x364   : > { %v1533_v15 = vmul.f32 %v1433_v13, %v5432_v43  ;;  %v1437_v49 = vmul.f32 0.044715, %v5458_v38  ;;  %v1436_v36 = vmul.f32 0.044715, %v5462_v42  ;;  %v5472_v48 = vadd.f32 %v5274_v50, %v6035_v17 }
 0x365   : > { %2699 = vmatmul.mubr.bf16.gmra.mrb[88].mxu1 %v2181_v0  ;;  %v1532_v2 = vmul.f32 %v1432_v60, %v5436_v11  ;;  %v1534_v54 = vmul.f32 %v1434_v9, %v5448_v34  ;;  %v1535_v37 = vmul.f32 %v1435_v51, %v5452_v19  ;;  %v5479_v56 = vadd.f32 %v5290_v44, %v4264_v41 }
 0x366   : > { %v1537_v35 = vmul.f32 %v1437_v49, %v5458_v38  ;;  %v1536_v23 = vmul.f32 %v1436_v36, %v5462_v42  ;;  %v1438_v28 = vmul.f32 0.044715, %v5472_v48  ;;  %v5486_v50 = vadd.f32 %v5292_v5, %v6031_v39 }
 0x367   : > { %v1629_v26 = vmul.f32 %v1529_v14, %v5402_v31  ;;  %v1628_v10 = vmul.f32 %v1528_v8, %v5408_v20  ;;  %v1439_v53 = vmul.f32 0.044715, %v5479_v56  ;;  %v5493_v41 = vadd.f32 %v6040_v29, %v6033_v45 }
 0x368   : > { %v1630_v44 = vmul.f32 %v1530_v59, %v5412_v7  ;;  %v1631_v24 = vmul.f32 %v1531_v57, %v5420_v12  ;;  %v5498_v40 = vmul.f32 %v1533_v15, %v5432_v43  ;;  %v1538_v5 = vmul.f32 %v1438_v28, %v5472_v48 }
 0x369   : > { %v1632_v39 = vmul.f32 %v1532_v2, %v5436_v11  ;;  %v1634_v21 = vmul.f32 %v1534_v54, %v5448_v34  ;;  %v1441_v3 = vmul.f32 0.044715, %v5486_v50  ;;  %v5506_v22 = vadd.f32 %v6041_v33, %v6035_v17 }
 0x36a   : > { %v1635_v45 = vmul.f32 %v1535_v37, %v5452_v19  ;;  %v1637_v6 = vmul.f32 %v1537_v35, %v5458_v38  ;;  %v1636_v55 = vmul.f32 %v1536_v23, %v5462_v42  ;;  %v1724_v4 = vadd.f32 %v1624_v1, %v5378_v30 }
 0x36b   : > { %v5513_v32 = vmul.f32 %v1439_v53, %v5479_v56  ;;  %v1440_v47 = vmul.f32 0.044715, %v5493_v41  ;;  %v5517_v14 = vmul.f32 0.5, %v5378_v30  ;;  %v1728_v13 = vadd.f32 %v1628_v10, %v5408_v20 }
 0x36c   : > { %v1638_v17 = vmul.f32 %v1538_v5, %v5472_v48  ;;  %v1824_v58 = vmul.f32 0.7978846, %v1724_v4  ;;  %v1726_v60 = vadd.f32 %v1626_v27, %v5386_v62  ;;  %v1730_v8 = vadd.f32 %v1630_v44, %v5412_v7 }
 0x36d   : > { %v5524_v59 = vmul.f32 %v1441_v3, %v5486_v50  ;;  %v1442_v1 = vmul.f32 0.044715, %v5506_v22  ;;  %v5528_v16 = vmul.f32 0.5, %v5408_v20  ;;  %v1828_v0 = vmul.f32 0.7978846, %v1728_v13 }
 0x36e   : > { %3498 = vtanh.f32 %v1824_v58  ;;  %v1826_v30 = vmul.f32 0.7978846, %v1726_v60  ;;  %v1830_v57 = vmul.f32 0.7978846, %v1730_v8  ;;  %v1723_v9 = vadd.f32 %v5415_v52, %v5370_v18 }
 0x36f   : > { %v1540_v51 = vmul.f32 %v1440_v47, %v5493_v41  ;;  %3500 = vtanh.f32 %v1828_v0  ;;  %v1326_v27 = vmul.f32 0.5, %v5386_v62  ;;  %v1727_v15 = vadd.f32 %v5441_v63, %v5395_v61 }
 0x370   : > { %3502 = vtanh.f32 %v1826_v30  ;;  %v1823_v49 = vmul.f32 0.7978846, %v1723_v9  ;;  %v1725_v20 = vadd.f32 %v5423_v25, %v5374_v46  ;;  %v1729_v36 = vadd.f32 %v1629_v26, %v5402_v31 }
 0x371   : > { %v1542_v2 = vmul.f32 %v1442_v1, %v5506_v22  ;;  %v1330_v54 = vmul.f32 0.5, %v5412_v7  ;;  %3504 = vtanh.f32 %v1830_v57  ;;  %v1827_v52 = vmul.f32 0.7978846, %v1727_v15 }
 0x372   : > { %3506 = vtanh.f32 %v1823_v49  ;;  %v1825_v37 = vmul.f32 0.7978846, %v1725_v20  ;;  %v1829_v35 = vmul.f32 0.7978846, %v1729_v36  ;;  %v1732_v62 = vadd.f32 %v1632_v39, %v5436_v11 }
 0x373   : > { %v1323_v63 = vmul.f32 0.5, %v5370_v18  ;;  %v1327_v23 = vmul.f32 0.5, %v5395_v61  ;;  %3508 = vtanh.f32 %v1827_v52  ;;  %v1736_v25 = vadd.f32 %v1636_v55, %v5462_v42 }
 0x374   : > { %3510 = vtanh.f32 %v1825_v37  ;;  %v1832_v28 = vmul.f32 0.7978846, %v1732_v62  ;;  %v1734_v26 = vadd.f32 %v1634_v21, %v5448_v34  ;;  %v1738_v7 = vadd.f32 %v1638_v17, %v5472_v48 }
 0x375   : > { %v1325_v10 = vmul.f32 0.5, %v5374_v46  ;;  %v5549_v53 = vmul.f32 0.5, %v5402_v31  ;;  %3512 = vtanh.f32 %v1829_v35  ;;  %v1836_v29 = vmul.f32 0.7978846, %v1736_v25 }
 0x376   : > { %3514 = vtanh.f32 %v1832_v28  ;;  %v1834_v18 = vmul.f32 0.7978846, %v1734_v26  ;;  %v1838_v44 = vmul.f32 0.7978846, %v1738_v7  ;;  %v1731_v61 = vadd.f32 %v1631_v24, %v5420_v12 }
 0x377   : > { %v1332_v5 = vmul.f32 0.5, %v5436_v11  ;;  %v5554_v39 = vmul.f32 0.5, %v5462_v42  ;;  %3516 = vtanh.f32 %v1836_v29  ;;  %v1735_v21 = vadd.f32 %v1635_v45, %v5452_v19 }
 0x378   : > { %v3499_v3 = vpop.eup %3498  ;;  %3518 = vtanh.f32 %v1834_v18  ;;  %v1831_v46 = vmul.f32 0.7978846, %v1731_v61  ;;  %v1733_v31 = vadd.f32 %v5498_v40, %v5432_v43  ;;  %v1737_v33 = vadd.f32 %v1637_v6, %v5458_v38 }
 0x379   : > { %v3501_v55 = vpop.eup %3500  ;;  %v2024_v4 = vadd.f32 1.0, %v3499_v3  ;;  %v5561_v24 = vmul.f32 0.5, %v5448_v34  ;;  %3520 = vtanh.f32 %v1838_v44  ;;  %v1835_v11 = vmul.f32 0.7978846, %v1735_v21 }
 0x37a   : > { %v3503_v42 = vpop.eup %3502  ;;  %v2028_v47 = vadd.f32 1.0, %v3501_v55  ;;  %3522 = vtanh.f32 %v1831_v46  ;;  %v1833_v13 = vmul.f32 0.7978846, %v1733_v31  ;;  %v1837_v45 = vmul.f32 0.7978846, %v1737_v33 }
 0x37b   : > { %v3505_v17 = vpop.eup %3504  ;;  %v2026_v58 = vadd.f32 1.0, %v3503_v42  ;;  %v1338_v60 = vmul.f32 0.5, %v5472_v48  ;;  %3524 = vtanh.f32 %v1835_v11  ;;  %v1640_v40 = vmul.f32 %v1540_v51, %v5493_v41 }
 0x37c   : > { %v3507_v6 = vpop.eup %3506  ;;  %v2124_v8 = vmul.f32 %v2024_v4, %v5517_v14  ;;  %v2128_v34 = vmul.f32 %v2028_v47, %v5528_v16  ;;  %v2030_v1 = vadd.f32 1.0, %v3505_v17  ;;  %3526 = vtanh.f32 %v1833_v13 }
 0x37d   : > { %v3509_v0 = vpop.eup %3508  ;;  %v2126_v30 = vmul.f32 %v2026_v58, %v1326_v27  ;;  %v2023_v57 = vadd.f32 1.0, %v3507_v6  ;;  %3528 = vtanh.f32 %v1837_v45  ;;  %v1740_v9 = vadd.f32 %v1640_v40, %v5493_v41 }
 0x37e   : > { %v3511_v15 = vpop.eup %3510  ;;  %v2184_v49 = vpack.c.bf16 %v2128_v34, %v2124_v8  ;;  %v2130_v20 = vmul.f32 %v2030_v1, %v1330_v54  ;;  %v2027_v48 = vadd.f32 1.0, %v3509_v0  ;;  %v1642_v36 = vmul.f32 %v1542_v2, %v5506_v22 }
 0x37f   : > { %v3513_v51 = vpop.eup %3512  ;;  %v2123_v52 = vmul.f32 %v2023_v57, %v1323_v63  ;;  %v2025_v37 = vadd.f32 1.0, %v3511_v15  ;;  %v1331_v14 = vmul.f32 0.5, %v5420_v12  ;;  %v1840_v16 = vmul.f32 0.7978846, %v1740_v9 }
 0x380   : > { %v3515_v35 = vpop.eup %3514  ;;  %2570 = vmatprep.mubr.bf16.mxu0 %v2184_v49  ;;  %v2186_v62 = vpack.c.bf16 %v2130_v20, %v2126_v30  ;;  %v2127_v27 = vmul.f32 %v2027_v48, %v1327_v23  ;;  %v2029_v25 = vadd.f32 1.0, %v3513_v51  ;;  %v1742_v28 = vadd.f32 %v1642_v36, %v5506_v22 }
 0x381   : > { %v3517_v26 = vpop.eup %3516  ;;  %v2125_v7 = vmul.f32 %v2025_v37, %v1325_v10  ;;  %v2032_v29 = vadd.f32 1.0, %v3515_v35  ;;  %3530 = vtanh.f32 %v1840_v16  ;;  %v1639_v2 = vmul.f32 %v5513_v32, %v5479_v56 }
 0x382   : > { %v3519_v54 = vpop.eup %3518  ;;  %2706 = vmatprep.mubr.bf16.mxu1 %v2186_v62  ;;  %v2183_v63 = vpack.c.bf16 %v2127_v27, %v2123_v52  ;;  %v2129_v12 = vmul.f32 %v2029_v25, %v5549_v53  ;;  %v2036_v18 = vadd.f32 1.0, %v3517_v26  ;;  %v1842_v44 = vmul.f32 0.7978846, %v1742_v28 }
 0x383   : > { %v3521_v61 = vpop.eup %3520  ;;  %v2132_v21 = vmul.f32 %v2032_v29, %v1332_v5  ;;  %v2034_v23 = vadd.f32 1.0, %v3519_v54  ;;  %v1335_v3 = vmul.f32 0.5, %v5452_v19  ;;  %v1739_v46 = vadd.f32 %v1639_v2, %v5479_v56 }
 0x384   : > { %v3523_v10 = vpop.eup %3522  ;;  %2571 = vmatmul.mubr.bf16.gmra.mrb[92].mxu0 %v2183_v63  ;;  %v2185_v31 = vpack.c.bf16 %v2129_v12, %v2125_v7  ;;  %v2136_v33 = vmul.f32 %v2036_v18, %v5554_v39  ;;  %v2038_v32 = vadd.f32 1.0, %v3521_v61  ;;  %3532 = vtanh.f32 %v1842_v44 }
 0x385   : > { %v3525_v55 = vpop.eup %3524  ;;  %v2031_v4 = vadd.f32 1.0, %v3523_v10  ;;  %v1333_v53 = vmul.f32 0.5, %v5432_v43  ;;  %v1839_v11 = vmul.f32 0.7978846, %v1739_v46  ;;  %v1641_v5 = vmul.f32 %v5524_v59, %v5486_v50 }
 0x386   : > { %v3527_v42 = vpop.eup %3526  ;;  %2707 = vmatmul.mubr.bf16.gmra.mrb[92].mxu1 %v2185_v31  ;;  %v2188_v19 = vpack.c.bf16 %v2136_v33, %v2132_v21  ;;  %v2134_v47 = vmul.f32 %v2034_v23, %v5561_v24  ;;  %v2138_v13 = vmul.f32 %v2038_v32, %v1338_v60  ;;  %v2035_v45 = vadd.f32 1.0, %v3525_v55 }
 0x387   : > { %v3529_v17 = vpop.eup %3528  ;;  %v1337_v39 = vmul.f32 0.5, %v5458_v38  ;;  %v2033_v58 = vadd.f32 1.0, %v3527_v42  ;;  %3534 = vtanh.f32 %v1839_v11  ;;  %v1741_v40 = vadd.f32 %v1641_v5, %v5486_v50 }
 0x388   : > { %2578 = vmatprep.mubr.bf16.mxu0 %v2188_v19  ;;  %v2190_v43 = vpack.c.bf16 %v2138_v13, %v2134_v47  ;;  %v2131_v6 = vmul.f32 %v2031_v4, %v1331_v14  ;;  %v2135_v8 = vmul.f32 %v2035_v45, %v1335_v3  ;;  %v2037_v34 = vadd.f32 1.0, %v3529_v17 }
 0x389   : > { %v1841_v59 = vmul.f32 0.7978846, %v1741_v40  ;;  %v2133_v0 = vmul.f32 %v2033_v58, %v1333_v53  ;;  %v1340_v38 = vmul.f32 0.5, %v5493_v41  ;;  %v1342_v49 = vmul.f32 0.5, %v5506_v22  ;;  %v5590_v22 = vld [vmem:[%s5703_s6] ss:$0 sm:$0xff] }
 0x38a   : > { %2714 = vmatprep.mubr.bf16.mxu1 %v2190_v43  ;;  %v2187_v1 = vpack.c.bf16 %v2135_v8, %v2131_v6  ;;  %v2137_v30 = vmul.f32 %v2037_v34, %v1337_v39  ;;  %v1339_v52 = vmul.f32 0.5, %v5479_v56  ;;  %v1341_v41 = vmul.f32 0.5, %v5486_v50 }
 0x38b   : > { %v3531_v24 = vpop.eup %3530  ;;  %3536 = vtanh.f32 %v1841_v59 }
 0x38c   : > { %2579 = vmatmul.mubr.bf16.gmra.mrb[96].mxu0 %v2187_v1  ;;  %v2189_v60 = vpack.c.bf16 %v2137_v30, %v2133_v0  ;;  %v2040_v57 = vadd.f32 1.0, %v3531_v24 }
 0x38e   : > { %v3533_v9 = vpop.eup %3532  ;;  %2715 = vmatmul.mubr.bf16.gmra.mrb[96].mxu1 %v2189_v60  ;;  %v2140_v15 = vmul.f32 %v2040_v57, %v1340_v38 }
 0x38f   : > { %v2042_v20 = vadd.f32 1.0, %v3533_v9 }
 0x390   : > { %v2192_v48 = vpack.c.bf16 %v2140_v15, %v2140_v15 }
 0x391   : > { %v3535_v36 = vpop.eup %3534  ;;  %v2142_v51 = vmul.f32 %v2042_v20, %v1342_v49 }
 0x392   : > { %2586 = vmatprep.mubr.bf16.mxu0 %v2192_v48  ;;  %v2039_v37 = vadd.f32 1.0, %v3535_v36 }
 0x393   : > { %v2194_v14 = vpack.c.bf16 %v2142_v51, %v2142_v51 }
 0x394   : > { %v2139_v16 = vmul.f32 %v2039_v37, %v1339_v52 }
 0x395   : > { %v3537_v35 = vpop.eup %3536  ;;  %2722 = vmatprep.mubr.bf16.mxu1 %v2194_v14 }
 0x396   : > { %v2191_v62 = vpack.c.bf16 %v2139_v16, %v2139_v16  ;;  %v2041_v27 = vadd.f32 1.0, %v3537_v35 }
 0x397   : > { %v2958_v25 = vpop.f32.mrb[52].mxu0 }
 0x398   : > { %2587 = vmatmul.mubr.bf16.gmra.mrb[100].mxu0 %v2191_v62  ;;  %v2141_v28 = vmul.f32 %v2041_v27, %v1341_v41  ;;  %v2959_v26 = vpop.f32.mrb[53].mxu0 }
 0x399   : > { %v3052_v56 = vpop.f32.mrb[52].mxu1  ;;  %v2960_v7 = vadd.f32 %v2959_v26, %v2958_v25  ;;  %v2961_v29 = vpop.f32.mrb[54].mxu0 }
 0x39a   : > { %v2193_v2 = vpack.c.bf16 %v2141_v28, %v2141_v28  ;;  %v3053_v54 = vpop.f32.mrb[53].mxu1  ;;  %v2962_v63 = vpop.f32.mrb[55].mxu0 }
 0x39b   : > { %v2493_v12 = vadd.f32 %v2960_v7, %v5590_v22  ;;  %v3054_v50 = vadd.f32 %v3053_v54, %v3052_v56  ;;  %v3055_v18 = vpop.f32.mrb[54].mxu1  ;;  %v2963_v44 = vadd.f32 %v2962_v63, %v2961_v29 }
 0x39c   : > { %2723 = vmatmul.mubr.bf16.gmra.mrb[100].mxu1 %v2193_v2  ;;  %v3056_v61 = vpop.f32.mrb[55].mxu1 }
 0x39d   : > { %v2629_v21 = vadd.f32 %v3054_v50, %v2493_v12  ;;  %v2496_v23 = vadd.f32 %v2963_v44, %v5590_v22  ;;  %v3057_v3 = vadd.f32 %v3056_v61, %v3055_v18 }
 0x39f   : > { %2730 = vst [vmem:[%s5596_s3] sm:$0xff] %v2629_v21  ;;  %v2632_v46 = vadd.f32 %v3057_v3, %v2496_v23 }
 0x3a1   : > { %2731 = vst [vmem:[%s5596_s3 + $0x8] sm:$0xff] %v2632_v46 }
 0x3ac   : > { %v2964_v10 = vpop.f32.mrb[56].mxu0 }
 0x3ad   : > { %v2965_v31 = vpop.f32.mrb[57].mxu0 }
 0x3ae   : > { %v2966_v33 = vadd.f32 %v2965_v31, %v2964_v10  ;;  %v2967_v32 = vpop.f32.mrb[58].mxu0  ;;  %v3058_v55 = vpop.f32.mrb[56].mxu1 }
 0x3af   : > { %v2968_v4 = vpop.f32.mrb[59].mxu0  ;;  %v3059_v11 = vpop.f32.mrb[57].mxu1 }
 0x3b0   : > { %v2501_v53 = vadd.f32 %v2966_v33, %v5590_v22  ;;  %v2969_v5 = vadd.f32 %v2968_v4, %v2967_v32  ;;  %v3060_v42 = vadd.f32 %v3059_v11, %v3058_v55  ;;  %v3061_v19 = vpop.f32.mrb[58].mxu1 }
 0x3b1   : > { %v3062_v13 = vpop.f32.mrb[59].mxu1 }
 0x3b2   : > { %v2504_v47 = vadd.f32 %v2969_v5, %v5590_v22  ;;  %v2637_v45 = vadd.f32 %v3060_v42, %v2501_v53  ;;  %v3063_v17 = vadd.f32 %v3062_v13, %v3061_v19 }
 0x3b4   : > { %2732 = vst [vmem:[%s5596_s3 + $0x10] sm:$0xff] %v2637_v45  ;;  %v2640_v39 = vadd.f32 %v3063_v17, %v2504_v47 }
 0x3b6   : > { %2733 = vst [vmem:[%s5596_s3 + $0x18] sm:$0xff] %v2640_v39 }
 0x3c2   : > { %v2970_v58 = vpop.f32.mrb[60].mxu0 }
 0x3c3   : > { %v2971_v40 = vpop.f32.mrb[61].mxu0 }
 0x3c4   : > { %v3064_v43 = vpop.f32.mrb[60].mxu1  ;;  %v2972_v6 = vadd.f32 %v2971_v40, %v2970_v58  ;;  %v2973_v8 = vpop.f32.mrb[62].mxu0 }
 0x3c5   : > { %v3065_v34 = vpop.f32.mrb[61].mxu1  ;;  %v2974_v59 = vpop.f32.mrb[63].mxu0 }
 0x3c6   : > { %v2509_v1 = vadd.f32 %v2972_v6, %v5590_v22  ;;  %v3066_v0 = vadd.f32 %v3065_v34, %v3064_v43  ;;  %v3067_v30 = vpop.f32.mrb[62].mxu1  ;;  %v2975_v24 = vadd.f32 %v2974_v59, %v2973_v8 }
 0x3c7   : > { %v3068_v60 = vpop.f32.mrb[63].mxu1 }
 0x3c8   : > { %v2645_v38 = vadd.f32 %v3066_v0, %v2509_v1  ;;  %v2512_v57 = vadd.f32 %v2975_v24, %v5590_v22  ;;  %v3069_v9 = vadd.f32 %v3068_v60, %v3067_v30 }
 0x3ca   : > { %2734 = vst [vmem:[%s5596_s3 + $0x20] sm:$0xff] %v2645_v38  ;;  %v2648_v15 = vadd.f32 %v3069_v9, %v2512_v57 }
 0x3cc   : > { %2735 = vst [vmem:[%s5596_s3 + $0x28] sm:$0xff] %v2648_v15 }
 0x3d7   : > { %v2976_v49 = vpop.f32.mrb[64].mxu0 }
 0x3d8   : > { %v2977_v20 = vpop.f32.mrb[65].mxu0 }
 0x3d9   : > { %v3070_v48 = vpop.f32.mrb[64].mxu1  ;;  %v2978_v36 = vadd.f32 %v2977_v20, %v2976_v49  ;;  %v2979_v51 = vpop.f32.mrb[66].mxu0 }
 0x3da   : > { %v3071_v52 = vpop.f32.mrb[65].mxu1  ;;  %v2980_v37 = vpop.f32.mrb[67].mxu0 }
 0x3db   : > { %v2517_v14 = vadd.f32 %v2978_v36, %v5590_v22  ;;  %v3072_v16 = vadd.f32 %v3071_v52, %v3070_v48  ;;  %v3073_v35 = vpop.f32.mrb[66].mxu1  ;;  %v2981_v62 = vadd.f32 %v2980_v37, %v2979_v51 }
 0x3dc   : > { %v3074_v41 = vpop.f32.mrb[67].mxu1 }
 0x3dd   : > { %v2653_v27 = vadd.f32 %v3072_v16, %v2517_v14  ;;  %v2520_v25 = vadd.f32 %v2981_v62, %v5590_v22  ;;  %v3075_v28 = vadd.f32 %v3074_v41, %v3073_v35 }
 0x3df   : > { %2736 = vst [vmem:[%s5596_s3 + $0x30] sm:$0xff] %v2653_v27  ;;  %v2656_v26 = vadd.f32 %v3075_v28, %v2520_v25 }
 0x3e1   : > { %2737 = vst [vmem:[%s5596_s3 + $0x38] sm:$0xff] %v2656_v26 }
 0x3ec   : > { %v2982_v56 = vpop.f32.mrb[68].mxu0 }
 0x3ed   : > { %v2983_v7 = vpop.f32.mrb[69].mxu0 }
 0x3ee   : > { %v3076_v29 = vpop.f32.mrb[68].mxu1  ;;  %v2984_v2 = vadd.f32 %v2983_v7, %v2982_v56  ;;  %v2985_v54 = vpop.f32.mrb[70].mxu0 }
 0x3ef   : > { %v3077_v63 = vpop.f32.mrb[69].mxu1  ;;  %v2986_v12 = vpop.f32.mrb[71].mxu0 }
 0x3f0   : > { %v2525_v50 = vadd.f32 %v2984_v2, %v5590_v22  ;;  %v3078_v18 = vadd.f32 %v3077_v63, %v3076_v29  ;;  %v3079_v44 = vpop.f32.mrb[70].mxu1  ;;  %v2987_v61 = vadd.f32 %v2986_v12, %v2985_v54 }
 0x3f1   : > { %v3080_v21 = vpop.f32.mrb[71].mxu1 }
 0x3f2   : > { %v2661_v23 = vadd.f32 %v3078_v18, %v2525_v50  ;;  %v2528_v3 = vadd.f32 %v2987_v61, %v5590_v22  ;;  %v3081_v46 = vadd.f32 %v3080_v21, %v3079_v44 }
 0x3f4   : > { %2738 = vst [vmem:[%s5596_s3 + $0x40] sm:$0xff] %v2661_v23  ;;  %v2664_v10 = vadd.f32 %v3081_v46, %v2528_v3 }
 0x3f6   : > { %2739 = vst [vmem:[%s5596_s3 + $0x48] sm:$0xff] %v2664_v10 }
 0x401   : > { %v2988_v31 = vpop.f32.mrb[72].mxu0 }
 0x402   : > { %v2989_v33 = vpop.f32.mrb[73].mxu0 }
 0x403   : > { %v3082_v32 = vpop.f32.mrb[72].mxu1  ;;  %v2990_v55 = vadd.f32 %v2989_v33, %v2988_v31  ;;  %v2991_v4 = vpop.f32.mrb[74].mxu0 }
 0x404   : > { %v3083_v53 = vpop.f32.mrb[73].mxu1  ;;  %v2992_v11 = vpop.f32.mrb[75].mxu0 }
 0x405   : > { %v2533_v5 = vadd.f32 %v2990_v55, %v5590_v22  ;;  %v3084_v42 = vadd.f32 %v3083_v53, %v3082_v32  ;;  %v3085_v19 = vpop.f32.mrb[74].mxu1  ;;  %v2993_v47 = vadd.f32 %v2992_v11, %v2991_v4 }
 0x406   : > { %v3086_v13 = vpop.f32.mrb[75].mxu1 }
 0x407   : > { %v2669_v45 = vadd.f32 %v3084_v42, %v2533_v5  ;;  %v2536_v17 = vadd.f32 %v2993_v47, %v5590_v22  ;;  %v3087_v39 = vadd.f32 %v3086_v13, %v3085_v19 }
 0x409   : > { %2740 = vst [vmem:[%s5596_s3 + $0x50] sm:$0xff] %v2669_v45  ;;  %v2672_v58 = vadd.f32 %v3087_v39, %v2536_v17 }
 0x40b   : > { %2741 = vst [vmem:[%s5596_s3 + $0x58] sm:$0xff] %v2672_v58 }
 0x40e   : > { %v2994_v40 = vpop.f32.mrb[76].mxu0 }
 0x40f   : > { %v2995_v43 = vpop.f32.mrb[77].mxu0 }
 0x410   : > { %v3088_v6 = vpop.f32.mrb[76].mxu1  ;;  %v2996_v8 = vadd.f32 %v2995_v43, %v2994_v40  ;;  %v2997_v34 = vpop.f32.mrb[78].mxu0 }
 0x411   : > { %v3089_v59 = vpop.f32.mrb[77].mxu1  ;;  %v2998_v1 = vpop.f32.mrb[79].mxu0 }
 0x412   : > { %v2541_v0 = vadd.f32 %v2996_v8, %v5590_v22  ;;  %v3090_v30 = vadd.f32 %v3089_v59, %v3088_v6  ;;  %v3091_v24 = vpop.f32.mrb[78].mxu1  ;;  %v2999_v60 = vadd.f32 %v2998_v1, %v2997_v34 }
 0x413   : > { %v3092_v38 = vpop.f32.mrb[79].mxu1 }
 0x414   : > { %v2677_v57 = vadd.f32 %v3090_v30, %v2541_v0  ;;  %v2544_v9 = vadd.f32 %v2999_v60, %v5590_v22  ;;  %v3093_v15 = vadd.f32 %v3092_v38, %v3091_v24 }
 0x416   : > { %2742 = vst [vmem:[%s5596_s3 + $0x60] sm:$0xff] %v2677_v57  ;;  %v2680_v49 = vadd.f32 %v3093_v15, %v2544_v9 }
 0x418   : > { %2743 = vst [vmem:[%s5596_s3 + $0x68] sm:$0xff] %v2680_v49 }
 0x41a   : > { %v3000_v20 = vpop.f32.mrb[80].mxu0 }
 0x41b   : > { %v3001_v48 = vpop.f32.mrb[81].mxu0 }
 0x41c   : > { %v3094_v36 = vpop.f32.mrb[80].mxu1  ;;  %v3002_v51 = vadd.f32 %v3001_v48, %v3000_v20  ;;  %v3003_v52 = vpop.f32.mrb[82].mxu0 }
 0x41d   : > { %v3095_v37 = vpop.f32.mrb[81].mxu1  ;;  %v3004_v14 = vpop.f32.mrb[83].mxu0 }
 0x41e   : > { %v2549_v16 = vadd.f32 %v3002_v51, %v5590_v22  ;;  %v3096_v35 = vadd.f32 %v3095_v37, %v3094_v36  ;;  %v3097_v62 = vpop.f32.mrb[82].mxu1  ;;  %v3005_v41 = vadd.f32 %v3004_v14, %v3003_v52 }
 0x41f   : > { %v3098_v27 = vpop.f32.mrb[83].mxu1 }
 0x420   : > { %v2685_v25 = vadd.f32 %v3096_v35, %v2549_v16  ;;  %v2552_v28 = vadd.f32 %v3005_v41, %v5590_v22  ;;  %v3099_v26 = vadd.f32 %v3098_v27, %v3097_v62 }
 0x422   : > { %2744 = vst [vmem:[%s5596_s3 + $0x70] sm:$0xff] %v2685_v25  ;;  %v2688_v56 = vadd.f32 %v3099_v26, %v2552_v28 }
 0x424   : > { %2745 = vst [vmem:[%s5596_s3 + $0x78] sm:$0xff] %v2688_v56 }
 0x427   : > { %v3006_v7 = vpop.f32.mrb[84].mxu0 }
 0x428   : > { %v3007_v29 = vpop.f32.mrb[85].mxu0 }
 0x429   : > { %v3008_v2 = vadd.f32 %v3007_v29, %v3006_v7  ;;  %v3009_v54 = vpop.f32.mrb[86].mxu0 }
 0x42a   : > { %v3010_v63 = vpop.f32.mrb[87].mxu0 }
 0x42b   : > { %v3100_v12 = vpop.f32.mrb[84].mxu1  ;;  %v2557_v50 = vadd.f32 %v3008_v2, %v5590_v22  ;;  %v3011_v18 = vadd.f32 %v3010_v63, %v3009_v54 }
 0x42c   : > { %v3101_v44 = vpop.f32.mrb[85].mxu1 }
 0x42d   : > { %v3102_v61 = vadd.f32 %v3101_v44, %v3100_v12  ;;  %v3103_v21 = vpop.f32.mrb[86].mxu1  ;;  %v2560_v23 = vadd.f32 %v3011_v18, %v5590_v22 }
 0x42e   : > { %v3104_v3 = vpop.f32.mrb[87].mxu1 }
 0x42f   : > { %v2693_v46 = vadd.f32 %v3102_v61, %v2557_v50  ;;  %v3105_v10 = vadd.f32 %v3104_v3, %v3103_v21 }
 0x431   : > { %2746 = vst [vmem:[%s5596_s3 + $0x80] sm:$0xff] %v2693_v46  ;;  %v2696_v31 = vadd.f32 %v3105_v10, %v2560_v23 }
 0x433   : > { %2747 = vst [vmem:[%s5596_s3 + $0x88] sm:$0xff] %v2696_v31 }
 0x434   : > { %v3012_v33 = vpop.f32.mrb[88].mxu0 }
 0x435   : > { %v3013_v32 = vpop.f32.mrb[89].mxu0 }
 0x436   : > { %v3014_v55 = vadd.f32 %v3013_v32, %v3012_v33  ;;  %v3015_v4 = vpop.f32.mrb[90].mxu0 }
 0x437   : > { %v3016_v53 = vpop.f32.mrb[91].mxu0 }
 0x438   : > { %v3106_v11 = vpop.f32.mrb[88].mxu1  ;;  %v2565_v5 = vadd.f32 %v3014_v55, %v5590_v22  ;;  %v3017_v42 = vadd.f32 %v3016_v53, %v3015_v4 }
 0x439   : > { %v3107_v19 = vpop.f32.mrb[89].mxu1 }
 0x43a   : > { %v3108_v47 = vadd.f32 %v3107_v19, %v3106_v11  ;;  %v3109_v13 = vpop.f32.mrb[90].mxu1  ;;  %v2568_v45 = vadd.f32 %v3017_v42, %v5590_v22 }
 0x43b   : > { %v3110_v17 = vpop.f32.mrb[91].mxu1 }
 0x43c   : > { %v2701_v39 = vadd.f32 %v3108_v47, %v2565_v5  ;;  %v3111_v58 = vadd.f32 %v3110_v17, %v3109_v13 }
 0x43e   : > { %2748 = vst [vmem:[%s5596_s3 + $0x90] sm:$0xff] %v2701_v39  ;;  %v2704_v40 = vadd.f32 %v3111_v58, %v2568_v45 }
 0x440   : > { %2749 = vst [vmem:[%s5596_s3 + $0x98] sm:$0xff] %v2704_v40 }
 0x457   : > { %v3018_v43 = vpop.f32.mrb[92].mxu0 }
 0x458   : > { %v3019_v6 = vpop.f32.mrb[93].mxu0 }
 0x459   : > { %v3112_v8 = vpop.f32.mrb[92].mxu1  ;;  %v3020_v34 = vadd.f32 %v3019_v6, %v3018_v43  ;;  %v3021_v59 = vpop.f32.mrb[94].mxu0 }
 0x45a   : > { %v3113_v1 = vpop.f32.mrb[93].mxu1  ;;  %v3022_v0 = vpop.f32.mrb[95].mxu0 }
 0x45b   : > { %v2573_v30 = vadd.f32 %v3020_v34, %v5590_v22  ;;  %v3114_v24 = vadd.f32 %v3113_v1, %v3112_v8  ;;  %v3115_v60 = vpop.f32.mrb[94].mxu1  ;;  %v3023_v38 = vadd.f32 %v3022_v0, %v3021_v59 }
 0x45c   : > { %v3116_v57 = vpop.f32.mrb[95].mxu1 }
 0x45d   : > { %v2709_v9 = vadd.f32 %v3114_v24, %v2573_v30  ;;  %v2576_v15 = vadd.f32 %v3023_v38, %v5590_v22  ;;  %v3117_v49 = vadd.f32 %v3116_v57, %v3115_v60 }
 0x45f   : > { %2750 = vst [vmem:[%s5596_s3 + $0xa0] sm:$0xff] %v2709_v9  ;;  %v2712_v20 = vadd.f32 %v3117_v49, %v2576_v15  ;;  %v3024_v48 = vpop.f32.mrb[96].mxu0 }
 0x460   : > { %v3025_v36 = vpop.f32.mrb[97].mxu0 }
 0x461   : > { %2751 = vst [vmem:[%s5596_s3 + $0xa8] sm:$0xff] %v2712_v20  ;;  %v3118_v51 = vpop.f32.mrb[96].mxu1  ;;  %v3026_v52 = vadd.f32 %v3025_v36, %v3024_v48  ;;  %v3027_v37 = vpop.f32.mrb[98].mxu0 }
 0x462   : > { %v3119_v14 = vpop.f32.mrb[97].mxu1  ;;  %v3028_v16 = vpop.f32.mrb[99].mxu0 }
 0x463   : > { %v2581_v35 = vadd.f32 %v3026_v52, %v5590_v22  ;;  %v3120_v62 = vadd.f32 %v3119_v14, %v3118_v51  ;;  %v3121_v41 = vpop.f32.mrb[98].mxu1  ;;  %v3029_v27 = vadd.f32 %v3028_v16, %v3027_v37 }
 0x464   : > { %v3122_v25 = vpop.f32.mrb[99].mxu1 }
 0x465   : > { %v2717_v28 = vadd.f32 %v3120_v62, %v2581_v35  ;;  %v2584_v26 = vadd.f32 %v3029_v27, %v5590_v22  ;;  %v3123_v56 = vadd.f32 %v3122_v25, %v3121_v41 }
 0x467   : > { %2752 = vst [vmem:[%s5596_s3 + $0xb0] sm:$0xff] %v2717_v28  ;;  %v2720_v7 = vadd.f32 %v3123_v56, %v2584_v26 }
 0x469   : > { %2753 = vst [vmem:[%s5596_s3 + $0xb8] sm:$0xff] %v2720_v7 }
 0x46b   : > { %v3030_v29 = vpop.f32.mrb[100].mxu0 }
 0x46c   : > { %v3031_v2 = vpop.f32.mrb[101].mxu0 }
 0x46d   : > { %v3032_v54 = vadd.f32 %v3031_v2, %v3030_v29  ;;  %v3033_v63 = vpop.f32.mrb[102].mxu0 }
 0x46e   : > { %v3034_v12 = vpop.f32.mrb[103].mxu0 }
 0x46f   : > { %v3124_v50 = vpop.f32.mrb[100].mxu1  ;;  %v2589_v18 = vadd.f32 %v3032_v54, %v5590_v22 }
 0x470   : > { %v3125_v44 = vpop.f32.mrb[101].mxu1 }
 0x471   : > { %v3126_v61 = vadd.f32 %v3125_v44, %v3124_v50  ;;  %v3127_v21 = vpop.f32.mrb[102].mxu1 }
 0x472   : > { %v3128_v23 = vpop.f32.mrb[103].mxu1 }
 0x473   : > { %v2725_v3 = vadd.f32 %v3126_v61, %v2589_v18 }
 0x475   : > { %2754 = vst [vmem:[%s5596_s3 + $0xc0] sm:$0xff] %v2725_v3 }
 0x476   : > { %3637 = shalt.err (!%p3634_p2)
}
 0x477   : > { %s3638_s29 = scalar_lea.hbm %s5650_s12, 3200  ;;  %s3642_s23 = scalar_lea.hbm %s5704_s7, 6400 }
 0x478   : > { %p3639_p13 = scmp.ne.s32.totalorder %s5650_s12, %s3638_s29  ;;  %p3643_p4 = scmp.lt.u32.totalorder %s5650_s12, %s5704_s7 }
 0x479   : > { %p3644_p7 = scmp.lt.u32.totalorder %s3642_s23, %s3638_s29  ;;  %p3646_p11 = scmp.lt.u32.totalorder %s3638_s29, %s5650_s12 }
 0x47a   : > { %p3640_p6 = pnand %p3639_p13, %p6042_p0 }
 0x47b   : > { %p3645_p8 = por %p3644_p7, %p3643_p4 }
 0x47c   : > { %p3641_p10 = pneg %p3640_p6 }
 0x47d   : > { %p3647_p1 = por %p3646_p11, %p3645_p8 }
 0x47f   : > { %p3648_p3 = pnand %p3647_p1, %p3641_p10 }
 0x481   : > { %3651 = shalt.err (!%p3648_p3)
}
 0x482   : > { %s3707_s21 = smov 128   ;;  %s3708_s11 = smov 8  }
 0x483   : > { %3142 = dma.vmem_to_hbm [thread:$0]  (%p6042_p0), %s5652_s16, 3200, %s5650_s12, %s2756_s28, %s3707_s21, %s3707_s21, %s3708_s11  }
 0x484 PF: > { %s2784_s30 = sand.u32 1, %s3682_s24   ;;  %p6043_p5 = scmp.ne.s32.totalorder %s5804_s8, 0 }
 0x485   : > { %p6044_p9 = scmp.ge.s32.totalorder %s3694_s27, 2  ;;  %s2785_s9 = scalar_lea.sflag [#allocation4], %s2784_s30 }
 0x487   : > { %p3156_p12 = pnand %p6044_p9, %p6043_p5 }
 0x489   : > { %3677 = dma.done.wait (!%p3156_p12), %s2785_s9, 3200  }
 0x48a   : > { %3679 = vsyncadd (!%p3156_p12), %s2785_s9, 4294964096  ;;  %p21_p2 = scmp.ge.s32.totalorder %s3859_s13, 4   ;;  %s6045_s24 = smov %s3686_s25 }
 0x48b   : > { %s6046_s25 = smov %s3690_s26  ;;  %s6047_s26 = smov %s3868_s17 }
 0x48c   : > { %s6048_s27 = smov %s3859_s13  ;;  %23 = sbr.rel (!%p21_p2) target bundleno = 8 (0x8), region = 101 }
 0x493   :  { %2790 = vsyncpa [#allocation3], 1 }
 0x494   :  { %2792 = vsyncpa [#allocation3 + $0x1], 1 }
 0x495   :  { %2793 = vsyncpa [#allocation6], 1 }
 0x496   :  { %2794 = vsyncpa [#allocation4], 1 }
 0x497   :  { %2796 = vsyncpa [#allocation4 + $0x1], 1 }

</bundles_post_ra>
